<compile_context>
chip_gen: v6e
topology: v6e:2x2x1
jax: 0.10.0
libtpu: 0.0.40
codegen_flags: <defaults>
</compile_context>

<pallas_src>
import functools

import jax
import jax.numpy as jnp
from jax import lax
from jax.experimental import pallas as pl
from jax.experimental.pallas import tpu as pltpu


def _round_up(x, m):
    return (x + m - 1) // m * m


def _basic_block_kernel(xp_ref, w1_ref, w2_ref, bnb_ref, *rest,
                        ho, wo, wo_p, stride, downsampling):
    """One image per grid step.

    xp_ref   : (s, s, Hps, Wps, Cpad_in)   bf16  phase-split zero-padded input
    w1_ref   : (9, Cpad_in, Cpad_out)      bf16  conv1 weights (BN scale folded in)
    w2_ref   : (9, Cpad_out, Cpad_out)     bf16  conv2 weights
    bnb_ref  : (1, Cpad_out)               f32   folded BN shift
    ws_ref   : (Cpad_in, Cpad_out)         bf16  1x1 shortcut weights (only if downsampling)
    out_ref  : (ho*wo_p, Cpad_out)         bf16  lane-dense output slab
    hpad_ref : (ho+2, Wpad2, Cpad_out)     bf16  scratch: zero-padded conv1 output
    """
    if downsampling:
        ws_ref, out_ref, hpad_ref = rest
    else:
        out_ref, hpad_ref = rest
        ws_ref = None

    cpad_in = xp_ref.shape[-1]
    cpad_out = out_ref.shape[-1]
    wpad2 = hpad_ref.shape[1]
    m = ho * wo_p
    s = stride

    # ---- conv1 (3x3, stride folded into the phase-split layout):
    # 9 accumulating per-tap matmuls, K = Cpad_in each; f32 accumulator value.
    acc1 = None
    for kh in range(3):
        for kw in range(3):
            tap = xp_ref[kh % s, kw % s,
                         kh // s:kh // s + ho,
                         kw // s:kw // s + wo_p, :].reshape(m, cpad_in)
            d = jnp.dot(tap, w1_ref[kh * 3 + kw],
                        preferred_element_type=jnp.float32)
            acc1 = d if acc1 is None else acc1 + d

    # ---- folded BatchNorm shift + ReLU (kept f32 on the VPU).
    h1 = jnp.maximum(acc1 + bnb_ref[...], 0.0)

    # ---- stage h1 into the padded scratch with an aligned full-width store:
    # build the column padding in registers so the interior store starts at
    # sublane offset 0; zero only the top/bottom halo rows per step.
    h1_3d = h1.astype(jnp.bfloat16).reshape(ho, wo_p, cpad_out)
    if wo_p != wo:
        # zero the alignment-garbage columns so conv2's right-edge taps see
        # real zero padding.
        col = lax.broadcasted_iota(jnp.int32, (ho, wo_p, 1), 1)
        h1_3d = jnp.where(col < wo, h1_3d, jnp.zeros_like(h1_3d))
    h1_pad = jnp.concatenate(
        [jnp.zeros((ho, 1, cpad_out), jnp.bfloat16),
         h1_3d,
         jnp.zeros((ho, wpad2 - wo_p - 1, cpad_out), jnp.bfloat16)],
        axis=1)
    zrow = jnp.zeros((1, wpad2, cpad_out), jnp.bfloat16)
    hpad_ref[0:1, :, :] = zrow
    hpad_ref[ho + 1:ho + 2, :, :] = zrow
    hpad_ref[1:ho + 1, :, :] = h1_pad

    # ---- conv2 (3x3, stride 1, pad 1): again 9 accumulating per-tap matmuls.
    acc2 = None
    for kh in range(3):
        for kw in range(3):
            tap = hpad_ref[kh:kh + ho, kw:kw + wo_p, :].reshape(m, cpad_out)
            d = jnp.dot(tap, w2_ref[kh * 3 + kw],
                        preferred_element_type=jnp.float32)
            acc2 = d if acc2 is None else acc2 + d

    # ---- shortcut: reuse the (strided) center tap of the already-loaded input.
    sc_tap = xp_ref[1 % s, 1 % s,
                    1 // s:1 // s + ho,
                    1 // s:1 // s + wo_p, :].reshape(m, cpad_in)
    if downsampling:
        sc = jnp.dot(sc_tap, ws_ref[...], preferred_element_type=jnp.float32)
    else:
        sc = sc_tap.astype(jnp.float32)

    # ---- residual add + final ReLU in f32, store bf16 (halved writeback).
    out_ref[...] = jnp.maximum(acc2 + sc, 0.0).astype(out_ref.dtype)


def basic_block_forward(x_nchw, params, *, stride=1, downsampling=False):
    """x_nchw: (N, Cin, H, W) float32. Returns (N, Cout, Ho, Wo) bfloat16."""
    n, cin, h, w = x_nchw.shape
    w1 = params["w1"].astype(jnp.float32)          # (3, 3, Cin, Cout) HWIO
    w2 = params["w2"].astype(jnp.float32)          # (3, 3, Cout, Cout)
    cout = w1.shape[-1]
    s = stride
    ho = (h - 1) // s + 1
    wo = (w - 1) // s + 1
    wo_p = _round_up(wo, 8)        # 8-aligned matmul M layout (repack-free reshapes)
    m = ho * wo_p

    # Lane-dense channel padding (multiple of 128).
    # TODO(synk): for layers with cin/cout < 128 this blind padding wastes MXU
    #             work/DMA; an unpadded-K im2col built in the wrapper would
    #             trade that against re-materializing patches in HBM.
    cpad_in = _round_up(cin, 128)
    cpad_out = _round_up(cout, 128)

    # ---- activations: NCHW -> NHWC, zero-pad (1px spatial + channels to 128),
    #      then phase-split by stride so every in-kernel tap is contiguous.
    x_nhwc = jnp.transpose(x_nchw, (0, 2, 3, 1)).astype(jnp.float32)
    xp = jnp.pad(x_nhwc, ((0, 0), (1, 1), (1, 1), (0, cpad_in - cin)))
    hps = 2 // s + ho
    wps = 2 // s + wo_p
    xp = jnp.pad(xp, ((0, 0), (0, hps * s - (h + 2)), (0, wps * s - (w + 2)), (0, 0)))
    xp = xp.reshape(n, hps, s, wps, s, cpad_in)
    xp = jnp.transpose(xp, (0, 2, 4, 1, 3, 5)).astype(jnp.bfloat16)   # (n, s, s, hps, wps, C)

    # ---- fold inference-mode BatchNorm scale into conv1 weights; keep shift.
    eps = 1e-5
    inv = params["gamma"] / jnp.sqrt(params["rvar"] + eps)
    w1f = w1 * inv                                                     # per-output-channel scale
    bnb = (params["beta"] - params["rmean"] * inv).astype(jnp.float32)
    bnb = jnp.pad(bnb.reshape(1, cout), ((0, 0), (0, cpad_out - cout)))

    w1p = jnp.pad(w1f, ((0, 0), (0, 0), (0, cpad_in - cin), (0, cpad_out - cout)))
    w1r = w1p.reshape(9, cpad_in, cpad_out).astype(jnp.bfloat16)       # per-tap slices
    w2p = jnp.pad(w2, ((0, 0), (0, 0), (0, cpad_out - cout), (0, cpad_out - cout)))
    w2r = w2p.reshape(9, cpad_out, cpad_out).astype(jnp.bfloat16)

    inputs = [xp, w1r, w2r, bnb]
    in_specs = [
        pl.BlockSpec((None, s, s, hps, wps, cpad_in),
                     lambda b: (b, 0, 0, 0, 0, 0)),                    # per-image, pipelined
        pl.BlockSpec((9, cpad_in, cpad_out), lambda b: (0, 0, 0)),     # weights: VMEM-resident
        pl.BlockSpec((9, cpad_out, cpad_out), lambda b: (0, 0, 0)),
        pl.BlockSpec((1, cpad_out), lambda b: (0, 0)),
    ]
    if downsampling:
        ws = params["ws"].reshape(cin, cout).astype(jnp.float32)
        wsr = jnp.pad(ws, ((0, cpad_in - cin), (0, cpad_out - cout))).astype(jnp.bfloat16)
        inputs.append(wsr)
        in_specs.append(pl.BlockSpec((cpad_in, cpad_out), lambda b: (0, 0)))
    else:
        assert cin == cout and stride == 1, "identity shortcut requires matching shapes"

    wpad2 = _round_up(wo_p + 2, 8)

    # ---- derive the VMEM budget from actual shapes (double-buffered blocks +
    #      weights + scratch + f32 temporaries), with headroom, capped for v7x.
    bpe = 2  # bf16
    in_block = s * s * hps * wps * cpad_in * bpe
    out_block = m * cpad_out * bpe
    weight_bytes = (9 * cpad_in * cpad_out + 9 * cpad_out * cpad_out
                    + (cpad_in * cpad_out if downsampling else 0)) * bpe + cpad_out * 4
    scratch_bytes = (ho + 2) * wpad2 * cpad_out * bpe
    live_f32 = 4 * m * cpad_out * 4          # acc1/acc2/shortcut/h1-style temporaries
    budget = 2 * (in_block + out_block + weight_bytes) + scratch_bytes + live_f32
    vmem_limit = int(min(max(2 * budget, 16 * 1024 * 1024), 56 * 1024 * 1024))

    kernel = functools.partial(_basic_block_kernel, ho=ho, wo=wo, wo_p=wo_p,
                               stride=s, downsampling=downsampling)

    out2d = pl.pallas_call(
        kernel,
        out_shape=jax.ShapeDtypeStruct((n, m, cpad_out), jnp.bfloat16),
        grid=(n,),
        in_specs=in_specs,
        out_specs=pl.BlockSpec((None, m, cpad_out), lambda b: (b, 0, 0)),
        scratch_shapes=[pltpu.VMEM((ho + 2, wpad2, cpad_out), jnp.bfloat16)],
        compiler_params=pltpu.CompilerParams(
            dimension_semantics=("parallel",),        # v7x: shard batch across 2 TCs
            vmem_limit_bytes=vmem_limit),
    )(*inputs)

    out_nhwc = out2d.reshape(n, ho, wo_p, cpad_out)[:, :, :wo, :cout]
    # Output stays bf16: downstream blocks consume bf16 and writeback is halved.
    return jnp.transpose(out_nhwc, (0, 3, 1, 2))


def basic_block_reference(x_nchw, params, *, stride=1, downsampling=False):
    """Pure-JAX reference (lax convs) for correctness checking."""
    x = jnp.transpose(x_nchw, (0, 2, 3, 1)).astype(jnp.float32)
    eps = 1e-5
    dn = ("NHWC", "HWIO", "NHWC")
    h1 = lax.conv_general_dilated(x, params["w1"], (stride, stride),
                                  ((1, 1), (1, 1)), dimension_numbers=dn)
    inv = params["gamma"] / jnp.sqrt(params["rvar"] + eps)
    h1 = h1 * inv + (params["beta"] - params["rmean"] * inv)
    h1 = jnp.maximum(h1, 0.0)
    h2 = lax.conv_general_dilated(h1, params["w2"], (1, 1),
                                  ((1, 1), (1, 1)), dimension_numbers=dn)
    if downsampling:
        sc = lax.conv_general_dilated(x, params["ws"], (stride, stride),
                                      ((0, 0), (0, 0)), dimension_numbers=dn)
    else:
        sc = x
    out = jnp.maximum(h2 + sc, 0.0)
    return jnp.transpose(out, (0, 3, 1, 2))


def init_params(key, insz, outsz, downsampling):
    k1, k2, k3 = jax.random.split(key, 3)
    p = {
        "w1": jax.random.normal(k1, (3, 3, insz, outsz), jnp.float32) * 0.1,
        "w2": jax.random.normal(k2, (3, 3, outsz, outsz), jnp.float32) * 0.1,
        "gamma": 1.0 + 0.1 * jnp.arange(outsz, dtype=jnp.float32),
        "beta": 0.05 * jnp.arange(outsz, dtype=jnp.float32),
        "rmean": 0.01 * jnp.arange(outsz, dtype=jnp.float32),
        "rvar": 1.0 + 0.02 * jnp.arange(outsz, dtype=jnp.float32),
    }
    if downsampling:
        p["ws"] = jax.random.normal(k3, (1, 1, insz, outsz), jnp.float32) * 0.1
    return p


if __name__ == "__main__":
    key = jax.random.PRNGKey(0)
    kx, kp1, kp2 = jax.random.split(key, 3)

    x = jax.random.normal(kx, (2, 4, 16, 16), jnp.float32)   # NCHW, like PyTorch

    # Tolerance is loosened vs the f32 lax reference because the MXU matmuls
    # run on bf16 operands (f32 accumulation) and the output is stored in bf16.
    TOL = 5e-2

    # Case 1: downsampling block (insz=4 -> outsz=8, stride=2, 1x1-conv shortcut)
    p1 = init_params(kp1, 4, 8, True)
    out1 = basic_block_forward(x, p1, stride=2, downsampling=True)
    jax.block_until_ready(out1)
    ref1 = basic_block_reference(x, p1, stride=2, downsampling=True)
    assert out1.shape == (2, 8, 8, 8), out1.shape
    assert jnp.allclose(out1.astype(jnp.float32), ref1, atol=TOL, rtol=TOL), \
        float(jnp.max(jnp.abs(out1.astype(jnp.float32) - ref1)))

    # Case 2: identity-shortcut block (insz=outsz=4, stride=1)
    p2 = init_params(kp2, 4, 4, False)
    out2 = basic_block_forward(x, p2, stride=1, downsampling=False)
    jax.block_until_ready(out2)
    ref2 = basic_block_reference(x, p2, stride=1, downsampling=False)
    assert out2.shape == (2, 4, 16, 16), out2.shape
    assert jnp.allclose(out2.astype(jnp.float32), ref2, atol=TOL, rtol=TOL), \
        float(jnp.max(jnp.abs(out2.astype(jnp.float32) - ref2)))

    print("KERNEL_OK")
</pallas_src>

<mosaic_0001>
module attributes {stable_mosaic.version = 11 : i64} {
  func.func @_basic_block_kernel(%arg0: i32, %arg1: memref<1x2x2x9x9x128xbf16, #tpu.memory_space<vmem>>, %arg2: memref<9x128x128xbf16, #tpu.memory_space<vmem>>, %arg3: memref<9x128x128xbf16, #tpu.memory_space<vmem>>, %arg4: memref<1x128xf32, #tpu.memory_space<vmem>>, %arg5: memref<128x128xbf16, #tpu.memory_space<vmem>>, %arg6: memref<1x64x128xbf16, #tpu.memory_space<vmem>>, %arg7: memref<10x16x128xbf16, #tpu.memory_space<vmem>>) attributes {dimension_semantics = [#tpu.dimension_semantics<parallel>], iteration_bounds = array<i64: 2>, scalar_prefetch = 0 : i64, scratch_operands = 1 : i64, tpu.core_type = #tpu.core_type<tc>, window_params = [{transform_indices = @transform_0, window_bounds = array<i64: 1, 2, 2, 9, 9, 128>}, {pipeline_mode = #tpu.pipeline_mode<synchronous>, transform_indices = @transform_1, window_bounds = array<i64: 9, 128, 128>}, {pipeline_mode = #tpu.pipeline_mode<synchronous>, transform_indices = @transform_2, window_bounds = array<i64: 9, 128, 128>}, {pipeline_mode = #tpu.pipeline_mode<synchronous>, transform_indices = @transform_3, window_bounds = array<i64: 1, 128>}, {pipeline_mode = #tpu.pipeline_mode<synchronous>, transform_indices = @transform_4, window_bounds = array<i64: 128, 128>}, {transform_indices = @transform_5, window_bounds = array<i64: 1, 64, 128>}]} {
    %c0 = arith.constant 0 : index
    %c0_0 = arith.constant 0 : index
    %c0_1 = arith.constant 0 : index
    %c0_2 = arith.constant 0 : index
    %c0_3 = arith.constant 0 : index
    %c0_4 = arith.constant 0 : index
    %0 = vector.load %arg1[%c0, %c0_0, %c0_1, %c0_2, %c0_3, %c0_4] : memref<1x2x2x9x9x128xbf16, #tpu.memory_space<vmem>>, vector<1x1x1x8x8x128xbf16>
    %1 = vector.shape_cast %0 : vector<1x1x1x8x8x128xbf16> to vector<8x8x128xbf16>
    %2 = vector.shape_cast %1 : vector<8x8x128xbf16> to vector<64x128xbf16>
    %c0_5 = arith.constant 0 : index
    %c0_6 = arith.constant 0 : index
    %c0_7 = arith.constant 0 : index
    %3 = vector.load %arg2[%c0_5, %c0_6, %c0_7] : memref<9x128x128xbf16, #tpu.memory_space<vmem>>, vector<1x128x128xbf16>
    %4 = vector.shape_cast %3 : vector<1x128x128xbf16> to vector<128x128xbf16>
    %cst = arith.constant dense<0.000000e+00> : vector<64x128xf32>
    %5 = tpu.matmul %2, %4, %cst {dimension_numbers = #tpu.dot_dimension_numbers<[1], [0], [0], [1], [0, 0, 1, 1], [], []>} : vector<64x128xbf16>, vector<128x128xbf16>, vector<64x128xf32> -> vector<64x128xf32>
    %c0_8 = arith.constant 0 : index
    %c0_9 = arith.constant 0 : index
    %c1 = arith.constant 1 : index
    %c0_10 = arith.constant 0 : index
    %c0_11 = arith.constant 0 : index
    %c0_12 = arith.constant 0 : index
    %6 = vector.load %arg1[%c0_8, %c0_9, %c1, %c0_10, %c0_11, %c0_12] : memref<1x2x2x9x9x128xbf16, #tpu.memory_space<vmem>>, vector<1x1x1x8x8x128xbf16>
    %7 = vector.shape_cast %6 : vector<1x1x1x8x8x128xbf16> to vector<8x8x128xbf16>
    %8 = vector.shape_cast %7 : vector<8x8x128xbf16> to vector<64x128xbf16>
    %c1_13 = arith.constant 1 : index
    %c0_14 = arith.constant 0 : index
    %c0_15 = arith.constant 0 : index
    %9 = vector.load %arg2[%c1_13, %c0_14, %c0_15] : memref<9x128x128xbf16, #tpu.memory_space<vmem>>, vector<1x128x128xbf16>
    %10 = vector.shape_cast %9 : vector<1x128x128xbf16> to vector<128x128xbf16>
    %cst_16 = arith.constant dense<0.000000e+00> : vector<64x128xf32>
    %11 = tpu.matmul %8, %10, %cst_16 {dimension_numbers = #tpu.dot_dimension_numbers<[1], [0], [0], [1], [0, 0, 1, 1], [], []>} : vector<64x128xbf16>, vector<128x128xbf16>, vector<64x128xf32> -> vector<64x128xf32>
    %12 = arith.addf %5, %11 : vector<64x128xf32>
    %c0_17 = arith.constant 0 : index
    %c0_18 = arith.constant 0 : index
    %c0_19 = arith.constant 0 : index
    %c0_20 = arith.constant 0 : index
    %c1_21 = arith.constant 1 : index
    %c0_22 = arith.constant 0 : index
    %13 = vector.load %arg1[%c0_17, %c0_18, %c0_19, %c0_20, %c1_21, %c0_22] : memref<1x2x2x9x9x128xbf16, #tpu.memory_space<vmem>>, vector<1x1x1x8x8x128xbf16>
    %14 = vector.shape_cast %13 : vector<1x1x1x8x8x128xbf16> to vector<8x8x128xbf16>
    %15 = vector.shape_cast %14 : vector<8x8x128xbf16> to vector<64x128xbf16>
    %c2 = arith.constant 2 : index
    %c0_23 = arith.constant 0 : index
    %c0_24 = arith.constant 0 : index
    %16 = vector.load %arg2[%c2, %c0_23, %c0_24] : memref<9x128x128xbf16, #tpu.memory_space<vmem>>, vector<1x128x128xbf16>
    %17 = vector.shape_cast %16 : vector<1x128x128xbf16> to vector<128x128xbf16>
    %cst_25 = arith.constant dense<0.000000e+00> : vector<64x128xf32>
    %18 = tpu.matmul %15, %17, %cst_25 {dimension_numbers = #tpu.dot_dimension_numbers<[1], [0], [0], [1], [0, 0, 1, 1], [], []>} : vector<64x128xbf16>, vector<128x128xbf16>, vector<64x128xf32> -> vector<64x128xf32>
    %19 = arith.addf %12, %18 : vector<64x128xf32>
    %c0_26 = arith.constant 0 : index
    %c1_27 = arith.constant 1 : index
    %c0_28 = arith.constant 0 : index
    %c0_29 = arith.constant 0 : index
    %c0_30 = arith.constant 0 : index
    %c0_31 = arith.constant 0 : index
    %20 = vector.load %arg1[%c0_26, %c1_27, %c0_28, %c0_29, %c0_30, %c0_31] : memref<1x2x2x9x9x128xbf16, #tpu.memory_space<vmem>>, vector<1x1x1x8x8x128xbf16>
    %21 = vector.shape_cast %20 : vector<1x1x1x8x8x128xbf16> to vector<8x8x128xbf16>
    %22 = vector.shape_cast %21 : vector<8x8x128xbf16> to vector<64x128xbf16>
    %c3 = arith.constant 3 : index
    %c0_32 = arith.constant 0 : index
    %c0_33 = arith.constant 0 : index
    %23 = vector.load %arg2[%c3, %c0_32, %c0_33] : memref<9x128x128xbf16, #tpu.memory_space<vmem>>, vector<1x128x128xbf16>
    %24 = vector.shape_cast %23 : vector<1x128x128xbf16> to vector<128x128xbf16>
    %cst_34 = arith.constant dense<0.000000e+00> : vector<64x128xf32>
    %25 = tpu.matmul %22, %24, %cst_34 {dimension_numbers = #tpu.dot_dimension_numbers<[1], [0], [0], [1], [0, 0, 1, 1], [], []>} : vector<64x128xbf16>, vector<128x128xbf16>, vector<64x128xf32> -> vector<64x128xf32>
    %26 = arith.addf %19, %25 : vector<64x128xf32>
    %c0_35 = arith.constant 0 : index
    %c1_36 = arith.constant 1 : index
    %c1_37 = arith.constant 1 : index
    %c0_38 = arith.constant 0 : index
    %c0_39 = arith.constant 0 : index
    %c0_40 = arith.constant 0 : index
    %27 = vector.load %arg1[%c0_35, %c1_36, %c1_37, %c0_38, %c0_39, %c0_40] : memref<1x2x2x9x9x128xbf16, #tpu.memory_space<vmem>>, vector<1x1x1x8x8x128xbf16>
    %28 = vector.shape_cast %27 : vector<1x1x1x8x8x128xbf16> to vector<8x8x128xbf16>
    %29 = vector.shape_cast %28 : vector<8x8x128xbf16> to vector<64x128xbf16>
    %c4 = arith.constant 4 : index
    %c0_41 = arith.constant 0 : index
    %c0_42 = arith.constant 0 : index
    %30 = vector.load %arg2[%c4, %c0_41, %c0_42] : memref<9x128x128xbf16, #tpu.memory_space<vmem>>, vector<1x128x128xbf16>
    %31 = vector.shape_cast %30 : vector<1x128x128xbf16> to vector<128x128xbf16>
    %cst_43 = arith.constant dense<0.000000e+00> : vector<64x128xf32>
    %32 = tpu.matmul %29, %31, %cst_43 {dimension_numbers = #tpu.dot_dimension_numbers<[1], [0], [0], [1], [0, 0, 1, 1], [], []>} : vector<64x128xbf16>, vector<128x128xbf16>, vector<64x128xf32> -> vector<64x128xf32>
    %33 = arith.addf %26, %32 : vector<64x128xf32>
    %c0_44 = arith.constant 0 : index
    %c1_45 = arith.constant 1 : index
    %c0_46 = arith.constant 0 : index
    %c0_47 = arith.constant 0 : index
    %c1_48 = arith.constant 1 : index
    %c0_49 = arith.constant 0 : index
    %34 = vector.load %arg1[%c0_44, %c1_45, %c0_46, %c0_47, %c1_48, %c0_49] : memref<1x2x2x9x9x128xbf16, #tpu.memory_space<vmem>>, vector<1x1x1x8x8x128xbf16>
    %35 = vector.shape_cast %34 : vector<1x1x1x8x8x128xbf16> to vector<8x8x128xbf16>
    %36 = vector.shape_cast %35 : vector<8x8x128xbf16> to vector<64x128xbf16>
    %c5 = arith.constant 5 : index
    %c0_50 = arith.constant 0 : index
    %c0_51 = arith.constant 0 : index
    %37 = vector.load %arg2[%c5, %c0_50, %c0_51] : memref<9x128x128xbf16, #tpu.memory_space<vmem>>, vector<1x128x128xbf16>
    %38 = vector.shape_cast %37 : vector<1x128x128xbf16> to vector<128x128xbf16>
    %cst_52 = arith.constant dense<0.000000e+00> : vector<64x128xf32>
    %39 = tpu.matmul %36, %38, %cst_52 {dimension_numbers = #tpu.dot_dimension_numbers<[1], [0], [0], [1], [0, 0, 1, 1], [], []>} : vector<64x128xbf16>, vector<128x128xbf16>, vector<64x128xf32> -> vector<64x128xf32>
    %40 = arith.addf %33, %39 : vector<64x128xf32>
    %c0_53 = arith.constant 0 : index
    %c0_54 = arith.constant 0 : index
    %c0_55 = arith.constant 0 : index
    %c1_56 = arith.constant 1 : index
    %c0_57 = arith.constant 0 : index
    %c0_58 = arith.constant 0 : index
    %41 = vector.load %arg1[%c0_53, %c0_54, %c0_55, %c1_56, %c0_57, %c0_58] : memref<1x2x2x9x9x128xbf16, #tpu.memory_space<vmem>>, vector<1x1x1x8x8x128xbf16>
    %42 = vector.shape_cast %41 : vector<1x1x1x8x8x128xbf16> to vector<8x8x128xbf16>
    %43 = vector.shape_cast %42 : vector<8x8x128xbf16> to vector<64x128xbf16>
    %c6 = arith.constant 6 : index
    %c0_59 = arith.constant 0 : index
    %c0_60 = arith.constant 0 : index
    %44 = vector.load %arg2[%c6, %c0_59, %c0_60] : memref<9x128x128xbf16, #tpu.memory_space<vmem>>, vector<1x128x128xbf16>
    %45 = vector.shape_cast %44 : vector<1x128x128xbf16> to vector<128x128xbf16>
    %cst_61 = arith.constant dense<0.000000e+00> : vector<64x128xf32>
    %46 = tpu.matmul %43, %45, %cst_61 {dimension_numbers = #tpu.dot_dimension_numbers<[1], [0], [0], [1], [0, 0, 1, 1], [], []>} : vector<64x128xbf16>, vector<128x128xbf16>, vector<64x128xf32> -> vector<64x128xf32>
    %47 = arith.addf %40, %46 : vector<64x128xf32>
    %c0_62 = arith.constant 0 : index
    %c0_63 = arith.constant 0 : index
    %c1_64 = arith.constant 1 : index
    %c1_65 = arith.constant 1 : index
    %c0_66 = arith.constant 0 : index
    %c0_67 = arith.constant 0 : index
    %48 = vector.load %arg1[%c0_62, %c0_63, %c1_64, %c1_65, %c0_66, %c0_67] : memref<1x2x2x9x9x128xbf16, #tpu.memory_space<vmem>>, vector<1x1x1x8x8x128xbf16>
    %49 = vector.shape_cast %48 : vector<1x1x1x8x8x128xbf16> to vector<8x8x128xbf16>
    %50 = vector.shape_cast %49 : vector<8x8x128xbf16> to vector<64x128xbf16>
    %c7 = arith.constant 7 : index
    %c0_68 = arith.constant 0 : index
    %c0_69 = arith.constant 0 : index
    %51 = vector.load %arg2[%c7, %c0_68, %c0_69] : memref<9x128x128xbf16, #tpu.memory_space<vmem>>, vector<1x128x128xbf16>
    %52 = vector.shape_cast %51 : vector<1x128x128xbf16> to vector<128x128xbf16>
    %cst_70 = arith.constant dense<0.000000e+00> : vector<64x128xf32>
    %53 = tpu.matmul %50, %52, %cst_70 {dimension_numbers = #tpu.dot_dimension_numbers<[1], [0], [0], [1], [0, 0, 1, 1], [], []>} : vector<64x128xbf16>, vector<128x128xbf16>, vector<64x128xf32> -> vector<64x128xf32>
    %54 = arith.addf %47, %53 : vector<64x128xf32>
    %c0_71 = arith.constant 0 : index
    %c0_72 = arith.constant 0 : index
    %c0_73 = arith.constant 0 : index
    %c1_74 = arith.constant 1 : index
    %c1_75 = arith.constant 1 : index
    %c0_76 = arith.constant 0 : index
    %55 = vector.load %arg1[%c0_71, %c0_72, %c0_73, %c1_74, %c1_75, %c0_76] : memref<1x2x2x9x9x128xbf16, #tpu.memory_space<vmem>>, vector<1x1x1x8x8x128xbf16>
    %56 = vector.shape_cast %55 : vector<1x1x1x8x8x128xbf16> to vector<8x8x128xbf16>
    %57 = vector.shape_cast %56 : vector<8x8x128xbf16> to vector<64x128xbf16>
    %c8 = arith.constant 8 : index
    %c0_77 = arith.constant 0 : index
    %c0_78 = arith.constant 0 : index
    %58 = vector.load %arg2[%c8, %c0_77, %c0_78] : memref<9x128x128xbf16, #tpu.memory_space<vmem>>, vector<1x128x128xbf16>
    %59 = vector.shape_cast %58 : vector<1x128x128xbf16> to vector<128x128xbf16>
    %cst_79 = arith.constant dense<0.000000e+00> : vector<64x128xf32>
    %60 = tpu.matmul %57, %59, %cst_79 {dimension_numbers = #tpu.dot_dimension_numbers<[1], [0], [0], [1], [0, 0, 1, 1], [], []>} : vector<64x128xbf16>, vector<128x128xbf16>, vector<64x128xf32> -> vector<64x128xf32>
    %61 = arith.addf %54, %60 : vector<64x128xf32>
    %c0_80 = arith.constant 0 : index
    %c0_81 = arith.constant 0 : index
    %62 = vector.load %arg4[%c0_80, %c0_81] : memref<1x128xf32, #tpu.memory_space<vmem>>, vector<1x128xf32>
    %63 = vector.broadcast %62 : vector<1x128xf32> to vector<64x128xf32>
    %64 = arith.addf %61, %63 : vector<64x128xf32>
    %cst_82 = arith.constant 0.000000e+00 : f32
    %65 = vector.broadcast %cst_82 : f32 to vector<64x128xf32>
    %66 = arith.maximumf %64, %65 : vector<64x128xf32>
    %67 = arith.truncf %66 : vector<64x128xf32> to vector<64x128xbf16>
    %68 = vector.shape_cast %67 : vector<64x128xbf16> to vector<8x8x128xbf16>
    %cst_83 = arith.constant 0.000000e+00 : bf16
    %69 = vector.broadcast %cst_83 : bf16 to vector<8x1x128xbf16>
    %cst_84 = arith.constant 0.000000e+00 : bf16
    %70 = vector.broadcast %cst_84 : bf16 to vector<8x7x128xbf16>
    %71 = tpu.concatenate %69, %68, %70 in 1 : vector<8x1x128xbf16>, vector<8x8x128xbf16>, vector<8x7x128xbf16> -> vector<8x16x128xbf16>
    %cst_85 = arith.constant 0.000000e+00 : bf16
    %72 = vector.broadcast %cst_85 : bf16 to vector<1x16x128xbf16>
    %c0_86 = arith.constant 0 : index
    %c0_87 = arith.constant 0 : index
    %c0_88 = arith.constant 0 : index
    %73 = vector.load %arg7[%c0_86, %c0_87, %c0_88] : memref<10x16x128xbf16, #tpu.memory_space<vmem>>, vector<1x16x128xbf16>
    tpu.vector_store %arg7[%c0_86, %c0_87, %c0_88], %72 {strides = array<i32>} : memref<10x16x128xbf16, #tpu.memory_space<vmem>>, vector<1x16x128xbf16>,
    %c9 = arith.constant 9 : index
    %c0_89 = arith.constant 0 : index
    %c0_90 = arith.constant 0 : index
    %74 = vector.load %arg7[%c9, %c0_89, %c0_90] : memref<10x16x128xbf16, #tpu.memory_space<vmem>>, vector<1x16x128xbf16>
    tpu.vector_store %arg7[%c9, %c0_89, %c0_90], %72 {strides = array<i32>} : memref<10x16x128xbf16, #tpu.memory_space<vmem>>, vector<1x16x128xbf16>,
    %c1_91 = arith.constant 1 : index
    %c0_92 = arith.constant 0 : index
    %c0_93 = arith.constant 0 : index
    %75 = vector.load %arg7[%c1_91, %c0_92, %c0_93] : memref<10x16x128xbf16, #tpu.memory_space<vmem>>, vector<8x16x128xbf16>
    tpu.vector_store %arg7[%c1_91, %c0_92, %c0_93], %71 {strides = array<i32>} : memref<10x16x128xbf16, #tpu.memory_space<vmem>>, vector<8x16x128xbf16>,
    %c0_94 = arith.constant 0 : index
    %c0_95 = arith.constant 0 : index
    %c0_96 = arith.constant 0 : index
    %76 = vector.load %arg7[%c0_94, %c0_95, %c0_96] : memref<10x16x128xbf16, #tpu.memory_space<vmem>>, vector<8x8x128xbf16>
    %77 = vector.shape_cast %76 : vector<8x8x128xbf16> to vector<64x128xbf16>
    %c0_97 = arith.constant 0 : index
    %c0_98 = arith.constant 0 : index
    %c0_99 = arith.constant 0 : index
    %78 = vector.load %arg3[%c0_97, %c0_98, %c0_99] : memref<9x128x128xbf16, #tpu.memory_space<vmem>>, vector<1x128x128xbf16>
    %79 = vector.shape_cast %78 : vector<1x128x128xbf16> to vector<128x128xbf16>
    %cst_100 = arith.constant dense<0.000000e+00> : vector<64x128xf32>
    %80 = tpu.matmul %77, %79, %cst_100 {dimension_numbers = #tpu.dot_dimension_numbers<[1], [0], [0], [1], [0, 0, 1, 1], [], []>} : vector<64x128xbf16>, vector<128x128xbf16>, vector<64x128xf32> -> vector<64x128xf32>
    %c0_101 = arith.constant 0 : index
    %c1_102 = arith.constant 1 : index
    %c0_103 = arith.constant 0 : index
    %81 = vector.load %arg7[%c0_101, %c1_102, %c0_103] : memref<10x16x128xbf16, #tpu.memory_space<vmem>>, vector<8x8x128xbf16>
    %82 = vector.shape_cast %81 : vector<8x8x128xbf16> to vector<64x128xbf16>
    %c1_104 = arith.constant 1 : index
    %c0_105 = arith.constant 0 : index
    %c0_106 = arith.constant 0 : index
    %83 = vector.load %arg3[%c1_104, %c0_105, %c0_106] : memref<9x128x128xbf16, #tpu.memory_space<vmem>>, vector<1x128x128xbf16>
    %84 = vector.shape_cast %83 : vector<1x128x128xbf16> to vector<128x128xbf16>
    %cst_107 = arith.constant dense<0.000000e+00> : vector<64x128xf32>
    %85 = tpu.matmul %82, %84, %cst_107 {dimension_numbers = #tpu.dot_dimension_numbers<[1], [0], [0], [1], [0, 0, 1, 1], [], []>} : vector<64x128xbf16>, vector<128x128xbf16>, vector<64x128xf32> -> vector<64x128xf32>
    %86 = arith.addf %80, %85 : vector<64x128xf32>
    %c0_108 = arith.constant 0 : index
    %c2_109 = arith.constant 2 : index
    %c0_110 = arith.constant 0 : index
    %87 = vector.load %arg7[%c0_108, %c2_109, %c0_110] : memref<10x16x128xbf16, #tpu.memory_space<vmem>>, vector<8x8x128xbf16>
    %88 = vector.shape_cast %87 : vector<8x8x128xbf16> to vector<64x128xbf16>
    %c2_111 = arith.constant 2 : index
    %c0_112 = arith.constant 0 : index
    %c0_113 = arith.constant 0 : index
    %89 = vector.load %arg3[%c2_111, %c0_112, %c0_113] : memref<9x128x128xbf16, #tpu.memory_space<vmem>>, vector<1x128x128xbf16>
    %90 = vector.shape_cast %89 : vector<1x128x128xbf16> to vector<128x128xbf16>
    %cst_114 = arith.constant dense<0.000000e+00> : vector<64x128xf32>
    %91 = tpu.matmul %88, %90, %cst_114 {dimension_numbers = #tpu.dot_dimension_numbers<[1], [0], [0], [1], [0, 0, 1, 1], [], []>} : vector<64x128xbf16>, vector<128x128xbf16>, vector<64x128xf32> -> vector<64x128xf32>
    %92 = arith.addf %86, %91 : vector<64x128xf32>
    %c1_115 = arith.constant 1 : index
    %c0_116 = arith.constant 0 : index
    %c0_117 = arith.constant 0 : index
    %93 = vector.load %arg7[%c1_115, %c0_116, %c0_117] : memref<10x16x128xbf16, #tpu.memory_space<vmem>>, vector<8x8x128xbf16>
    %94 = vector.shape_cast %93 : vector<8x8x128xbf16> to vector<64x128xbf16>
    %c3_118 = arith.constant 3 : index
    %c0_119 = arith.constant 0 : index
    %c0_120 = arith.constant 0 : index
    %95 = vector.load %arg3[%c3_118, %c0_119, %c0_120] : memref<9x128x128xbf16, #tpu.memory_space<vmem>>, vector<1x128x128xbf16>
    %96 = vector.shape_cast %95 : vector<1x128x128xbf16> to vector<128x128xbf16>
    %cst_121 = arith.constant dense<0.000000e+00> : vector<64x128xf32>
    %97 = tpu.matmul %94, %96, %cst_121 {dimension_numbers = #tpu.dot_dimension_numbers<[1], [0], [0], [1], [0, 0, 1, 1], [], []>} : vector<64x128xbf16>, vector<128x128xbf16>, vector<64x128xf32> -> vector<64x128xf32>
    %98 = arith.addf %92, %97 : vector<64x128xf32>
    %c1_122 = arith.constant 1 : index
    %c1_123 = arith.constant 1 : index
    %c0_124 = arith.constant 0 : index
    %99 = vector.load %arg7[%c1_122, %c1_123, %c0_124] : memref<10x16x128xbf16, #tpu.memory_space<vmem>>, vector<8x8x128xbf16>
    %100 = vector.shape_cast %99 : vector<8x8x128xbf16> to vector<64x128xbf16>
    %c4_125 = arith.constant 4 : index
    %c0_126 = arith.constant 0 : index
    %c0_127 = arith.constant 0 : index
    %101 = vector.load %arg3[%c4_125, %c0_126, %c0_127] : memref<9x128x128xbf16, #tpu.memory_space<vmem>>, vector<1x128x128xbf16>
    %102 = vector.shape_cast %101 : vector<1x128x128xbf16> to vector<128x128xbf16>
    %cst_128 = arith.constant dense<0.000000e+00> : vector<64x128xf32>
    %103 = tpu.matmul %100, %102, %cst_128 {dimension_numbers = #tpu.dot_dimension_numbers<[1], [0], [0], [1], [0, 0, 1, 1], [], []>} : vector<64x128xbf16>, vector<128x128xbf16>, vector<64x128xf32> -> vector<64x128xf32>
    %104 = arith.addf %98, %103 : vector<64x128xf32>
    %c1_129 = arith.constant 1 : index
    %c2_130 = arith.constant 2 : index
    %c0_131 = arith.constant 0 : index
    %105 = vector.load %arg7[%c1_129, %c2_130, %c0_131] : memref<10x16x128xbf16, #tpu.memory_space<vmem>>, vector<8x8x128xbf16>
    %106 = vector.shape_cast %105 : vector<8x8x128xbf16> to vector<64x128xbf16>
    %c5_132 = arith.constant 5 : index
    %c0_133 = arith.constant 0 : index
    %c0_134 = arith.constant 0 : index
    %107 = vector.load %arg3[%c5_132, %c0_133, %c0_134] : memref<9x128x128xbf16, #tpu.memory_space<vmem>>, vector<1x128x128xbf16>
    %108 = vector.shape_cast %107 : vector<1x128x128xbf16> to vector<128x128xbf16>
    %cst_135 = arith.constant dense<0.000000e+00> : vector<64x128xf32>
    %109 = tpu.matmul %106, %108, %cst_135 {dimension_numbers = #tpu.dot_dimension_numbers<[1], [0], [0], [1], [0, 0, 1, 1], [], []>} : vector<64x128xbf16>, vector<128x128xbf16>, vector<64x128xf32> -> vector<64x128xf32>
    %110 = arith.addf %104, %109 : vector<64x128xf32>
    %c2_136 = arith.constant 2 : index
    %c0_137 = arith.constant 0 : index
    %c0_138 = arith.constant 0 : index
    %111 = vector.load %arg7[%c2_136, %c0_137, %c0_138] : memref<10x16x128xbf16, #tpu.memory_space<vmem>>, vector<8x8x128xbf16>
    %112 = vector.shape_cast %111 : vector<8x8x128xbf16> to vector<64x128xbf16>
    %c6_139 = arith.constant 6 : index
    %c0_140 = arith.constant 0 : index
    %c0_141 = arith.constant 0 : index
    %113 = vector.load %arg3[%c6_139, %c0_140, %c0_141] : memref<9x128x128xbf16, #tpu.memory_space<vmem>>, vector<1x128x128xbf16>
    %114 = vector.shape_cast %113 : vector<1x128x128xbf16> to vector<128x128xbf16>
    %cst_142 = arith.constant dense<0.000000e+00> : vector<64x128xf32>
    %115 = tpu.matmul %112, %114, %cst_142 {dimension_numbers = #tpu.dot_dimension_numbers<[1], [0], [0], [1], [0, 0, 1, 1], [], []>} : vector<64x128xbf16>, vector<128x128xbf16>, vector<64x128xf32> -> vector<64x128xf32>
    %116 = arith.addf %110, %115 : vector<64x128xf32>
    %c2_143 = arith.constant 2 : index
    %c1_144 = arith.constant 1 : index
    %c0_145 = arith.constant 0 : index
    %117 = vector.load %arg7[%c2_143, %c1_144, %c0_145] : memref<10x16x128xbf16, #tpu.memory_space<vmem>>, vector<8x8x128xbf16>
    %118 = vector.shape_cast %117 : vector<8x8x128xbf16> to vector<64x128xbf16>
    %c7_146 = arith.constant 7 : index
    %c0_147 = arith.constant 0 : index
    %c0_148 = arith.constant 0 : index
    %119 = vector.load %arg3[%c7_146, %c0_147, %c0_148] : memref<9x128x128xbf16, #tpu.memory_space<vmem>>, vector<1x128x128xbf16>
    %120 = vector.shape_cast %119 : vector<1x128x128xbf16> to vector<128x128xbf16>
    %cst_149 = arith.constant dense<0.000000e+00> : vector<64x128xf32>
    %121 = tpu.matmul %118, %120, %cst_149 {dimension_numbers = #tpu.dot_dimension_numbers<[1], [0], [0], [1], [0, 0, 1, 1], [], []>} : vector<64x128xbf16>, vector<128x128xbf16>, vector<64x128xf32> -> vector<64x128xf32>
    %122 = arith.addf %116, %121 : vector<64x128xf32>
    %c2_150 = arith.constant 2 : index
    %c2_151 = arith.constant 2 : index
    %c0_152 = arith.constant 0 : index
    %123 = vector.load %arg7[%c2_150, %c2_151, %c0_152] : memref<10x16x128xbf16, #tpu.memory_space<vmem>>, vector<8x8x128xbf16>
    %124 = vector.shape_cast %123 : vector<8x8x128xbf16> to vector<64x128xbf16>
    %c8_153 = arith.constant 8 : index
    %c0_154 = arith.constant 0 : index
    %c0_155 = arith.constant 0 : index
    %125 = vector.load %arg3[%c8_153, %c0_154, %c0_155] : memref<9x128x128xbf16, #tpu.memory_space<vmem>>, vector<1x128x128xbf16>
    %126 = vector.shape_cast %125 : vector<1x128x128xbf16> to vector<128x128xbf16>
    %cst_156 = arith.constant dense<0.000000e+00> : vector<64x128xf32>
    %127 = tpu.matmul %124, %126, %cst_156 {dimension_numbers = #tpu.dot_dimension_numbers<[1], [0], [0], [1], [0, 0, 1, 1], [], []>} : vector<64x128xbf16>, vector<128x128xbf16>, vector<64x128xf32> -> vector<64x128xf32>
    %128 = arith.addf %122, %127 : vector<64x128xf32>
    %c0_157 = arith.constant 0 : index
    %c1_158 = arith.constant 1 : index
    %c1_159 = arith.constant 1 : index
    %c0_160 = arith.constant 0 : index
    %c0_161 = arith.constant 0 : index
    %c0_162 = arith.constant 0 : index
    %129 = vector.load %arg1[%c0_157, %c1_158, %c1_159, %c0_160, %c0_161, %c0_162] : memref<1x2x2x9x9x128xbf16, #tpu.memory_space<vmem>>, vector<1x1x1x8x8x128xbf16>
    %130 = vector.shape_cast %129 : vector<1x1x1x8x8x128xbf16> to vector<8x8x128xbf16>
    %131 = vector.shape_cast %130 : vector<8x8x128xbf16> to vector<64x128xbf16>
    %c0_163 = arith.constant 0 : index
    %c0_164 = arith.constant 0 : index
    %132 = vector.load %arg5[%c0_163, %c0_164] : memref<128x128xbf16, #tpu.memory_space<vmem>>, vector<128x128xbf16>
    %cst_165 = arith.constant dense<0.000000e+00> : vector<64x128xf32>
    %133 = tpu.matmul %131, %132, %cst_165 {dimension_numbers = #tpu.dot_dimension_numbers<[1], [0], [0], [1], [0, 0, 1, 1], [], []>} : vector<64x128xbf16>, vector<128x128xbf16>, vector<64x128xf32> -> vector<64x128xf32>
    %134 = arith.addf %128, %133 : vector<64x128xf32>
    %cst_166 = arith.constant 0.000000e+00 : f32
    %135 = vector.broadcast %cst_166 : f32 to vector<64x128xf32>
    %136 = arith.maximumf %134, %135 : vector<64x128xf32>
    %137 = arith.truncf %136 : vector<64x128xf32> to vector<64x128xbf16>
    %c0_167 = arith.constant 0 : index
    %c0_168 = arith.constant 0 : index
    %c0_169 = arith.constant 0 : index
    %138 = vector.load %arg6[%c0_167, %c0_168, %c0_169] : memref<1x64x128xbf16, #tpu.memory_space<vmem>>, vector<1x64x128xbf16>
    %139 = vector.shape_cast %138 : vector<1x64x128xbf16> to vector<64x128xbf16>
    %140 = vector.shape_cast %137 : vector<64x128xbf16> to vector<1x64x128xbf16>
    tpu.vector_store %arg6[%c0_167, %c0_168, %c0_169], %140 {strides = array<i32>} : memref<1x64x128xbf16, #tpu.memory_space<vmem>>, vector<1x64x128xbf16>,
    return
  }
  func.func @transform_0(%arg0: i32) -> (i32, i32, i32, i32, i32, i32) {
    %c0_i32 = arith.constant 0 : i32
    %c0_i32_0 = arith.constant 0 : i32
    %c0_i32_1 = arith.constant 0 : i32
    %c0_i32_2 = arith.constant 0 : i32
    %c0_i32_3 = arith.constant 0 : i32
    %c0_i32_4 = arith.constant 0 : i32
    return %arg0, %c0_i32, %c0_i32_0, %c0_i32_1, %c0_i32_2, %c0_i32_3 : i32, i32, i32, i32, i32, i32
  }
  func.func @transform_1(%arg0: i32) -> (i32, i32, i32) {
    %c0_i32 = arith.constant 0 : i32
    %c0_i32_0 = arith.constant 0 : i32
    %c0_i32_1 = arith.constant 0 : i32
    %c0_i32_2 = arith.constant 0 : i32
    return %c0_i32, %c0_i32_0, %c0_i32_1 : i32, i32, i32
  }
  func.func @transform_2(%arg0: i32) -> (i32, i32, i32) {
    %c0_i32 = arith.constant 0 : i32
    %c0_i32_0 = arith.constant 0 : i32
    %c0_i32_1 = arith.constant 0 : i32
    %c0_i32_2 = arith.constant 0 : i32
    return %c0_i32, %c0_i32_0, %c0_i32_1 : i32, i32, i32
  }
  func.func @transform_3(%arg0: i32) -> (i32, i32) {
    %c0_i32 = arith.constant 0 : i32
    %c0_i32_0 = arith.constant 0 : i32
    %c0_i32_1 = arith.constant 0 : i32
    return %c0_i32, %c0_i32_0 : i32, i32
  }
  func.func @transform_4(%arg0: i32) -> (i32, i32) {
    %c0_i32 = arith.constant 0 : i32
    %c0_i32_0 = arith.constant 0 : i32
    %c0_i32_1 = arith.constant 0 : i32
    return %c0_i32, %c0_i32_0 : i32, i32
  }
  func.func @transform_5(%arg0: i32) -> (i32, i32, i32) {
    %c0_i32 = arith.constant 0 : i32
    %c0_i32_0 = arith.constant 0 : i32
    %c0_i32_1 = arith.constant 0 : i32
    return %arg0, %c0_i32, %c0_i32_0 : i32, i32, i32
  }
}

</mosaic_0001>

<bundles_post_ra>
// kernel: tpu_custom_call.1
= control target key start
LH: loop header
LB: loop body
LE: loop exit
PB: predicated region body
PF: predicated region fallthrough
CT: control target
= control target key end

     0   :  { %10 = vsyncpa [#allocation4], 0  ;;  %s7221_s0 = inlined_call_operand.vmem [shape: bf16[2,2,2,9,9,128], index: 0, kind: input, shape index: {}]   ;;  %s7222_s1 = inlined_call_operand.vmem [shape: bf16[9,128,128], index: 1, kind: input, shape index: {}]   ;;  %s7223_s2 = inlined_call_operand.hbm [shape: bf16[9,128,128], index: 2, kind: input, shape index: {}]   ;;  %s7224_s3 = inlined_call_operand.vmem [shape: f32[1,128], index: 3, kind: input, shape index: {}]   ;;  %s7225_s4 = inlined_call_operand.vmem [shape: bf16[128,128], index: 4, kind: input, shape index: {}]   ;;  %s7226_s5 = inlined_call_operand.hbm [shape: bf16[2,64,128], index: 5, kind: output, shape index: {}]  }
   0x1   :  { %11 = vsyncpa [#allocation5], 0 }
   0x2   :  { %13 = vsyncpa [#allocation5 + $0x1], 0  ;;  %s6200_s18 = smov 0   ;;  %s6202_s19 = smov 0  }
   0x3   :  { %s6204_s20 = smov 0   ;;  %s6206_s21 = smov 0  }
   0x4 LB: > { %s6221_s22 = sadd.s32 4294967295, %s6161_s21   ;;  %s4577_s23 = sadd.s32 4294967294, %s6161_s21   ;;  %s6161_s21 = sphi %s6206_s21, %s7262_s21   ;;  %s6157_s20 = sphi %s6204_s20, %s7261_s20   ;;  %s6153_s19 = sphi %s6202_s19, %s7260_s19   ;;  %s6149_s18 = sphi %s6200_s18, %s7259_s18  }
   0x5   : > { %s6225_s24 = sadd.s32 1, %s6161_s21   ;;  %s136_s25 = sadd.s32 1, %s6157_s20 }
   0x6   : > { %s133_s26 = ssub.s32 %s6161_s21, %s6225_s24  ;;  %p146_p0 = scmp.ne.s32.totalorder %s6157_s20, %s6153_s19 }
   0x7   : > { %p134_p1 = scmp.eq.s32.totalorder %s133_s26, 0  ;;  %p147_p2 = scmp.eq.s32.totalorder %s6221_s22, 1 }
   0x8   : > { %p152_p3 = scmp.ne.s32.totalorder %s6153_s19, %s6149_s18  ;;  %p153_p4 = scmp.eq.s32.totalorder %s4577_s23, 1 }
   0x9   : > { %s6236_s27 = scalar_select %p134_p1, %s6157_s20, %s136_s25  }
   0xa   : > { %p6238_p5 = por %p147_p2, %p146_p0  ;;  %p6242_p6 = por %p153_p4, %p152_p3 }
   0xb   : > { %p4578_p7 = scmp.ge.s32.totalorder %s6161_s21, 1  ;;  %p160_p8 = scmp.lt.s32.totalorder %s6161_s21, 3 }
   0xc   : > { %s7232_s29 = scalar_select %p6242_p6, 1, 0 }
   0xd   : > { %p5838_p9 = scmp.eq.s32.totalorder %s6221_s22, 0  ;;  %p6249_p10 = pnand %p4578_p7, %p160_p8 }
   0xe   : > { %s6163_s6 = smov [#allocation3]  }
   0xf   : > { %s175_s7 = sshll.u32 %s6163_s6, 4  ;;  %p5830_p11 = pneg %p6249_p10  ;;  %s176_s7 = int_to_ptr.vmem [resolvable:$true] %s175_s7 }
  0x10   : > { %s6082_s8 = scalar_lea.vmem %s176_s7, 9216  ;;  %p6090_p3 = scmp.lt.s32.totalorder %s176_s7, %s176_s7 }
  0x11   : > { %p5831_p12 = pnand %p5838_p9, %p5830_p11  ;;  %p6083_p0 = scmp.ne.s32.totalorder %s176_s7, %s6082_s8 }
  0x12   : > { %p6091_p4 = scmp.lt.s32.totalorder %s6082_s8, %s6082_s8 }
  0x13   : > { %p6073_p13 = pneg %p5831_p12 }
  0x14   : > { %p6092_p6 = por %p6091_p4, %p6090_p3 }
  0x15   : > { %p6085_p1 = pnand %p6083_p0, %p6073_p13 }
  0x17   : > { %p6086_p2 = pneg %p6085_p1 }
  0x19   : > { %p6093_p7 = pnand %p6092_p6, %p6086_p2 }
  0x1b   : > { %6096 = shalt.err (!%p6093_p7)
}
  0x1c   : > { %s6164_s9 = smov 64   ;;  %s6165_s10 = smov 4  }
  0x1d   : > { %5833 = dma.hbm_to_vmem [thread:$0]  (!%p5831_p12), %s7223_s2, 9216, %s176_s7, [#allocation4], %s6164_s9, %s6164_s9, %s6165_s10  }
  0x1e   : > { %205 = sbr.rel (%p6249_p10) target bundleno = 817 (0x331), region = 40 }
  0x23   : > { %6140 = dma.done.wait (%p5838_p9), [#allocation4], 9216  }
  0x24   : > { %6142 = vsyncadd (%p5838_p9), [#allocation4], 4294958080  ;;  %v5879_v0 = vld [vmem:[%s7222_s1 + $0x78] sm:$0xff]   ;;  %p233_p6 = scmp.lt.s32.totalorder %s6221_s22, 1  ;;  %v5881_v2 = vld [vmem:[%s7222_s1 + $0x70] sm:$0xff]   ;;  %v7234_v59 = vmov 0 }
  0x25   : > { %v5880_v1 = vld [vmem:[%s7222_s1 + $0x38] sm:$0xff]   ;;  %5351 = vmatprep.subr.bf16.mxu0 %v5879_v0  ;;  %v5882_v3 = vld [vmem:[%s7222_s1 + $0x30] sm:$0xff]   ;;  %v5883_v4 = vld [vmem:[%s7222_s1 + $0x68] sm:$0xff]   ;;  %vm579_vm0 = vsmask.f32 3328  ;;  %vm2207_vm3 = vcmask 1040384  }
  0x26   : > { %5375 = vmatprep.subr.bf16.mxu1 %v5880_v1  ;;  %5352 = vmatpush3.bf16.msra.mxu0 %v5879_v0  ;;  %v5884_v5 = vld [vmem:[%s7222_s1 + $0x28] sm:$0xff]   ;;  %s234_s9 = scalar_select %p233_p6, %s6221_s22, 1  ;;  %v5885_v6 = vld [vmem:[%s7222_s1 + $0x60] sm:$0xff]   ;;  %v5887_v8 = vld [vmem:[%s7222_s1 + $0x58] sm:$0xff]   ;;  %vm580_vm1 = vsmask.f32 7440 }
  0x27   : > { %5376 = vmatpush3.bf16.msra.mxu1 %v5880_v1  ;;  %5353 = vmatprep.subr.bf16.mxu0 %v5881_v2  ;;  %v5886_v7 = vld [vmem:[%s7222_s1 + $0x20] sm:$0xff]   ;;  %v5888_v9 = vld [vmem:[%s7222_s1 + $0x18] sm:$0xff]   ;;  %v5889_v10 = vld [vmem:[%s7222_s1 + $0x50] sm:$0xff]   ;;  %vm2208_vm4 = vsmask.f32 256  ;;  %vm2218_vm5 = vcmask 1044480  }
  0x28   : > { %5377 = vmatprep.subr.bf16.mxu1 %v5882_v3  ;;  %s5823_s14 = smul.u32 288, %s234_s9  ;;  %v5890_v11 = vld [vmem:[%s7222_s1 + $0x10] sm:$0xff]   ;;  %v5891_v14 = vld [vmem:[%s7222_s1 + $0x48] sm:$0xff]   ;;  %v5893_v16 = vld [vmem:[%s7222_s1 + $0x40] sm:$0xff]   ;;  %vm2219_vm6 = vsmask.f32 4352 }
  0x29   : > { %v5892_v15 = vld [vmem:[%s7222_s1 + $0x8] sm:$0xff]   ;;  %v5894_v17 = vld [vmem:[%s7222_s1] sm:$0xff]   ;;  %v5899_v19 = vld [vmem:[%s7222_s1 + $0xb8] sm:$0xff]   ;;  %vm2758_vm9 = vcmask 1042432   ;;  %vm2759_vm10 = vcmask 1046532   ;;  %s5099_s16 = sshll.u32 %s6221_s22, 9 }
  0x2a   : > { %5354 = vmatpush3.bf16.msra.mxu0 %v5881_v2  ;;  %s6301_s30 = scalar_lea.vmem %s7221_s0, %s5823_s14  ;;  %v5900_v20 = vld [vmem:[%s7222_s1 + $0xf8] sm:$0xff]   ;;  %v5901_v22 = vld [vmem:[%s7222_s1 + $0xb0] sm:$0xff]   ;;  %v5903_v26 = vld [vmem:[%s7222_s1 + $0xa8] sm:$0xff]   ;;  %s7176_s25 = scalar_lea.hbm %s7226_s5, %s5099_s16 }
  0x2b   : > { %5378 = vmatpush3.bf16.msra.mxu1 %v5882_v3  ;;  %5355 = vmatprep.subr.bf16.mxu0 %v5883_v4  ;;  %v5895_v12 = vld [vmem:[%s6301_s30 + $0x48] ss:$8 sps:$4 sm:$0xff]   ;;  %v5897_v18 = vld [vmem:[%s6301_s30 + $0x58] ss:$8 sps:$4 sm:$0xff]   ;;  %v564_v33 = vld [vmem:[%s6301_s30 + $0x4] sm:$0x1] }
  0x2c   : > { %5379 = vmatprep.subr.bf16.mxu1 %v5884_v5  ;;  %v5896_v13 = vld [vmem:[%s6301_s30] ss:$8 sps:$4 sm:$0xff]   ;;  %5367 = vmatprep.mubr.bf16.mxu0 %v5895_v12  ;;  %v5898_v21 = vld [vmem:[%s6301_s30 + $0x10] ss:$8 sps:$4 sm:$0xff]   ;;  %v566_v35 = vld [vmem:[%s6301_s30 + $0xc] sm:$0x1] }
  0x2d   : > { %5391 = vmatprep.mubr.bf16.mxu1 %v5896_v13  ;;  %v5902_v23 = vld [vmem:[%s7222_s1 + $0xf0] sm:$0xff]   ;;  %v5909_v25 = vld [vmem:[%s6301_s30 + $0x20] ss:$8 sps:$4 sm:$0xff]   ;;  %v592_v38 = vshll.u32 %v564_v33, 16  ;;  %v606_v41 = vshll.u32 %v566_v35, 16  ;;  %v5907_v44 = vld [vmem:[%s7222_s1 + $0x98] sm:$0xff]  }
  0x2e   : > { %5356 = vmatpush3.bf16.msra.mxu0 %v5883_v4  ;;  %v5908_v24 = vld [vmem:[%s6301_s30 + $0x68] ss:$8 sps:$4 sm:$0xff]   ;;  %v5905_v28 = vld [vmem:[%s7222_s1 + $0xa0] sm:$0xff]   ;;  %v568_v43 = vld [vmem:[%s6301_s30 + $0x14] sm:$0x1]  ;;  %s6167_s6 = smov [#allocation6]  }
  0x2f   : > { %5380 = vmatpush3.bf16.msra.mxu1 %v5884_v5  ;;  %5357 = vmatprep.subr.bf16.mxu0 %v5885_v6  ;;  %v5904_v27 = vld [vmem:[%s7222_s1 + $0xe8] sm:$0xff]   ;;  %v5911_v29 = vld [vmem:[%s6301_s30 + $0x78] ss:$8 sps:$4 sm:$0xff]   ;;  %v567_v42 = vld [vmem:[%s6301_s30 + $0x10] sm:$0xf]  ;;  %v594_v49 = vrot.slane %v592_v38, 5 }
  0x30   : > { %5381 = vmatprep.subr.bf16.mxu1 %v5886_v7  ;;  %v5906_v30 = vld [vmem:[%s7222_s1 + $0xe0] sm:$0xff]   ;;  %v5912_v31 = vld [vmem:[%s6301_s30 + $0x30] ss:$8 sps:$4 sm:$0xff]   ;;  %v565_v34 = vld [vmem:[%s6301_s30 + $0x8] sm:$0xf]  ;;  %v611_v52 = vshrl.u32 %v567_v42, 16 }
  0x31   : > { %v563_v32 = vld [vmem:[%s6301_s30] sm:$0xf]  ;;  %v597_v39 = vshrl.u32 %v565_v34, 16  ;;  %v600_v40 = vshll.u32 %v565_v34, 16  ;;  %v569_v48 = vld [vmem:[%s6301_s30 + $0x18] sm:$0xf]  ;;  %vm6369_vm2 = vmor %vm579_vm0, %vm580_vm1 }
  0x32   : > { %5358 = vmatpush3.bf16.msra.mxu0 %v5885_v6  ;;  %v583_v36 = vshrl.u32 %v563_v32, 16  ;;  %v586_v37 = vshll.u32 %v563_v32, 16  ;;  %v570_v51 = vld [vmem:[%s6301_s30 + $0x1c] sm:$0x1]  ;;  %v614_v53 = vshll.u32 %v567_v42, 16  ;;  %v608_v56 = vrot.slane %v606_v41, 5  ;;  %vm6714_vm7 = vmand %vm2207_vm3, %vm2208_vm4 }
  0x33   : > { %5382 = vmatpush3.bf16.msra.mxu1 %v5886_v7  ;;  %5359 = vmatprep.subr.bf16.mxu0 %v5887_v8  ;;  %v599_v47 = vrot.slane %v597_v39, 4  ;;  %v602_v50 = vrot.slane %v600_v40, 5  ;;  %v5910_v54 = vld [vmem:[%s7222_s1 + $0xd8] sm:$0xff]   ;;  %v625_v57 = vshrl.u32 %v569_v48, 16  ;;  %v628_v58 = vshll.u32 %v569_v48, 16  ;;  %v5913_v4 = vld [vmem:[%s7222_s1 + $0x90] sm:$0xff]   ;;  %vm6721_vm8 = vmand %vm2218_vm5, %vm2219_vm6 }
  0x34   : > { %5383 = vmatprep.subr.bf16.mxu1 %v5888_v9  ;;  %v585_v45 = vrot.slane %v583_v36, 4  ;;  %v588_v46 = vrot.slane %v586_v37, 5  ;;  %v7235_v59 = vsel %vm6369_vm2, 4294967295, %v7234_v59  ;;  %v613_v61 = vrot.slane %v611_v52, 4  ;;  %v5920_v7 = vld [vmem:[%s6301_s30 + $0x90] ss:$8 sps:$4 sm:$0xff]   ;;  %vm6832_vm11 = vmor %vm2758_vm9, %vm2759_vm10 }
  0x35   : > { %7236 = vst [vmem:[#allocation9_spill] sm:$0xff] %v7235_v59  ;;  %v603_v60 = vor.u32 %v602_v50, %v599_v47  ;;  %v616_v62 = vrot.slane %v614_v53, 5  ;;  %v620_v63 = vshll.u32 %v568_v43, 16  ;;  %v627_v1 = vrot.slane %v625_v57, 4  ;;  %v576_v33 = vld [vmem:[%s6301_s30 + $0x34] sm:$0x1] }
  0x36   : > { %5360 = vmatpush3.bf16.msra.mxu0 %v5887_v8  ;;  %v589_v55 = vor.u32 %v588_v46, %v585_v45  ;;  %v630_v2 = vrot.slane %v628_v58, 5  ;;  %v634_v3 = vshll.u32 %v570_v51, 16  ;;  %v5914_v8 = vld [vmem:[%s7222_s1 + $0xd0] sm:$0xff]   ;;  %v577_v38 = vld [vmem:[%s6301_s30 + $0x38] sm:$0xf]  ;;  %v676_v47 = vshll.u32 %v576_v33, 16 }
  0x37   : > { %5384 = vmatpush3.bf16.msra.mxu1 %v5888_v9  ;;  %5361 = vmatprep.subr.bf16.mxu0 %v5889_v10  ;;  %v604_v5 = vrot.slane %v603_v60, 4  ;;  %v617_v6 = vor.u32 %v616_v62, %v613_v61  ;;  %v578_v43 = vld [vmem:[%s6301_s30 + $0x3c] sm:$0x1]  ;;  %v681_v48 = vshrl.u32 %v577_v38, 16  ;;  %v684_v51 = vshll.u32 %v577_v38, 16  ;;  %s6101_s7 = sshll.u32 %s6167_s6, 4  ;;  %s6102_s7 = int_to_ptr.vmem [resolvable:$false] %s6101_s7 }
  0x38   : > { %5385 = vmatprep.subr.bf16.mxu1 %v5890_v11  ;;  %v590_v0 = vrot.slane %v589_v55, 4  ;;  %v690_v52 = vshll.u32 %v578_v43, 16  ;;  %v5919_v53 = vld [vmem:[%s7222_s1 + $0x138] sm:$0xff]   ;;  %v5921_v57 = vld [vmem:[%s6301_s30 + $0xa0] ss:$8 sps:$4 sm:$0xff]   ;;  %s6103_s8 = scalar_lea.vmem %s6102_s7, 1024 }
  0x39   : > { %v609_v12 = vsel %vm6369_vm2, %v604_v5, %v608_v56  ;;  %v6387_v13 = vrot.slane %v617_v6, 4  ;;  %v683_v56 = vrot.slane %v681_v48, 4  ;;  %v5922_v58 = vld [vmem:[%s7222_s1 + $0x178] sm:$0xff]   ;;  %v686_v61 = vrot.slane %v684_v51, 5  ;;  %v4738_v33 = vld [vmem:[%s6301_s30 + $0xa4] sm:$0x1] }
  0x3a   : > { %5362 = vmatpush3.bf16.msra.mxu0 %v5889_v10  ;;  %v595_v9 = vsel %vm6369_vm2, %v590_v0, %v594_v49  ;;  %v631_v10 = vor.u32 %v630_v2, %v627_v1  ;;  %v678_v1 = vrot.slane %v676_v47, 5  ;;  %v692_v5 = vrot.slane %v690_v52, 5  ;;  %v5926_v6 = vld [vmem:[%s6301_s30 + $0xb0] ss:$8 sps:$4 sm:$0xff]   ;;  %v4739_v38 = vld [vmem:[%s6301_s30 + $0xa8] sm:$0xf] }
  0x3b   : > { %5386 = vmatpush3.bf16.msra.mxu1 %v5890_v11  ;;  %5363 = vmatprep.subr.bf16.mxu0 %v5891_v14  ;;  %v5915_v11 = vld [vmem:[%s7222_s1 + $0x88] sm:$0xff]   ;;  %v1249_v47 = vshrl.u32 %v4739_v38, 16  ;;  %v1252_v48 = vshll.u32 %v4739_v38, 16 }
  0x3c   : > { %5387 = vmatprep.subr.bf16.mxu1 %v5892_v15 }
  0x3e   : > { %5364 = vmatpush3.bf16.msra.mxu0 %v5891_v14  ;;  %v622_v14 = vrot.slane %v620_v63, 5  ;;  %v5923_v63 = vld [vmem:[%s7222_s1 + $0x130] sm:$0xff]  }
  0x3f   : > { %5388 = vmatpush3.bf16.msra.mxu1 %v5892_v15  ;;  %5365 = vmatprep.subr.bf16.mxu0 %v5893_v16  ;;  %v5916_v15 = vld [vmem:[%s7222_s1 + $0xc8] sm:$0xff]  }
  0x40   : > { %5389 = vmatprep.subr.bf16.mxu1 %v5894_v17 }
  0x42   : > { %5366 = vmatpush3.bf16.msra.mxu0 %v5893_v16  ;;  %v4649_v16 = vcombine.low %v595_v9, %v609_v12  ;;  %v5925_v12 = vld [vmem:[%s7222_s1 + $0x128] sm:$0xff]  }
  0x43   : > { %5390 = vmatpush3.bf16.msra.mxu1 %v5894_v17  ;;  %5399 = vmatprep.subr.bf16.mxu0 %v5899_v19  ;;  %v632_v17 = vrot.slane %v631_v10, 4 }
  0x44   : > { %5423 = vmatprep.subr.bf16.mxu1 %v5900_v20 }
  0x45   : > { %5368 = vmatmul.mubr.bf16.vlgmr.msra.gmra.mxu0 %v5897_v18  ;;  %v636_v18 = vrot.slane %v634_v3, 5 }
  0x46   : > { %5392 = vmatmul.mubr.bf16.vlgmr.msra.gmra.mxu1 %v5898_v21  ;;  %5400 = vmatpush3.bf16.msra.mxu0 %v5899_v19  ;;  %v571_v19 = vld [vmem:[%s6301_s30 + $0x20] sm:$0xf]  ;;  %v573_v21 = vld [vmem:[%s6301_s30 + $0x28] sm:$0xf] }
  0x47   : > { %5424 = vmatpush3.bf16.msra.mxu1 %v5900_v20  ;;  %5401 = vmatprep.subr.bf16.mxu0 %v5901_v22  ;;  %v572_v20 = vld [vmem:[%s6301_s30 + $0x24] sm:$0x1]  ;;  %v637_v49 = vsel %vm6369_vm2, %v632_v17, %v636_v18  ;;  %v5939_v18 = vld [vmem:[%s6301_s30 + $0xd8] ss:$8 sps:$4 sm:$0xff]  }
  0x48   : > { %5425 = vmatprep.subr.bf16.mxu1 %v5902_v23  ;;  %5371 = vmatprep.mubr.bf16.mxu0 %v5908_v24  ;;  %v623_v24 = vsel %vm6369_vm2, %v6387_v13, %v622_v14  ;;  %v5928_v13 = vld [vmem:[%s7222_s1 + $0x168] sm:$0xff]   ;;  %v5930_v17 = vld [vmem:[%s7222_s1 + $0x160] sm:$0xff]  }
  0x49   : > { %5395 = vmatprep.mubr.bf16.mxu1 %v5909_v25  ;;  %v639_v25 = vshrl.u32 %v571_v19, 16  ;;  %v4650_v62 = vcombine.low %v623_v24, %v637_v49  ;;  %v4736_v24 = vld [vmem:[%s6301_s30 + $0x9c] sm:$0x1] }
  0x4a   : > { %5402 = vmatpush3.bf16.msra.mxu0 %v5901_v22  ;;  %v574_v22 = vld [vmem:[%s6301_s30 + $0x2c] sm:$0x1] }
  0x4b   : > { %5426 = vmatpush3.bf16.msra.mxu1 %v5902_v23  ;;  %5403 = vmatprep.subr.bf16.mxu0 %v5903_v26  ;;  %v5917_v23 = vld [vmem:[%s7222_s1 + $0x80] sm:$0xff]   ;;  %v662_v32 = vshll.u32 %v574_v22, 16  ;;  %v641_v35 = vrot.slane %v639_v25, 4  ;;  %v4734_v22 = vld [vmem:[%s6301_s30 + $0x94] sm:$0x1] }
  0x4c   : > { %5427 = vmatprep.subr.bf16.mxu1 %v5904_v27 }
  0x4d   : > { %5372 = vmatmul.mubr.bf16.gmra.mxu0 %v5911_v29  ;;  %v5918_v29 = vld [vmem:[%s7222_s1 + $0xc0] sm:$0xff]   ;;  %v664_v42 = vrot.slane %v662_v32, 5 }
  0x4e   : > { %5404 = vmatpush3.bf16.msra.mxu0 %v5903_v26  ;;  %5396 = vmatmul.mubr.bf16.gmra.mxu1 %v5912_v31  ;;  %v642_v26 = vshll.u32 %v571_v19, 16  ;;  %v656_v31 = vshll.u32 %v573_v21, 16  ;;  %v5931_v19 = vld [vmem:[%s7222_s1 + $0x118] sm:$0xff]   ;;  %v4737_v32 = vld [vmem:[%s6301_s30 + $0xa0] sm:$0xf] }
  0x4f   : > { %5428 = vmatpush3.bf16.msra.mxu1 %v5904_v27  ;;  %5405 = vmatprep.subr.bf16.mxu0 %v5905_v28  ;;  %v648_v27 = vshll.u32 %v572_v20, 16  ;;  %v5932_v20 = vld [vmem:[%s7222_s1 + $0x158] sm:$0xff]   ;;  %v1238_v43 = vshll.u32 %v4737_v32, 16 }
  0x50   : > { %5429 = vmatprep.subr.bf16.mxu1 %v5906_v30  ;;  %5439 = vmatprep.mubr.bf16.mxu1 %v5920_v7  ;;  %v644_v36 = vrot.slane %v642_v26, 5  ;;  %v658_v41 = vrot.slane %v656_v31, 5  ;;  %v5924_v7 = vld [vmem:[%s7222_s1 + $0x170] sm:$0xff]   ;;  %v1230_v31 = vshll.u32 %v4736_v24, 16 }
  0x51   : > { %5415 = vmatprep.mubr.bf16.mxu0 %v4649_v16  ;;  %v650_v37 = vrot.slane %v648_v27, 5  ;;  %v5927_v16 = vld [vmem:[%s6301_s30 + $0xc0] ss:$8 sps:$4 sm:$0xff]   ;;  %v1216_v27 = vshll.u32 %v4734_v22, 16  ;;  %v1240_v51 = vrot.slane %v1238_v43, 5 }
  0x52   : > { %5406 = vmatpush3.bf16.msra.mxu0 %v5905_v28  ;;  %v575_v28 = vld [vmem:[%s6301_s30 + $0x30] sm:$0xf]  ;;  %v645_v45 = vor.u32 %v644_v36, %v641_v35  ;;  %v4745_v22 = vld [vmem:[%s6301_s30 + $0xc0] sm:$0xf] }
  0x53   : > { %5430 = vmatpush3.bf16.msra.mxu1 %v5906_v30  ;;  %5407 = vmatprep.subr.bf16.mxu0 %v5907_v44  ;;  %v653_v30 = vshrl.u32 %v573_v21, 16  ;;  %v667_v34 = vshrl.u32 %v575_v28, 16  ;;  %v670_v39 = vshll.u32 %v575_v28, 16  ;;  %v4733_v21 = vld [vmem:[%s6301_s30 + $0x90] sm:$0xf]  ;;  %v1218_v36 = vrot.slane %v1216_v27, 5 }
  0x54   : > { %5431 = vmatprep.subr.bf16.mxu1 %v5910_v54  ;;  %v1207_v25 = vshrl.u32 %v4733_v21, 16  ;;  %v1210_v26 = vshll.u32 %v4733_v21, 16  ;;  %v4746_v27 = vld [vmem:[%s6301_s30 + $0xc4] sm:$0x1] }
  0x55   : > { %v655_v40 = vrot.slane %v653_v30, 4  ;;  %v672_v46 = vrot.slane %v670_v39, 5 }
  0x56   : > { %5408 = vmatpush3.bf16.msra.mxu0 %v5907_v44  ;;  %v669_v44 = vrot.slane %v667_v34, 4  ;;  %v1209_v34 = vrot.slane %v1207_v25, 4  ;;  %v1212_v35 = vrot.slane %v1210_v26, 5 }
  0x57   : > { %5432 = vmatpush3.bf16.msra.mxu1 %v5910_v54  ;;  %5409 = vmatprep.subr.bf16.mxu0 %v5913_v4  ;;  %v659_v50 = vor.u32 %v658_v41, %v655_v40  ;;  %v646_v54 = vrot.slane %v645_v45, 4  ;;  %v1232_v40 = vrot.slane %v1230_v31, 5  ;;  %v4740_v41 = vld [vmem:[%s6301_s30 + $0xac] sm:$0x1] }
  0x58   : > { %5433 = vmatprep.subr.bf16.mxu1 %v5914_v8  ;;  %v673_v55 = vor.u32 %v672_v46, %v669_v44  ;;  %v5934_v44 = vld [vmem:[%s7222_s1 + $0x150] sm:$0xff]   ;;  %v1213_v45 = vor.u32 %v1212_v35, %v1209_v34  ;;  %v1244_v46 = vshll.u32 %v4738_v33, 16  ;;  %v1258_v52 = vshll.u32 %v4740_v41, 16  ;;  %v4748_v35 = vld [vmem:[%s6301_s30 + $0xcc] sm:$0x1] }
  0x59   : > { %v660_v60 = vrot.slane %v659_v50, 4  ;;  %v651_v0 = vsel %vm6369_vm2, %v646_v54, %v650_v37  ;;  %v1294_v33 = vshll.u32 %v4745_v22, 16  ;;  %v1314_v43 = vshll.u32 %v4748_v35, 16 }
  0x5a   : > { %5410 = vmatpush3.bf16.msra.mxu0 %v5913_v4  ;;  %v674_v3 = vrot.slane %v673_v55, 4  ;;  %v687_v4 = vor.u32 %v686_v61, %v683_v56  ;;  %v1214_v54 = vrot.slane %v1213_v45, 4  ;;  %v1251_v55 = vrot.slane %v1249_v47, 4  ;;  %v5936_v61 = vld [vmem:[%s7222_s1 + $0x148] sm:$0xff]   ;;  %v5944_v47 = vld [vmem:[%s7222_s1 + $0x1f0] sm:$0xff]  }
  0x5b   : > { %5434 = vmatpush3.bf16.msra.mxu1 %v5914_v8  ;;  %5411 = vmatprep.subr.bf16.mxu0 %v5915_v11  ;;  %v665_v2 = vsel %vm6369_vm2, %v660_v60, %v664_v42  ;;  %v1235_v42 = vshrl.u32 %v4737_v32, 16  ;;  %v1254_v56 = vrot.slane %v1252_v48, 5  ;;  %v1246_v60 = vrot.slane %v1244_v46, 5  ;;  %v4747_v32 = vld [vmem:[%s6301_s30 + $0xc8] sm:$0xf] }
  0x5c   : > { %5435 = vmatprep.subr.bf16.mxu1 %v5916_v15  ;;  %v4651_v8 = vcombine.low %v651_v0, %v665_v2  ;;  %v688_v9 = vrot.slane %v687_v4, 4  ;;  %v679_v10 = vsel %vm6369_vm2, %v674_v3, %v678_v1  ;;  %v1260_v0 = vrot.slane %v1258_v52, 5  ;;  %v5937_v3 = vld [vmem:[%s7222_s1 + $0x100] sm:$0xff]   ;;  %v5947_v52 = vld [vmem:[%s7222_s1 + $0x1a8] sm:$0xff]  }
  0x5d   : > { %v1237_v50 = vrot.slane %v1235_v42, 4  ;;  %v1305_v38 = vshrl.u32 %v4747_v32, 16  ;;  %v1296_v41 = vrot.slane %v1294_v33, 5  ;;  %v1308_v42 = vshll.u32 %v4747_v32, 16  ;;  %v4856_v33 = vld [vmem:[%s6301_s30 + $0x24] sm:$0x1] }
  0x5e   : > { %5412 = vmatpush3.bf16.msra.mxu0 %v5915_v11  ;;  %v693_v11 = vsel %vm6369_vm2, %v688_v9, %v692_v5  ;;  %v4741_v9 = vld [vmem:[%s6301_s30 + $0xb0] sm:$0xf] }
  0x5f   : > { %5436 = vmatpush3.bf16.msra.mxu1 %v5916_v15  ;;  %5413 = vmatprep.subr.bf16.mxu0 %v5917_v23  ;;  %v4652_v14 = vcombine.low %v679_v10, %v693_v11  ;;  %v5929_v15 = vld [vmem:[%s7222_s1 + $0x120] sm:$0xff]   ;;  %v4742_v10 = vld [vmem:[%s6301_s30 + $0xb4] sm:$0x1]  ;;  %v4743_v11 = vld [vmem:[%s6301_s30 + $0xb8] sm:$0xf]  ;;  %v1307_v46 = vrot.slane %v1305_v38, 4 }
  0x60   : > { %5437 = vmatprep.subr.bf16.mxu1 %v5918_v29 }
  0x62   : > { %5414 = vmatpush3.bf16.msra.mxu0 %v5917_v23  ;;  %v4735_v23 = vld [vmem:[%s6301_s30 + $0x98] sm:$0xf] }
  0x63   : > { %5438 = vmatpush3.bf16.msra.mxu1 %v5918_v29  ;;  %5447 = vmatprep.subr.bf16.mxu0 %v5919_v53  ;;  %v1221_v28 = vshrl.u32 %v4735_v23, 16  ;;  %v5933_v29 = vld [vmem:[%s7222_s1 + $0x110] sm:$0xff]   ;;  %v1224_v30 = vshll.u32 %v4735_v23, 16 }
  0x64   : > { %5471 = vmatprep.subr.bf16.mxu1 %v5922_v58  ;;  %v5940_v23 = vld [vmem:[%s6301_s30 + $0xe8] ss:$8 sps:$4 sm:$0xff]  }
  0x65   : > { %5416 = vmatmul.mubr.bf16.vlgmr.msra.gmra.mxu0 %v4650_v62  ;;  %v1223_v37 = vrot.slane %v1221_v28, 4  ;;  %v1226_v39 = vrot.slane %v1224_v30, 5  ;;  %v1219_v62 = vsel %vm6369_vm2, %v1214_v54, %v1218_v36  ;;  %v1291_v28 = vshrl.u32 %v4745_v22, 16  ;;  %v4853_v22 = vld [vmem:[%s6301_s30 + $0x18] sm:$0xf] }
  0x66   : > { %5448 = vmatpush3.bf16.msra.mxu0 %v5919_v53  ;;  %5440 = vmatmul.mubr.bf16.vlgmr.msra.gmra.mxu1 %v5921_v57  ;;  %v5935_v53 = vld [vmem:[%s7222_s1 + $0x108] sm:$0xff]   ;;  %v1862_v38 = vshll.u32 %v4853_v22, 16 }
  0x67   : > { %5472 = vmatpush3.bf16.msra.mxu1 %v5922_v58  ;;  %5449 = vmatprep.subr.bf16.mxu0 %v5923_v63  ;;  %v1227_v49 = vor.u32 %v1226_v39, %v1223_v37  ;;  %v1241_v58 = vor.u32 %v1240_v51, %v1237_v50  ;;  %v1293_v36 = vrot.slane %v1291_v28, 4  ;;  %v1300_v37 = vshll.u32 %v4746_v27, 16  ;;  %v5943_v39 = vld [vmem:[%s7222_s1 + $0x1b0] sm:$0xff]   ;;  %v4855_v27 = vld [vmem:[%s6301_s30 + $0x20] sm:$0xf] }
  0x68   : > { %5473 = vmatprep.subr.bf16.mxu1 %v5924_v7  ;;  %5419 = vmatprep.mubr.bf16.mxu0 %v4651_v8  ;;  %v1310_v51 = vrot.slane %v1308_v42, 5  ;;  %v5963_v28 = vld [vmem:[%s6301_s30 + $0x60] ss:$8 sps:$4 sm:$0xff]   ;;  %v1876_v42 = vshll.u32 %v4855_v27, 16 }
  0x69   : > { %5443 = vmatprep.mubr.bf16.mxu1 %v5926_v6  ;;  %v1228_v57 = vrot.slane %v1227_v49, 4  ;;  %v1242_v2 = vrot.slane %v1241_v58, 4  ;;  %v5938_v6 = vld [vmem:[%s7222_s1 + $0x140] sm:$0xff]   ;;  %v1297_v49 = vor.u32 %v1296_v41, %v1293_v36  ;;  %v1302_v50 = vrot.slane %v1300_v37, 5  ;;  %v5946_v58 = vld [vmem:[%s6301_s30 + $0x108] ss:$8 sps:$4 sm:$0xff]  }
  0x6a   : > { %5450 = vmatpush3.bf16.msra.mxu0 %v5923_v63  ;;  %v1255_v63 = vor.u32 %v1254_v56, %v1251_v55  ;;  %v1311_v56 = vor.u32 %v1310_v51, %v1307_v46  ;;  %v1859_v37 = vshrl.u32 %v4853_v22, 16  ;;  %v1873_v41 = vshrl.u32 %v4855_v27, 16 }
  0x6b   : > { %5474 = vmatpush3.bf16.msra.mxu1 %v5924_v7  ;;  %5451 = vmatprep.subr.bf16.mxu0 %v5925_v12  ;;  %v1233_v1 = vsel %vm6369_vm2, %v1228_v57, %v1232_v40  ;;  %v1247_v7 = vsel %vm6369_vm2, %v1242_v2, %v1246_v60  ;;  %v1298_v55 = vrot.slane %v1297_v49, 4  ;;  %v1316_v57 = vrot.slane %v1314_v43, 5  ;;  %v5949_v2 = vld [vmem:[%s7222_s1 + $0x1a0] sm:$0xff]   ;;  %v4857_v43 = vld [vmem:[%s6301_s30 + $0x28] sm:$0xf] }
  0x6c   : > { %5475 = vmatprep.subr.bf16.mxu1 %v5928_v13  ;;  %v4765_v4 = vcombine.low %v1219_v62, %v1233_v1  ;;  %v1256_v5 = vrot.slane %v1255_v63, 4  ;;  %v1312_v62 = vrot.slane %v1311_v56, 4  ;;  %v5948_v63 = vld [vmem:[%s7222_s1 + $0x1e8] sm:$0xff]   ;;  %v1882_v49 = vshll.u32 %v4856_v33, 16 }
  0x6d   : > { %5420 = vmatmul.mubr.bf16.gmra.mxu0 %v4652_v14  ;;  %v1263_v14 = vshrl.u32 %v4741_v9, 16 }
  0x6e   : > { %5452 = vmatpush3.bf16.msra.mxu0 %v5925_v12  ;;  %5444 = vmatmul.mubr.bf16.gmra.mxu1 %v5927_v16  ;;  %v1261_v8 = vsel %vm6369_vm2, %v1256_v5, %v1260_v0  ;;  %v5941_v12 = vld [vmem:[%s7222_s1 + $0x1b8] sm:$0xff]   ;;  %v1272_v16 = vshll.u32 %v4742_v10, 16  ;;  %v1317_v0 = vsel %vm6369_vm2, %v1312_v62, %v1316_v57  ;;  %v5955_v10 = vld [vmem:[%s7222_s1 + $0x188] sm:$0xff]   ;;  %v6582_v62 = vrot.slane %v1882_v49, 5 }
  0x6f   : > { %5476 = vmatpush3.bf16.msra.mxu1 %v5928_v13  ;;  %5453 = vmatprep.subr.bf16.mxu0 %v5929_v15  ;;  %v4744_v13 = vld [vmem:[%s6301_s30 + $0xbc] sm:$0x1]  ;;  %v1265_v24 = vrot.slane %v1263_v14, 4  ;;  %v4849_v14 = vld [vmem:[%s6301_s30 + $0x8] sm:$0xf] }
  0x70   : > { %5477 = vmatprep.subr.bf16.mxu1 %v5930_v17  ;;  %5463 = vmatprep.mubr.bf16.mxu0 %v5939_v18  ;;  %v5942_v18 = vld [vmem:[%s7222_s1 + $0x1f8] sm:$0xff]   ;;  %v1286_v21 = vshll.u32 %v4744_v13, 16  ;;  %v1274_v26 = vrot.slane %v1272_v16, 5  ;;  %v5958_v13 = vld [vmem:[%s7222_s1 + $0x1c0] sm:$0xff]   ;;  %v4851_v16 = vld [vmem:[%s6301_s30 + $0x10] sm:$0xf] }
  0x71   : > { %5487 = vmatprep.mubr.bf16.mxu1 %v4765_v4  ;;  %v5959_v4 = vld [vmem:[%s6301_s30 + $0x8] ss:$8 sps:$4 sm:$0xff]   ;;  %v5951_v5 = vld [vmem:[%s7222_s1 + $0x198] sm:$0xff]  }
  0x72   : > { %5454 = vmatpush3.bf16.msra.mxu0 %v5929_v15  ;;  %v1266_v15 = vshll.u32 %v4741_v9, 16  ;;  %v1288_v31 = vrot.slane %v1286_v21, 5  ;;  %v5954_v9 = vld [vmem:[%s7222_s1 + $0x1d0] sm:$0xff]   ;;  %v1845_v21 = vshrl.u32 %v4851_v16, 16 }
  0x73   : > { %5478 = vmatpush3.bf16.msra.mxu1 %v5930_v17  ;;  %5455 = vmatprep.subr.bf16.mxu0 %v5931_v19  ;;  %v4766_v17 = vcombine.low %v1247_v7, %v1261_v8  ;;  %v5962_v7 = vld [vmem:[%s6301_s30 + $0x50] ss:$8 sps:$4 sm:$0xff]  }
  0x74   : > { %5479 = vmatprep.subr.bf16.mxu1 %v5932_v20  ;;  %v1268_v25 = vrot.slane %v1266_v15, 5  ;;  %v5953_v8 = vld [vmem:[%s7222_s1 + $0x190] sm:$0xff]   ;;  %v4850_v15 = vld [vmem:[%s6301_s30 + $0xc] sm:$0x1] }
  0x76   : > { %5456 = vmatpush3.bf16.msra.mxu0 %v5931_v19  ;;  %v1277_v19 = vshrl.u32 %v4743_v11, 16  ;;  %v1269_v34 = vor.u32 %v1268_v25, %v1265_v24  ;;  %v5961_v24 = vld [vmem:[%s7222_s1 + $0x238] sm:$0xff]   ;;  %v1848_v25 = vshll.u32 %v4851_v16, 16 }
  0x77   : > { %5480 = vmatpush3.bf16.msra.mxu1 %v5932_v20  ;;  %5457 = vmatprep.subr.bf16.mxu0 %v5933_v29  ;;  %v1280_v20 = vshll.u32 %v4743_v11, 16  ;;  %v5956_v11 = vld [vmem:[%s7222_s1 + $0x1c8] sm:$0xff]  }
  0x78   : > { %5481 = vmatprep.subr.bf16.mxu1 %v5934_v44  ;;  %v1270_v45 = vrot.slane %v1269_v34, 4  ;;  %v5965_v34 = vld [vmem:[%s6301_s30 + $0x28] ss:$8 sps:$4 sm:$0xff]   ;;  %v1850_v36 = vrot.slane %v1848_v25, 5 }
  0x79   : > { %v1282_v30 = vrot.slane %v1280_v20, 5  ;;  %v1840_v20 = vshll.u32 %v4850_v15, 16 }
  0x7a   : > { %5458 = vmatpush3.bf16.msra.mxu0 %v5933_v29  ;;  %v1279_v29 = vrot.slane %v1277_v19, 4  ;;  %v1834_v19 = vshll.u32 %v4849_v14, 16 }
  0x7b   : > { %5482 = vmatpush3.bf16.msra.mxu1 %v5934_v44  ;;  %5459 = vmatprep.subr.bf16.mxu0 %v5935_v53  ;;  %v5945_v44 = vld [vmem:[%s6301_s30 + $0xf8] ss:$8 sps:$4 sm:$0xff]   ;;  %v1842_v35 = vrot.slane %v1840_v20, 5 }
  0x7c   : > { %5483 = vmatprep.subr.bf16.mxu1 %v5936_v61  ;;  %v1283_v40 = vor.u32 %v1282_v30, %v1279_v29  ;;  %v1836_v30 = vrot.slane %v1834_v19, 5  ;;  %v5970_v20 = vld [vmem:[%s7222_s1 + $0x220] sm:$0xff]  }
  0x7e   : > { %5460 = vmatpush3.bf16.msra.mxu0 %v5935_v53  ;;  %v1284_v48 = vrot.slane %v1283_v40, 4  ;;  %v1275_v53 = vsel %vm6369_vm2, %v1270_v45, %v1274_v26  ;;  %v4854_v26 = vld [vmem:[%s6301_s30 + $0x1c] sm:$0x1]  ;;  %v5968_v45 = vld [vmem:[%s6301_s30 + $0x70] ss:$8 sps:$4 sm:$0xff]  }
  0x7f   : > { %5484 = vmatpush3.bf16.msra.mxu1 %v5936_v61  ;;  %5461 = vmatprep.subr.bf16.mxu0 %v5937_v3  ;;  %v1303_v61 = vsel %vm6369_vm2, %v1298_v55, %v1302_v50  ;;  %v1868_v40 = vshll.u32 %v4854_v26, 16  ;;  %v5967_v55 = vld [vmem:[%s7222_s1 + $0x228] sm:$0xff]  }
  0x80   : > { %5485 = vmatprep.subr.bf16.mxu1 %v5938_v6  ;;  %v1289_v54 = vsel %vm6369_vm2, %v1284_v48, %v1288_v31  ;;  %v4768_v1 = vcombine.low %v1303_v61, %v1317_v0  ;;  %v1847_v31 = vrot.slane %v1845_v21, 4  ;;  %v1864_v48 = vrot.slane %v1862_v38, 5 }
  0x81   : > { %v4767_v60 = vcombine.low %v1275_v53, %v1289_v54  ;;  %v1878_v53 = vrot.slane %v1876_v42, 5  ;;  %v4859_v54 = vld [vmem:[%s6301_s30 + $0x30] sm:$0xf]  ;;  %v1887_v61 = vshrl.u32 %v4857_v43, 16  ;;  %v1890_v0 = vshll.u32 %v4857_v43, 16 }
  0x82   : > { %5462 = vmatpush3.bf16.msra.mxu0 %v5937_v3  ;;  %v5950_v3 = vld [vmem:[%s7222_s1 + $0x1e0] sm:$0xff]   ;;  %v1851_v46 = vor.u32 %v1850_v36, %v1847_v31  ;;  %v1904_v16 = vshll.u32 %v4859_v54, 16  ;;  %v5972_v42 = vld [vmem:[%s7222_s1 + $0x210] sm:$0xff]  }
  0x83   : > { %5486 = vmatpush3.bf16.msra.mxu1 %v5938_v6  ;;  %5495 = vmatprep.subr.bf16.mxu0 %v5941_v12  ;;  %v5952_v6 = vld [vmem:[%s7222_s1 + $0x1d8] sm:$0xff]  }
  0x84   : > { %5519 = vmatprep.subr.bf16.mxu1 %v5942_v18  ;;  %v1852_v56 = vrot.slane %v1851_v46, 4  ;;  %v5973_v46 = vld [vmem:[%s7222_s1 + $0x208] sm:$0xff]  }
  0x85   : > { %5464 = vmatmul.mubr.bf16.vlgmr.msra.gmra.mxu0 %v5940_v23  ;;  %v5960_v23 = vld [vmem:[%s6301_s30 + $0x18] ss:$8 sps:$4 sm:$0xff]  }
  0x86   : > { %5496 = vmatpush3.bf16.msra.mxu0 %v5941_v12  ;;  %5488 = vmatmul.mubr.bf16.vlgmr.msra.gmra.mxu1 %v4766_v17  ;;  %v5957_v12 = vld [vmem:[%s7222_s1 + $0x180] sm:$0xff]   ;;  %v4852_v17 = vld [vmem:[%s6301_s30 + $0x14] sm:$0x1] }
  0x87   : > { %5520 = vmatpush3.bf16.msra.mxu1 %v5942_v18  ;;  %5497 = vmatprep.subr.bf16.mxu0 %v5943_v39  ;;  %v1831_v18 = vshrl.u32 %v4849_v14, 16  ;;  %v1854_v32 = vshll.u32 %v4852_v17, 16 }
  0x88   : > { %5521 = vmatprep.subr.bf16.mxu1 %v5944_v47  ;;  %5467 = vmatprep.mubr.bf16.mxu0 %v5945_v44  ;;  %v5964_v44 = vld [vmem:[%s7222_s1 + $0x230] sm:$0xff]  }
  0x89   : > { %5491 = vmatprep.mubr.bf16.mxu1 %v4767_v60  ;;  %v1833_v29 = vrot.slane %v1831_v18, 4  ;;  %v1856_v51 = vrot.slane %v1854_v32, 5  ;;  %v4858_v60 = vld [vmem:[%s6301_s30 + $0x2c] sm:$0x1] }
  0x8a   : > { %5498 = vmatpush3.bf16.msra.mxu0 %v5943_v39 }
  0x8b   : > { %5522 = vmatpush3.bf16.msra.mxu1 %v5944_v47  ;;  %5499 = vmatprep.subr.bf16.mxu0 %v5947_v52  ;;  %v1837_v39 = vor.u32 %v1836_v30, %v1833_v29  ;;  %v1861_v47 = vrot.slane %v1859_v37, 4 }
  0x8c   : > { %5523 = vmatprep.subr.bf16.mxu1 %v5948_v63 }
  0x8d   : > { %5468 = vmatmul.mubr.bf16.gmra.mxu0 %v5946_v58  ;;  %v1838_v50 = vrot.slane %v1837_v39, 4  ;;  %v1865_v57 = vor.u32 %v1864_v48, %v1861_v47  ;;  %v6579_v58 = vrot.slane %v1868_v40, 5  ;;  %v5974_v47 = vld [vmem:[%s7222_s1 + $0x200] sm:$0xff]  }
  0x8e   : > { %5500 = vmatpush3.bf16.msra.mxu0 %v5947_v52  ;;  %5492 = vmatmul.mubr.bf16.gmra.mxu1 %v4768_v1  ;;  %v1875_v52 = vrot.slane %v1873_v41, 4  ;;  %v4861_v1 = vld [vmem:[%s6301_s30 + $0x38] sm:$0xf] }
  0x8f   : > { %5524 = vmatpush3.bf16.msra.mxu1 %v5948_v63  ;;  %5501 = vmatprep.subr.bf16.mxu0 %v5949_v2  ;;  %v4860_v63 = vld [vmem:[%s6301_s30 + $0x34] sm:$0x1]  ;;  %v1866_v14 = vrot.slane %v1865_v57, 4  ;;  %v1915_v18 = vshrl.u32 %v4861_v1, 16  ;;  %v1918_v19 = vshll.u32 %v4861_v1, 16  ;;  %v5975_v57 = vld [vmem:[#allocation3 + $0x38] sm:$0xff]  }
  0x90   : > { %5525 = vmatprep.subr.bf16.mxu1 %v5950_v3  ;;  %5511 = vmatprep.mubr.bf16.mxu0 %v5959_v4  ;;  %v1889_v4 = vrot.slane %v1887_v61, 4  ;;  %v1910_v17 = vshll.u32 %v4860_v63, 16  ;;  %v5977_v61 = vld [vmem:[#allocation3 + $0x28] sm:$0xff]  }
  0x91   : > { %5535 = vmatprep.mubr.bf16.mxu1 %v5962_v7  ;;  %v4863_v7 = vld [vmem:[%s6301_s30 + $0x40] sm:$0xf]  ;;  %v1917_v26 = vrot.slane %v1915_v18, 4  ;;  %v1920_v27 = vrot.slane %v1918_v19, 5  ;;  %v1871_v48 = vsel %vm6369_vm2, %v1866_v14, %v6579_v58  ;;  %v5985_v14 = vld [vmem:[#allocation3 + $0x8] sm:$0xff]   ;;  %v5987_v19 = vld [vmem:[#allocation3] sm:$0xff]  }
  0x92   : > { %5502 = vmatpush3.bf16.msra.mxu0 %v5949_v2  ;;  %v5966_v2 = vld [vmem:[%s6301_s30 + $0x38] ss:$8 sps:$4 sm:$0xff]   ;;  %v1932_v31 = vshll.u32 %v4863_v7, 16  ;;  %v1912_v33 = vrot.slane %v1910_v17, 5 }
  0x93   : > { %5526 = vmatpush3.bf16.msra.mxu1 %v5950_v3  ;;  %5503 = vmatprep.subr.bf16.mxu0 %v5951_v5  ;;  %v1843_v3 = vsel %vm6369_vm2, %v1838_v50, %v1842_v35  ;;  %v5971_v35 = vld [vmem:[%s7222_s1 + $0x218] sm:$0xff]   ;;  %v1921_v37 = vor.u32 %v1920_v27, %v1917_v26  ;;  %v5976_v58 = vld [vmem:[#allocation3 + $0x30] sm:$0xff]   ;;  %v5994_v26 = vld [vmem:[#allocation3 + $0x40] sm:$0xff]  }
  0x94   : > { %5527 = vmatprep.subr.bf16.mxu1 %v5952_v6  ;;  %v1934_v39 = vrot.slane %v1932_v31, 5 }
  0x96   : > { %5504 = vmatpush3.bf16.msra.mxu0 %v5951_v5  ;;  %v1901_v5 = vshrl.u32 %v4859_v54, 16 }
  0x97   : > { %5528 = vmatpush3.bf16.msra.mxu1 %v5952_v6  ;;  %5505 = vmatprep.subr.bf16.mxu0 %v5953_v8  ;;  %v4862_v6 = vld [vmem:[%s6301_s30 + $0x3c] sm:$0x1] }
  0x98   : > { %5529 = vmatprep.subr.bf16.mxu1 %v5954_v9  ;;  %v1903_v15 = vrot.slane %v1901_v5, 4 }
  0x9a   : > { %5506 = vmatpush3.bf16.msra.mxu0 %v5953_v8  ;;  %v5969_v8 = vld [vmem:[%s6301_s30 + $0x80] ss:$8 sps:$4 sm:$0xff]  }
  0x9b   : > { %5530 = vmatpush3.bf16.msra.mxu1 %v5954_v9  ;;  %5507 = vmatprep.subr.bf16.mxu0 %v5955_v10  ;;  %v1857_v9 = vsel %vm6369_vm2, %v1852_v56, %v1856_v51 }
  0x9c   : > { %5531 = vmatprep.subr.bf16.mxu1 %v5956_v11  ;;  %v4881_v21 = vcombine.low %v1843_v3, %v1857_v9  ;;  %v5983_v9 = vld [vmem:[#allocation3 + $0x10] sm:$0xff]  }
  0x9e   : > { %5508 = vmatpush3.bf16.msra.mxu0 %v5955_v10  ;;  %v1879_v10 = vor.u32 %v1878_v53, %v1875_v52 }
  0x9f   : > { %5532 = vmatpush3.bf16.msra.mxu1 %v5956_v11  ;;  %5509 = vmatprep.subr.bf16.mxu0 %v5957_v12  ;;  %v1892_v11 = vrot.slane %v1890_v0, 5  ;;  %v5979_v0 = vld [vmem:[#allocation3 + $0x20] sm:$0xff]  }
  0xa0   : > { %5533 = vmatprep.subr.bf16.mxu1 %v5958_v13  ;;  %v1880_v25 = vrot.slane %v1879_v10, 4  ;;  %v5984_v10 = vld [vmem:[#allocation3 + $0x60] sm:$0xff]  }
  0xa1   : > { %v1893_v22 = vor.u32 %v1892_v11, %v1889_v4  ;;  %v5981_v4 = vld [vmem:[#allocation3 + $0x18] sm:$0xff]   ;;  %v6166_v11 = vmov 0  }
  0xa2   : > { %5510 = vmatpush3.bf16.msra.mxu0 %v5957_v12  ;;  %v1896_v12 = vshll.u32 %v4858_v60, 16  ;;  %v1885_v49 = vsel %vm6369_vm2, %v1880_v25, %v6582_v62  ;;  %v5978_v62 = vld [vmem:[#allocation3 + $0x78] sm:$0xff]   ;;  %2229 = vst [vmem:[#allocation2] sm:$0xf] %v6166_v11  ;;  %2230 = vst [vmem:[#allocation2 + $0x4] sm:$0xf] %v6166_v11 }
  0xa3   : > { %5534 = vmatpush3.bf16.msra.mxu1 %v5958_v13  ;;  %5543 = vmatprep.subr.bf16.mxu0 %v5961_v24  ;;  %v4864_v13 = vld [vmem:[%s6301_s30 + $0x44] sm:$0x1]  ;;  %v1894_v36 = vrot.slane %v1893_v22, 4  ;;  %v4882_v52 = vcombine.low %v1871_v48, %v1885_v49  ;;  %2232 = vst [vmem:[#allocation2 + $0x48] sm:$0xf] %v6166_v11 }
  0xa4   : > { %v1898_v29 = vrot.slane %v1896_v12, 5  ;;  %v1938_v32 = vshll.u32 %v4864_v13, 16  ;;  %5567 = vmatprep.subr.bf16.mxu1 %v5978_v62  ;;  %2233 = vst [vmem:[#allocation2 + $0x4c] sm:$0xf] %v6166_v11 }
  0xa5   : > { %5512 = vmatmul.mubr.bf16.vlgmr.msra.gmra.mxu0 %v5960_v23  ;;  %v1906_v23 = vrot.slane %v1904_v16, 5 }
  0xa6   : > { %5544 = vmatpush3.bf16.msra.mxu0 %v5961_v24  ;;  %5536 = vmatmul.mubr.bf16.vlgmr.msra.gmra.mxu1 %v5963_v28  ;;  %v1924_v24 = vshll.u32 %v4862_v6, 16  ;;  %v1929_v28 = vshrl.u32 %v4863_v7, 16  ;;  %v1940_v41 = vrot.slane %v1938_v32, 5  ;;  %v1899_v50 = vsel %vm6369_vm2, %v1894_v36, %v1898_v29  ;;  %v5982_v6 = vld [vmem:[#allocation3 + $0x68] sm:$0xff]   ;;  %v6657_v32 = vld [vmem:[#allocation3 + $0xb8] sm:$0xff]  }
  0xa7   : > { %5545 = vmatprep.subr.bf16.mxu0 %v5964_v44  ;;  %5515 = vmatprep.mubr.bf16.mxu0 %v5965_v34  ;;  %v1907_v30 = vor.u32 %v1906_v23, %v1903_v15  ;;  %v5986_v15 = vld [vmem:[#allocation3 + $0x58] sm:$0xff]   ;;  %7238 = vst [vmem:[#allocation11_spill] sm:$0xff] %v6657_v32 }
  0xa8   : > { %5539 = vmatprep.mubr.bf16.mxu1 %v5968_v45  ;;  %v1931_v34 = vrot.slane %v1929_v28, 4  ;;  %v1926_v38 = vrot.slane %v1924_v24, 5  ;;  %5568 = vmatpush3.bf16.msra.mxu1 %v5978_v62  ;;  %v6652_v23 = vld [vmem:[#allocation3 + $0xf8] sm:$0xff]   ;;  %v5991_v24 = vld [vmem:[#allocation3 + $0x48] sm:$0xff]  }
  0xa9   : > { %v1908_v40 = vrot.slane %v1907_v30, 4  ;;  %7237 = vst [vmem:[#allocation10_spill] sm:$0xff] %v6652_v23 }
  0xaa   : > { %5546 = vmatpush3.bf16.msra.mxu0 %v5964_v44  ;;  %v1935_v43 = vor.u32 %v1934_v39, %v1931_v34  ;;  %v1922_v44 = vrot.slane %v1921_v37, 4 }
  0xab   : > { %5547 = vmatprep.subr.bf16.mxu0 %v5967_v55  ;;  %v1913_v51 = vsel %vm6369_vm2, %v1908_v40, %v1912_v33 }
  0xac   : > { %v1936_v45 = vrot.slane %v1935_v43, 4  ;;  %v4883_v53 = vcombine.low %v1899_v50, %v1913_v51  ;;  %v1927_v54 = vsel %vm6369_vm2, %v1922_v44, %v1926_v38 }
  0xad   : > { %5516 = vmatmul.mubr.bf16.gmra.mxu0 %v5966_v2  ;;  %v5980_v2 = vld [vmem:[#allocation3 + $0x70] sm:$0xff]  }
  0xae   : > { %5548 = vmatpush3.bf16.msra.mxu0 %v5967_v55  ;;  %5540 = vmatmul.mubr.bf16.gmra.mxu1 %v5969_v8  ;;  %v1941_v55 = vsel %vm6369_vm2, %v1936_v45, %v1940_v41 }
  0xaf   : > { %5549 = vmatprep.subr.bf16.mxu0 %v5970_v20  ;;  %5559 = vmatprep.mubr.bf16.mxu0 %v4881_v21  ;;  %v4884_v56 = vcombine.low %v1927_v54, %v1941_v55 }
  0xb0   : > { %5569 = vmatprep.subr.bf16.mxu1 %v5980_v2 }
  0xb1   : > { %5570 = vmatpush3.bf16.msra.mxu1 %v5980_v2 }
  0xb2   : > { %5550 = vmatpush3.bf16.msra.mxu0 %v5970_v20  ;;  %5571 = vmatprep.subr.bf16.mxu1 %v5982_v6  ;;  %v5988_v20 = vld [vmem:[#allocation3 + $0x50] sm:$0xff]  }
  0xb3   : > { %5551 = vmatprep.subr.bf16.mxu0 %v5971_v35 }
  0xb5   : > { %5572 = vmatpush3.bf16.msra.mxu1 %v5982_v6 }
  0xb6   : > { %5552 = vmatpush3.bf16.msra.mxu0 %v5971_v35  ;;  %5573 = vmatprep.subr.bf16.mxu1 %v5984_v10 }
  0xb7   : > { %5553 = vmatprep.subr.bf16.mxu0 %v5972_v42 }
  0xb9   : > { %5574 = vmatpush3.bf16.msra.mxu1 %v5984_v10 }
  0xba   : > { %5554 = vmatpush3.bf16.msra.mxu0 %v5972_v42  ;;  %5575 = vmatprep.subr.bf16.mxu1 %v5986_v15 }
  0xbb   : > { %5555 = vmatprep.subr.bf16.mxu0 %v5973_v46 }
  0xbd   : > { %5576 = vmatpush3.bf16.msra.mxu1 %v5986_v15 }
  0xbe   : > { %5556 = vmatpush3.bf16.msra.mxu0 %v5973_v46  ;;  %5577 = vmatprep.subr.bf16.mxu1 %v5988_v20 }
  0xbf   : > { %5557 = vmatprep.subr.bf16.mxu0 %v5974_v47 }
  0xc1   : > { %5578 = vmatpush3.bf16.msra.mxu1 %v5988_v20 }
  0xc2   : > { %5558 = vmatpush3.bf16.msra.mxu0 %v5974_v47  ;;  %5579 = vmatprep.subr.bf16.mxu1 %v5991_v24 }
  0xc3   : > { %5591 = vmatprep.subr.bf16.mxu0 %v5975_v57 }
  0xc5   : > { %5560 = vmatmul.mubr.bf16.vlgmr.msra.gmra.mxu0 %v4882_v52  ;;  %5580 = vmatpush3.bf16.msra.mxu1 %v5991_v24 }
  0xc6   : > { %5563 = vmatprep.mubr.bf16.mxu0 %v4883_v53  ;;  %5592 = vmatpush3.bf16.msra.mxu0 %v5975_v57 }
  0xc7   : > { %5593 = vmatprep.subr.bf16.mxu0 %v5976_v58  ;;  %5581 = vmatprep.subr.bf16.mxu1 %v5994_v26 }
  0xc9   : > { %5582 = vmatpush3.bf16.msra.mxu1 %v5994_v26 }
  0xca   : > { %5594 = vmatpush3.bf16.msra.mxu0 %v5976_v58  ;;  %5615 = vmatprep.subr.bf16.mxu1 %v6657_v32 }
  0xcb   : > { %5595 = vmatprep.subr.bf16.mxu0 %v5977_v61 }
  0xcd   : > { %5564 = vmatmul.mubr.bf16.gmra.mxu0 %v4884_v56 }
  0xce   : > { %5596 = vmatpush3.bf16.msra.mxu0 %v5977_v61 }
  0xcf   : > { %5597 = vmatprep.subr.bf16.mxu0 %v5979_v0 }
  0xd2   : > { %5598 = vmatpush3.bf16.msra.mxu0 %v5979_v0 }
  0xd3   : > { %5599 = vmatprep.subr.bf16.mxu0 %v5981_v4 }
  0xd6   : > { %5600 = vmatpush3.bf16.msra.mxu0 %v5981_v4 }
  0xd7   : > { %5601 = vmatprep.subr.bf16.mxu0 %v5983_v9 }
  0xda   : > { %5602 = vmatpush3.bf16.msra.mxu0 %v5983_v9 }
  0xdb   : > { %5603 = vmatprep.subr.bf16.mxu0 %v5985_v14 }
  0xde   : > { %5604 = vmatpush3.bf16.msra.mxu0 %v5985_v14 }
  0xdf   : > { %5605 = vmatprep.subr.bf16.mxu0 %v5987_v19 }
  0xe2   : > { %5606 = vmatpush3.bf16.msra.mxu0 %v5987_v19 }
  0xe3   : > { %5639 = vmatprep.subr.bf16.mxu0 %v6652_v23 }
 0x105   : > { %v6624_v60 = vpop.f32.mrf.mxu0 }
 0x106   : > { %v6630_v3 = vpop.f32.mrf.mxu1 }
 0x107   : > { %v6626_v63 = vpop.f32.mrf.mxu0  ;;  %v541_v9 = vadd.f32 %v6630_v3, %v6624_v60 }
 0x108   : > { %v6634_v7 = vpop.f32.mrf.mxu1 }
 0x109   : > { %v6628_v1 = vpop.f32.mrf.mxu0  ;;  %v533_v11 = vadd.f32 %v6634_v7, %v6626_v63 }
 0x10a   : > { %v6638_v12 = vpop.f32.mrf.mxu1 }
 0x10b   : > { %v6632_v5 = vpop.f32.mrf.mxu0  ;;  %v544_v19 = vadd.f32 %v6638_v12, %v6628_v1 }
 0x10c   : > { %v6642_v16 = vpop.f32.mrf.mxu1 }
 0x10d   : > { %v6636_v8 = vpop.f32.mrf.mxu0  ;;  %v536_v24 = vadd.f32 %v6642_v16, %v6632_v5 }
 0x10e   : > { %v6646_v18 = vpop.f32.mrf.mxu1 }
 0x10f   : > { %v6640_v13 = vpop.f32.mrf.mxu0  ;;  %v557_v3 = vadd.f32 %v6646_v18, %v6636_v8 }
 0x110   : > { %v6650_v22 = vpop.f32.mrf.mxu1 }
 0x111   : > { %v6644_v17 = vpop.f32.mrf.mxu0  ;;  %v549_v7 = vadd.f32 %v6650_v22, %v6640_v13 }
 0x112   : > { %v6655_v27 = vpop.f32.mrf.mxu1 }
 0x113   : > { %v6648_v21 = vpop.f32.mrf.mxu0  ;;  %v560_v5 = vadd.f32 %v6655_v27, %v6644_v17 }
 0x114   : > { %v551_v29 = vpop.f32.mrf.mxu1 }
 0x115   : > { %v552_v16 = vadd.f32 %v551_v29, %v6648_v21 }
 0x125   : > { %v5417_v25 = vpop.f32.mrf.mxu0 }
 0x126   : > { %v5441_v31 = vpop.f32.mrf.mxu1  ;;  %v842_v14 = vadd.f32 %v5417_v25, %v541_v9 }
 0x127   : > { %v809_v28 = vpop.f32.mrf.mxu0 }
 0x128   : > { %v980_v34 = vpop.f32.mrf.mxu1  ;;  %v840_v20 = vadd.f32 %v809_v28, %v533_v11  ;;  %v1013_v32 = vadd.f32 %v5441_v31, %v842_v14 }
 0x129   : > { %v5418_v30 = vpop.f32.mrf.mxu0 }
 0x12a   : > { %v5442_v36 = vpop.f32.mrf.mxu1  ;;  %v843_v23 = vadd.f32 %v5418_v30, %v544_v19 }
 0x12b   : > { %v812_v33 = vpop.f32.mrf.mxu0 }
 0x12c   : > { %v983_v38 = vpop.f32.mrf.mxu1  ;;  %v1014_v25 = vadd.f32 %v5442_v36, %v843_v23 }
 0x12d   : > { %v5421_v35 = vpop.f32.mrf.mxu0 }
 0x12e   : > { %v5445_v40 = vpop.f32.mrf.mxu1  ;;  %v846_v28 = vadd.f32 %v5421_v35, %v557_v3 }
 0x12f   : > { %v825_v37 = vpop.f32.mrf.mxu0 }
 0x130   : > { %v996_v42 = vpop.f32.mrf.mxu1  ;;  %v844_v31 = vadd.f32 %v825_v37, %v549_v7  ;;  %v1017_v36 = vadd.f32 %v5445_v40, %v846_v28 }
 0x131   : > { %v5422_v39 = vpop.f32.mrf.mxu0 }
 0x132   : > { %v6660_v44 = vpop.f32.mrf.mxu1  ;;  %v847_v8 = vadd.f32 %v5422_v39, %v560_v5  ;;  %v1015_v17 = vadd.f32 %v996_v42, %v844_v31  ;;  %v6693_v42 = vld [vmem:[%s7224_s3] ss:$0 sm:$0xff]  ;;  %v6706_v31 = vld [vmem:[#allocation2 + $0x4] sm:$0x1] }
 0x133   : > { %v828_v41 = vpop.f32.mrf.mxu0 }
 0x134   : > { %v999_v46 = vpop.f32.mrf.mxu1  ;;  %v845_v18 = vadd.f32 %v828_v41, %v552_v16  ;;  %v1018_v35 = vadd.f32 %v6660_v44, %v847_v8 }
 0x136   : > { %v1016_v37 = vadd.f32 %v999_v46, %v845_v18 }
 0x145   : > { %v5465_v43 = vpop.f32.mrf.mxu0 }
 0x146   : > { %v5489_v48 = vpop.f32.mrf.mxu1  ;;  %v1184_v60 = vadd.f32 %v5465_v43, %v1013_v32 }
 0x147   : > { %v1151_v45 = vpop.f32.mrf.mxu0 }
 0x148   : > { %v1433_v50 = vpop.f32.mrf.mxu1 }
 0x149   : > { %v5466_v47 = vpop.f32.mrf.mxu0 }
 0x14a   : > { %v5490_v52 = vpop.f32.mrf.mxu1  ;;  %v1185_v32 = vadd.f32 %v5466_v47, %v1014_v25 }
 0x14b   : > { %v1154_v49 = vpop.f32.mrf.mxu0 }
 0x14c   : > { %v1436_v54 = vpop.f32.mrf.mxu1  ;;  %v1467_v27 = vadd.f32 %v5490_v52, %v1185_v32 }
 0x14d   : > { %v5469_v51 = vpop.f32.mrf.mxu0 }
 0x14e   : > { %v6662_v56 = vpop.f32.mrf.mxu1 }
 0x14f   : > { %v1167_v53 = vpop.f32.mrf.mxu0 }
 0x150   : > { %v6664_v58 = vpop.f32.mrf.mxu1  ;;  %v1186_v41 = vadd.f32 %v1167_v53, %v1015_v17 }
 0x151   : > { %v5470_v55 = vpop.f32.mrf.mxu0 }
 0x152   : > { %v6666_v62 = vpop.f32.mrf.mxu1 }
 0x153   : > { %v1170_v57 = vpop.f32.mrf.mxu0  ;;  %7239 = vst [vmem:[#allocation12_spill] sm:$0xff] %v6666_v62  ;;  %v1011_v62 = vadd.f32 %v980_v34, %v840_v20  ;;  %v6685_v34 = vld [vmem:[#allocation2] sm:$0xf] }
 0x154   : > { %v6668_v2 = vpop.f32.mrf.mxu1  ;;  %v2343_v29 = vshll.u32 %v6685_v34, 16 }
 0x155   : > { %7240 = vst [vmem:[#allocation13_spill] sm:$0xff] %v6668_v2  ;;  %v841_v2 = vadd.f32 %v812_v33, %v536_v24  ;;  %v1182_v1 = vadd.f32 %v1151_v45, %v1011_v62  ;;  %v1466_v33 = vadd.f32 %v5489_v48, %v1184_v60  ;;  %v2340_v45 = vshrl.u32 %v6685_v34, 16 }
 0x156   : > { %v1187_v62 = vadd.f32 %v1170_v57, %v1016_v37  ;;  %v6698_v53 = vrot.slane %v2343_v29, 5 }
 0x157   : > { %v1012_v30 = vadd.f32 %v983_v38, %v841_v2  ;;  %v1464_v13 = vadd.f32 %v1433_v50, %v1182_v1  ;;  %v1188_v38 = vadd.f32 %v5469_v51, %v1017_v36  ;;  %v6696_v51 = vrot.slane %v2340_v45, 4 }
 0x159   : > { %v1183_v43 = vadd.f32 %v1154_v49, %v1012_v30  ;;  %v1470_v44 = vadd.f32 %v6662_v56, %v1188_v38 }
 0x15b   : > { %v1465_v47 = vadd.f32 %v1436_v54, %v1183_v43  ;;  %v1468_v54 = vadd.f32 %v6664_v58, %v1186_v41 }
 0x15c   : > { %v7242_v14 = vld [vmem:[#allocation13_spill] sm:$0xff] }
 0x165   : > { %v5513_v61 = vpop.f32.mrf.mxu0 }
 0x166   : > { %v5537_v6 = vpop.f32.mrf.mxu1  ;;  %v1637_v22 = vadd.f32 %v5513_v61, %v1466_v33  ;;  %v1189_v61 = vadd.f32 %v5470_v55, %v1018_v35  ;;  %v2349_v33 = vshll.u32 %v6706_v31, 16 }
 0x167   : > { %v1604_v0 = vpop.f32.mrf.mxu0 }
 0x168   : > { %v1775_v15 = vpop.f32.mrf.mxu1  ;;  %v1635_v21 = vadd.f32 %v1604_v0, %v1464_v13  ;;  %v1808_v48 = vadd.f32 %v5537_v6, %v1637_v22 }
 0x169   : > { %v5514_v4 = vpop.f32.mrf.mxu0 }
 0x16a   : > { %v5538_v59 = vpop.f32.mrf.mxu1  ;;  %v1638_v49 = vadd.f32 %v5514_v4, %v1467_v27  ;;  %v1806_v52 = vadd.f32 %v1775_v15, %v1635_v21  ;;  %v1469_v15 = vadd.f32 %v7242_v14, %v1187_v62 }
 0x16b   : > { %v1607_v10 = vpop.f32.mrf.mxu0 }
 0x16c   : > { %v1778_v12 = vpop.f32.mrf.mxu1  ;;  %v1636_v40 = vadd.f32 %v1607_v10, %v1465_v47  ;;  %v1809_v55 = vadd.f32 %v5538_v59, %v1638_v49  ;;  %v7241_v10 = vld [vmem:[#allocation12_spill] sm:$0xff] }
 0x16d   : > { %v5517_v26 = vpop.f32.mrf.mxu0  ;;  %v1471_v11 = vadd.f32 %v7241_v10, %v1189_v61 }
 0x16e   : > { %v5541_v23 = vpop.f32.mrf.mxu1  ;;  %v1641_v19 = vadd.f32 %v5517_v26, %v1470_v44  ;;  %v1807_v20 = vadd.f32 %v1778_v12, %v1636_v40  ;;  %v2346_v12 = vor.u32 %v6698_v53, %v6696_v51 }
 0x16f   : > { %v1620_v63 = vpop.f32.mrf.mxu0 }
 0x170   : > { %v1791_v50 = vpop.f32.mrf.mxu1  ;;  %v1639_v24 = vadd.f32 %v1620_v63, %v1468_v54  ;;  %v1812_v26 = vadd.f32 %v5541_v23, %v1641_v19 }
 0x171   : > { %v5518_v9 = vpop.f32.mrf.mxu0 }
 0x172   : > { %v5542_v57 = vpop.f32.mrf.mxu1  ;;  %v1642_v25 = vadd.f32 %v5518_v9, %v1471_v11  ;;  %v1810_v32 = vadd.f32 %v1791_v50, %v1639_v24 }
 0x173   : > { %v1623_v39 = vpop.f32.mrf.mxu0 }
 0x174   : > { %v1640_v1 = vadd.f32 %v1623_v39, %v1469_v15  ;;  %v1794_v58 = vpop.f32.mrf.mxu1  ;;  %v1813_v9 = vadd.f32 %v5542_v57, %v1642_v25 }
 0x176   : > { %v1811_v13 = vadd.f32 %v1794_v58, %v1640_v1 }
 0x185   : > { %v5561_v2 = vpop.f32.mrf.mxu0 }
 0x186   : > { %v2090_v0 = vadd.f32 %v5561_v2, %v1808_v48  ;;  %v6787_v48 = vld [vmem:[#allocation2] sm:$0xe] }
 0x187   : > { %v2057_v46 = vpop.f32.mrf.mxu0 }
 0x188   : > { %v2105_v4 = vadd.f32 %v6693_v42, %v2090_v0  ;;  %v2088_v6 = vadd.f32 %v2057_v46, %v1806_v52 }
 0x189   : > { %v5562_v56 = vpop.f32.mrf.mxu0 }
 0x18a   : > { %v2113_v60 = vmax.f32 %v2105_v4, 0.0  ;;  %v2103_v3 = vadd.f32 %v6693_v42, %v2088_v6  ;;  %v2091_v7 = vadd.f32 %v5562_v56, %v1809_v55 }
 0x18b   : > { %v2060_v59 = vpop.f32.mrf.mxu0 }
 0x18c   : > { %v5085_v5 = vpack.c.bf16 %v2113_v60, %v2113_v60  ;;  %v2111_v16 = vmax.f32 %v2103_v3, 0.0  ;;  %v2106_v28 = vadd.f32 %v6693_v42, %v2091_v7  ;;  %v2089_v30 = vadd.f32 %v2060_v59, %v1807_v20 }
 0x18d   : > { %v5565_v63 = vpop.f32.mrf.mxu0 }
 0x18e   : > { %v2158_v8 = vshrl.u32 %v5085_v5, 16  ;;  %v5083_v18 = vpack.c.bf16 %v2111_v16, %v2111_v16  ;;  %v2114_v43 = vmax.f32 %v2106_v28, 0.0  ;;  %v2104_v22 = vadd.f32 %v6693_v42, %v2089_v30 }
 0x18f   : > { %v2094_v36 = vadd.f32 %v5565_v63, %v1812_v26  ;;  %v2073_v45 = vpop.f32.mrf.mxu0  ;;  %v2161_v27 = vshll.u32 %v5085_v5, 16 }
 0x190   : > { %v2160_v17 = vrot.slane %v2158_v8, 7  ;;  %v2144_v23 = vshrl.u32 %v5083_v18, 16  ;;  %v5086_v21 = vpack.c.bf16 %v2114_v43, %v2114_v43  ;;  %v2147_v35 = vshll.u32 %v5083_v18, 16 }
 0x191   : > { %v2112_v37 = vmax.f32 %v2104_v22, 0.0  ;;  %v2109_v38 = vadd.f32 %v6693_v42, %v2094_v36  ;;  %v2092_v47 = vadd.f32 %v2073_v45, %v1810_v32  ;;  %v5566_v39 = vpop.f32.mrf.mxu0  ;;  %v6745_v43 = vrot.slane %v2346_v12, 4 }
 0x192   : > { %v2163_v41 = vor.u32 %v2161_v27, %v2160_v17  ;;  %v2146_v49 = vrot.slane %v2144_v23, 7  ;;  %v2165_v50 = vshrl.u32 %v5086_v21, 16  ;;  %v2168_v61 = vshll.u32 %v5086_v21, 16 }
 0x193   : > { %v5084_v62 = vpack.c.bf16 %v2112_v37, %v2112_v37  ;;  %v2117_v40 = vmax.f32 %v2109_v38, 0.0  ;;  %v2107_v2 = vadd.f32 %v6693_v42, %v2092_v47  ;;  %v2095_v52 = vadd.f32 %v5566_v39, %v1813_v9  ;;  %v2076_v0 = vpop.f32.mrf.mxu0 }
 0x194   : > { %v2212_v44 = vsel %vm6714_vm7, 0, %v2163_v41  ;;  %v2149_v46 = vor.u32 %v2147_v35, %v2146_v49  ;;  %v2167_v54 = vrot.slane %v2165_v50, 7  ;;  %v2093_v55 = vadd.f32 %v2076_v0, %v1811_v13  ;;  %v6052_v41 = vld [vmem:[#allocation3 + $0x230] sm:$0xff]  }
 0x195   : > { %v2223_v57 = vsel %vm6721_vm8, %v2212_v44, 0  ;;  %v2151_v4 = vshrl.u32 %v5084_v62, 16  ;;  %v2154_v6 = vshll.u32 %v5084_v62, 16  ;;  %v5089_v10 = vpack.c.bf16 %v2117_v40, %v2117_v40 }
 0x196   : > { %v4906_v11 = vcombine.low %v2223_v57, %v2223_v57  ;;  %v4907_v14 = vcombine.high %v2223_v57, %v2223_v57  ;;  %v2210_v15 = vsel %vm6714_vm7, 0, %v2149_v46  ;;  %v2170_v19 = vor.u32 %v2168_v61, %v2167_v54 }
 0x197   : > { %v2221_v20 = vsel %vm6721_vm8, %v2210_v15, 0  ;;  %v2153_v56 = vrot.slane %v2151_v4, 7  ;;  %v2186_v24 = vshrl.u32 %v5089_v10, 16  ;;  %v2189_v60 = vshll.u32 %v5089_v10, 16 }
 0x198   : > { %2295 = vst [vmem:[#allocation2 + $0x18] sm:$0xf] %v4906_v11  ;;  %2296 = vst [vmem:[#allocation2 + $0x1c] sm:$0xf] %v4907_v14  ;;  %v4902_v3 = vcombine.low %v2221_v20, %v2221_v20  ;;  %v4903_v7 = vcombine.high %v2221_v20, %v2221_v20  ;;  %v2213_v25 = vsel %vm6714_vm7, 0, %v2170_v19  ;;  %v2115_v1 = vmax.f32 %v2107_v2, 0.0 }
 0x199   : > { %v2224_v59 = vsel %vm6721_vm8, %v2213_v25, 0  ;;  %v2156_v58 = vor.u32 %v2154_v6, %v2153_v56  ;;  %v2188_v5 = vrot.slane %v2186_v24, 7  ;;  %v2110_v16 = vadd.f32 %v6693_v42, %v2095_v52 }
 0x19a   : > { %2291 = vst [vmem:[#allocation2 + $0x8] sm:$0xf] %v4902_v3  ;;  %2292 = vst [vmem:[#allocation2 + $0xc] sm:$0xf] %v4903_v7  ;;  %v4908_v28 = vcombine.low %v2224_v59, %v2224_v59  ;;  %v4909_v30 = vcombine.high %v2224_v59, %v2224_v59  ;;  %v5087_v26 = vpack.c.bf16 %v2115_v1, %v2115_v1 }
 0x19b   : > { %v2108_v63 = vadd.f32 %v6693_v42, %v2093_v55  ;;  %v2211_v32 = vsel %vm6714_vm7, 0, %v2156_v58  ;;  %v2191_v8 = vor.u32 %v2189_v60, %v2188_v5  ;;  %v2118_v18 = vmax.f32 %v2110_v16, 0.0 }
 0x19c   : > { %2297 = vst [vmem:[#allocation2 + $0x20] sm:$0xf] %v4908_v28  ;;  %2298 = vst [vmem:[#allocation2 + $0x24] sm:$0xf] %v4909_v30  ;;  %v2222_v9 = vsel %vm6721_vm8, %v2211_v32, 0  ;;  %v2172_v13 = vshrl.u32 %v5087_v26, 16 }
 0x19d   : > { %v2116_v22 = vmax.f32 %v2108_v63, 0.0  ;;  %v6751_v42 = vrot.slane %v2349_v33, 5  ;;  %v4904_v36 = vcombine.low %v2222_v9, %v2222_v9  ;;  %v4905_v45 = vcombine.high %v2222_v9, %v2222_v9 }
 0x19e   : > { %v2216_v17 = vsel %vm6714_vm7, 0, %v2191_v8  ;;  %v5090_v27 = vpack.c.bf16 %v2118_v18, %v2118_v18  ;;  %v2174_v53 = vrot.slane %v2172_v13, 7  ;;  %v2175_v12 = vshll.u32 %v5087_v26, 16  ;;  %v5993_v8 = vld [vmem:[#allocation3 + $0xf0] sm:$0xff]  }
 0x19f   : > { %v2227_v51 = vsel %vm6721_vm8, %v2216_v17, 0  ;;  %v5088_v23 = vpack.c.bf16 %v2116_v22, %v2116_v22  ;;  %2293 = vst [vmem:[#allocation2 + $0x10] sm:$0xf] %v4904_v36  ;;  %2294 = vst [vmem:[#allocation2 + $0x14] sm:$0xf] %v4905_v45  ;;  %v2352_v49 = vsel %vm6369_vm2, %v6745_v43, %v6751_v42 }
 0x1a0   : > { %v4914_v21 = vcombine.low %v2227_v51, %v2227_v51  ;;  %v4915_v35 = vcombine.high %v2227_v51, %v2227_v51  ;;  %v2193_v37 = vshrl.u32 %v5090_v27, 16  ;;  %v2310_v38 = vld [vmem:[#allocation2 + $0x18] sm:$0xf]  ;;  %v2177_v33 = vor.u32 %v2175_v12, %v2174_v53  ;;  %v6781_v28 = vld [vmem:[#allocation2 + $0x1c] sm:$0x1] }
 0x1a1   : > { %v2179_v47 = vshrl.u32 %v5088_v23, 16  ;;  %v2382_v39 = vshrl.u32 %v2310_v38, 16  ;;  %v2196_v61 = vshll.u32 %v5090_v27, 16  ;;  %v2182_v62 = vshll.u32 %v5088_v23, 16  ;;  %v2308_v40 = vld [vmem:[#allocation2 + $0x8] sm:$0xf] }
 0x1a2   : > { %2303 = vst [vmem:[#allocation2 + $0x38] sm:$0xf] %v4914_v21  ;;  %2304 = vst [vmem:[#allocation2 + $0x3c] sm:$0xf] %v4915_v35  ;;  %v2195_v50 = vrot.slane %v2193_v37, 7  ;;  %v2385_v2 = vshll.u32 %v2310_v38, 16  ;;  %v4930_v57 = vcombine.low %v6685_v34, %v2308_v40 }
 0x1a3   : > { %v2214_v52 = vsel %vm6714_vm7, 0, %v2177_v33  ;;  %v2181_v0 = vrot.slane %v2179_v47, 7  ;;  %v2354_v44 = vshrl.u32 %v2308_v40, 16  ;;  %v2357_v46 = vshll.u32 %v2308_v40, 16  ;;  %v6766_v6 = vld [vmem:[#allocation2 + $0x20] sm:$0xf] }
 0x1a4   : > { %v2225_v54 = vsel %vm6721_vm8, %v2214_v52, 0  ;;  %v2198_v55 = vor.u32 %v2196_v61, %v2195_v50  ;;  %v2384_v4 = vrot.slane %v2382_v39, 4  ;;  %v6768_v10 = vld [vmem:[#allocation2 + $0xc] sm:$0x1]  ;;  %5607 = vmatprep.mubr.bf16.mxu0 %v4930_v57  ;;  %v2387_v24 = vrot.slane %v2385_v2, 5  ;;  %v7248_v53 = vld [vmem:[#allocation10_spill] sm:$0xff] }
 0x1a5   : > { %v4910_v11 = vcombine.low %v2225_v54, %v2225_v54  ;;  %v4911_v14 = vcombine.high %v2225_v54, %v2225_v54  ;;  %v2184_v15 = vor.u32 %v2182_v62, %v2181_v0  ;;  %v2356_v19 = vrot.slane %v2354_v44, 4  ;;  %v6796_v33 = vld [vmem:[#allocation2 + $0x24] sm:$0x1]  ;;  %v5996_v61 = vld [vmem:[#allocation3 + $0xe8] sm:$0xff]  }
 0x1a6   : > { %v2217_v20 = vsel %vm6714_vm7, 0, %v2198_v55  ;;  %v2359_v56 = vrot.slane %v2357_v46, 5  ;;  %v2396_v60 = vshrl.u32 %v6766_v6, 16  ;;  %v2309_v7 = vld [vmem:[#allocation2 + $0x10] sm:$0xf]  ;;  %v2399_v25 = vshll.u32 %v6766_v6, 16 }
 0x1a7   : > { %2299 = vst [vmem:[#allocation2 + $0x28] sm:$0xf] %v4910_v11  ;;  %2300 = vst [vmem:[#allocation2 + $0x2c] sm:$0xf] %v4911_v14  ;;  %v2228_v34 = vsel %vm6721_vm8, %v2217_v20, 0  ;;  %v2215_v3 = vsel %vm6714_vm7, 0, %v2184_v15  ;;  %v4931_v32 = vcombine.low %v2309_v7, %v2310_v38  ;;  %v2388_v21 = vor.u32 %v2387_v24, %v2384_v4 }
 0x1a8   : > { %v2363_v1 = vshll.u32 %v6768_v10, 16  ;;  %v4916_v59 = vcombine.low %v2228_v34, %v2228_v34  ;;  %v4917_v58 = vcombine.high %v2228_v34, %v2228_v34  ;;  %v2226_v5 = vsel %vm6721_vm8, %v2215_v3, 0  ;;  %v6785_v18 = vld [vmem:[#allocation2 + $0x14] sm:$0x1] }
 0x1a9   : > { %v2368_v16 = vshrl.u32 %v2309_v7, 16  ;;  %v4912_v30 = vcombine.low %v2226_v5, %v2226_v5  ;;  %v4913_v26 = vcombine.high %v2226_v5, %v2226_v5  ;;  %v2371_v63 = vshll.u32 %v2309_v7, 16  ;;  %v6783_v29 = vld [vmem:[#allocation2 + $0x38] sm:$0xf]  ;;  %5608 = vmatmul.mubr.bf16.vlgmr.msra.gmra.mxu0 %v4931_v32  ;;  %v6002_v32 = vld [vmem:[#allocation3 + $0xd8] sm:$0xff]  }
 0x1aa   : > { %2305 = vst [vmem:[#allocation2 + $0x40] sm:$0xf] %v4916_v59  ;;  %2306 = vst [vmem:[#allocation2 + $0x44] sm:$0xf] %v4917_v58  ;;  %v2398_v13 = vrot.slane %v2396_v60, 4  ;;  %v2401_v22 = vrot.slane %v2399_v25, 5  ;;  %v2360_v36 = vor.u32 %v2359_v56, %v2356_v19  ;;  %5640 = vmatpush3.bf16.msra.mxu0 %v7248_v53 }
 0x1ab   : > { %v2370_v9 = vrot.slane %v2368_v16, 4  ;;  %2301 = vst [vmem:[#allocation2 + $0x30] sm:$0xf] %v4912_v30  ;;  %2302 = vst [vmem:[#allocation2 + $0x34] sm:$0xf] %v4913_v26  ;;  %v2373_v45 = vrot.slane %v2371_v63, 5  ;;  %5641 = vmatprep.subr.bf16.mxu0 %v5993_v8 }
 0x1ac   : > { %v2365_v17 = vrot.slane %v2363_v1, 5  ;;  %v2438_v27 = vshrl.u32 %v6783_v29, 16  ;;  %v2441_v51 = vshll.u32 %v6783_v29, 16  ;;  %v2361_v12 = vrot.slane %v2360_v36, 4  ;;  %v6000_v19 = vld [vmem:[#allocation3 + $0xe0] sm:$0xff]  }
 0x1ad   : > { %v2377_v23 = vshll.u32 %v6785_v18, 16  ;;  %v2391_v35 = vshll.u32 %v6781_v28, 16  ;;  %v2374_v38 = vor.u32 %v2373_v45, %v2370_v9  ;;  %v4942_v47 = vrot.slane %v6787_v48, 9  ;;  %v2735_v1 = vld [vmem:[#allocation2 + $0x8] sm:$0xe]  ;;  %v6006_v48 = vld [vmem:[#allocation3 + $0xc8] sm:$0xff]  }
 0x1ae   : > { %v6794_v37 = vrot.slane %v2438_v27, 4  ;;  %v2312_v39 = vld [vmem:[#allocation2 + $0x28] sm:$0xf]  ;;  %v2366_v50 = vsel %vm6369_vm2, %v2361_v12, %v2365_v17  ;;  %v2443_v62 = vrot.slane %v2441_v51, 5  ;;  %v2389_v40 = vrot.slane %v2388_v21, 4  ;;  %5642 = vmatpush3.bf16.msra.mxu0 %v5993_v8 }
 0x1af   : > { %v2402_v2 = vor.u32 %v2401_v22, %v2398_v13  ;;  %v2410_v52 = vshrl.u32 %v2312_v39, 16  ;;  %v2413_v0 = vshll.u32 %v2312_v39, 16  ;;  %v4932_v44 = vcombine.low %v6766_v6, %v2312_v39  ;;  %v6807_v54 = vld [vmem:[#allocation2 + $0x2c] sm:$0x1]  ;;  %v6810_v6 = vld [vmem:[#allocation2 + $0x3c] sm:$0x1]  ;;  %5643 = vmatprep.subr.bf16.mxu0 %v5996_v61 }
 0x1b0   : > { %v4918_v46 = vcombine.low %v2352_v49, %v2366_v50  ;;  %v2375_v55 = vrot.slane %v2374_v38, 4  ;;  %v2379_v57 = vrot.slane %v2377_v23, 5  ;;  %v2393_v4 = vrot.slane %v2391_v35, 5  ;;  %v6001_v49 = vld [vmem:[#allocation3 + $0xb0] sm:$0xff]   ;;  %v5999_v59 = vld [vmem:[#allocation2 + $0x8] ss:$8 sps:$4 sm:$0xff]  }
 0x1b1   : > { %v2405_v11 = vshll.u32 %v6796_v33, 16  ;;  %v2412_v14 = vrot.slane %v2410_v52, 4  ;;  %v2415_v15 = vrot.slane %v2413_v0, 5  ;;  %5611 = vmatprep.mubr.bf16.mxu0 %v4932_v44  ;;  %v2419_v56 = vshll.u32 %v6807_v54, 16  ;;  %v7249_v13 = vld [vmem:[#allocation11_spill] sm:$0xff]  ;;  %v6008_v52 = vld [vmem:[#allocation3 + $0xc0] sm:$0xff]  }
 0x1b2   : > { %5583 = vmatprep.mubr.bf16.mxu1 %v4918_v46  ;;  %v2313_v20 = vld [vmem:[#allocation2 + $0x30] sm:$0xf]  ;;  %v2380_v43 = vsel %vm6369_vm2, %v2375_v55, %v2379_v57  ;;  %v2394_v42 = vsel %vm6369_vm2, %v2389_v40, %v2393_v4  ;;  %v6817_v24 = vld [vmem:[#allocation2 + $0x34] sm:$0x1]  ;;  %v2444_v60 = vor.u32 %v2443_v62, %v6794_v37  ;;  %5644 = vmatpush3.bf16.msra.mxu0 %v5996_v61  ;;  %v2403_v58 = vrot.slane %v2402_v2, 4  ;;  %v6004_v37 = vld [vmem:[#allocation3 + $0xd0] sm:$0xff]  }
 0x1b3   : > { %v2424_v34 = vshrl.u32 %v2313_v20, 16  ;;  %v2427_v3 = vshll.u32 %v2313_v20, 16  ;;  %v4933_v7 = vcombine.low %v2313_v20, %v6783_v29  ;;  %v4919_v25 = vcombine.low %v2380_v43, %v2394_v42  ;;  %5645 = vmatprep.subr.bf16.mxu0 %v6000_v19  ;;  %v6005_v40 = vld [vmem:[#allocation3 + $0xa0] sm:$0xff]   ;;  %v6009_v0 = vld [vmem:[#allocation3 + $0x90] sm:$0xff]   ;;  %v6011_v44 = vld [vmem:[#allocation3 + $0x178] sm:$0xff]  }
 0x1b4   : > { %v2407_v5 = vrot.slane %v2405_v11, 5  ;;  %v2416_v16 = vor.u32 %v2415_v15, %v2412_v14  ;;  %v2763_v30 = vrot.slane %v6706_v31, 5  ;;  %v2433_v8 = vshll.u32 %v6817_v24, 16  ;;  %v6003_v31 = vld [vmem:[#allocation3 + $0xa8] sm:$0xff]   ;;  %v3119_v57 = vld [vmem:[#allocation2 + $0x10] sm:$0xf] }
 0x1b5   : > { %v2426_v26 = vrot.slane %v2424_v34, 4  ;;  %v2429_v63 = vrot.slane %v2427_v3, 5  ;;  %5612 = vmatmul.mubr.bf16.gmra.mxu0 %v4933_v7  ;;  %5584 = vmatmul.mubr.bf16.vlgmr.msra.gmra.mxu1 %v4919_v25  ;;  %v2447_v9 = vshll.u32 %v6810_v6, 16  ;;  %v2421_v22 = vrot.slane %v2419_v56, 5  ;;  %v6012_v46 = vld [vmem:[#allocation3 + $0x88] sm:$0xff]   ;;  %v6014_v4 = vld [vmem:[#allocation3 + $0x170] sm:$0xff]  }
 0x1b6   : > { %5616 = vmatpush3.bf16.msra.mxu1 %v7249_v13  ;;  %5655 = vmatprep.mubr.bf16.mxu0 %v5999_v59  ;;  %v2417_v29 = vrot.slane %v2416_v16, 4  ;;  %v4943_v36 = vrot.slane %v2735_v1, 9  ;;  %v2767_v45 = vrot.slane %v6768_v10, 5  ;;  %v2445_v27 = vrot.slane %v2444_v60, 4  ;;  %v6010_v55 = vld [vmem:[#allocation2 + $0x18] ss:$8 sps:$4 sm:$0xff]  }
 0x1b7   : > { %5617 = vmatprep.subr.bf16.mxu1 %v6001_v49  ;;  %v2430_v17 = vor.u32 %v2429_v63, %v2426_v26  ;;  %5646 = vmatpush3.bf16.msra.mxu0 %v6000_v19  ;;  %v2408_v51 = vsel %vm6369_vm2, %v2403_v58, %v2407_v5  ;;  %v2435_v21 = vrot.slane %v2433_v8, 5  ;;  %v2449_v35 = vrot.slane %v2447_v9, 5  ;;  %v6846_v11 = vld [vmem:[#allocation2 + $0x14] sm:$0x1]  ;;  %v3400_v14 = vld [vmem:[#allocation2 + $0x10] sm:$0xe] }
 0x1b8   : > { %v2422_v53 = vsel %vm6369_vm2, %v2417_v29, %v2421_v22  ;;  %5647 = vmatprep.subr.bf16.mxu0 %v6002_v32  ;;  %v2764_v38 = vsel %vm6832_vm11, %v4942_v47, %v2763_v30  ;;  %v2768_v39 = vsel %vm6832_vm11, %v4943_v36, %v2767_v45  ;;  %v6007_v47 = vld [vmem:[#allocation3 + $0x98] sm:$0xff]   ;;  %v2736_v15 = vld [vmem:[#allocation2 + $0x10] sm:$0xe]  ;;  %v3151_v56 = vshll.u32 %v3119_v57, 16  ;;  %v2737_v25 = vld [vmem:[#allocation2 + $0x18] sm:$0xe] }
 0x1b9   : > { %v4920_v12 = vcombine.low %v2408_v51, %v2422_v53  ;;  %v2431_v23 = vrot.slane %v2430_v17, 4  ;;  %v2450_v61 = vsel %vm6369_vm2, %v2445_v27, %v2449_v35  ;;  %v4950_v2 = vcombine.low %v2764_v38, %v2768_v39  ;;  %v6848_v19 = vld [vmem:[#allocation2 + $0xc] sm:$0x1]  ;;  %v3117_v20 = vld [vmem:[#allocation2 + $0x8] sm:$0xf]  ;;  %v6015_v7 = vld [vmem:[#allocation3 + $0x80] sm:$0xff]  }
 0x1ba   : > { %5618 = vmatpush3.bf16.msra.mxu1 %v6001_v49  ;;  %v6013_v43 = vld [vmem:[#allocation2 + $0x28] ss:$8 sps:$4 sm:$0xff]   ;;  %v3148_v49 = vshrl.u32 %v3119_v57, 16  ;;  %v4987_v60 = vrot.slane %v3400_v14, 9  ;;  %v3429_v34 = vrot.slane %v6846_v11, 5  ;;  %v3134_v1 = vshrl.u32 %v3117_v20, 16 }
 0x1bb   : > { %5587 = vmatprep.mubr.bf16.mxu1 %v4920_v12  ;;  %5619 = vmatprep.subr.bf16.mxu1 %v6003_v31  ;;  %v2436_v50 = vsel %vm6369_vm2, %v2431_v23, %v2435_v21  ;;  %v3399_v42 = vld [vmem:[#allocation2 + $0x8] sm:$0xe]  ;;  %v3137_v59 = vshll.u32 %v3117_v20, 16  ;;  %v4944_v58 = vrot.slane %v2736_v15, 9  ;;  %v2771_v5 = vrot.slane %v6785_v18, 5  ;;  %v6017_v63 = vld [vmem:[#allocation3 + $0x168] sm:$0xff]  }
 0x1bc   : > { %5648 = vmatpush3.bf16.msra.mxu0 %v6002_v32  ;;  %v4921_v62 = vcombine.low %v2436_v50, %v2450_v61  ;;  %v2739_v3 = vld [vmem:[#allocation2 + $0x28] sm:$0xe]  ;;  %v4986_v16 = vrot.slane %v3399_v42, 9  ;;  %v3425_v30 = vrot.slane %v6848_v19, 5  ;;  %v2738_v26 = vld [vmem:[#allocation2 + $0x20] sm:$0xe]  ;;  %v3430_v36 = vsel %vm6832_vm11, %v4987_v60, %v3429_v34 }
 0x1bd   : > { %5649 = vmatprep.subr.bf16.mxu0 %v6004_v37  ;;  %v4947_v32 = vrot.slane %v2739_v3, 9  ;;  %v2783_v8 = vrot.slane %v6807_v54, 5  ;;  %v3150_v9 = vrot.slane %v3148_v49, 4  ;;  %v3153_v13 = vrot.slane %v3151_v56, 5  ;;  %v6018_v18 = vld [vmem:[#allocation3 + $0x138] sm:$0xff]   ;;  %v6019_v23 = vld [vmem:[#allocation3 + $0x160] sm:$0xff]  }
 0x1be   : > { %5588 = vmatmul.mubr.bf16.gmra.mxu1 %v4921_v62  ;;  %v4945_v29 = vrot.slane %v2737_v25, 9  ;;  %v2775_v22 = vrot.slane %v6781_v28, 5  ;;  %v4946_v45 = vrot.slane %v2738_v26, 9  ;;  %v3136_v17 = vrot.slane %v3134_v1, 4  ;;  %v6016_v51 = vld [vmem:[#allocation2 + $0x38] ss:$8 sps:$4 sm:$0xff]  }
 0x1bf   : > { %5620 = vmatpush3.bf16.msra.mxu1 %v6003_v31  ;;  %5631 = vmatprep.mubr.bf16.mxu1 %v4950_v2  ;;  %v2779_v31 = vrot.slane %v6796_v33, 5  ;;  %v3139_v27 = vrot.slane %v3137_v59, 5  ;;  %v2772_v54 = vsel %vm6832_vm11, %v4944_v58, %v2771_v5  ;;  %v3426_v53 = vsel %vm6832_vm11, %v4986_v16, %v3425_v30  ;;  %v2740_v21 = vld [vmem:[#allocation2 + $0x30] sm:$0xe]  ;;  %v6020_v50 = vld [vmem:[#allocation3 + $0x130] sm:$0xff]   ;;  %v6025_v26 = vld [vmem:[#allocation3 + $0x148] sm:$0xff]  }
 0x1c0   : > { %5621 = vmatprep.subr.bf16.mxu1 %v6005_v40  ;;  %5650 = vmatpush3.bf16.msra.mxu0 %v6004_v37  ;;  %v4994_v28 = vcombine.low %v3426_v53, %v3430_v36  ;;  %v2784_v12 = vsel %vm6832_vm11, %v4947_v32, %v2783_v8  ;;  %v3154_v35 = vor.u32 %v3153_v13, %v3150_v9  ;;  %v2741_v37 = vld [vmem:[#allocation2 + $0x38] sm:$0xe]  ;;  %v3157_v62 = vshll.u32 %v6846_v11, 16  ;;  %v6023_v20 = vld [vmem:[#allocation3 + $0x150] sm:$0xff]   ;;  %v6882_v49 = vld [vmem:[#allocation2 + $0x2c] sm:$0x1] }
 0x1c1   : > { %5651 = vmatprep.subr.bf16.mxu0 %v6006_v48  ;;  %v2776_v33 = vsel %vm6832_vm11, %v4945_v29, %v2775_v22  ;;  %v2780_v39 = vsel %vm6832_vm11, %v4946_v45, %v2779_v31  ;;  %v3140_v61 = vor.u32 %v3139_v27, %v3136_v17  ;;  %v4948_v2 = vrot.slane %v2740_v21, 9  ;;  %v3401_v14 = vld [vmem:[#allocation2 + $0x18] sm:$0xe]  ;;  %v3403_v56 = vld [vmem:[#allocation2 + $0x28] sm:$0xe]  ;;  %v6024_v3 = vld [vmem:[#allocation3 + $0x120] sm:$0xff]  }
 0x1c2   : > { %v4951_v38 = vcombine.low %v2772_v54, %v2776_v33  ;;  %v6886_v25 = vld [vmem:[#allocation2 + $0x34] sm:$0x1]  ;;  %v3404_v1 = vld [vmem:[#allocation2 + $0x30] sm:$0xe]  ;;  %v3441_v32 = vrot.slane %v6882_v49, 5  ;;  %v6026_v36 = vld [vmem:[#allocation3 + $0x118] sm:$0xff]  }
 0x1c3   : > { %5622 = vmatpush3.bf16.msra.mxu1 %v6005_v40  ;;  %v4952_v40 = vcombine.low %v2780_v39, %v2784_v12  ;;  %v3141_v57 = vrot.slane %v3140_v61, 4  ;;  %v3780_v30 = vld [vmem:[#allocation2 + $0x10] sm:$0xf]  ;;  %v3123_v8 = vld [vmem:[#allocation2 + $0x20] sm:$0xf]  ;;  %v4991_v9 = vrot.slane %v3404_v1, 9 }
 0x1c4   : > { %5623 = vmatprep.subr.bf16.mxu1 %v6007_v47  ;;  %5652 = vmatpush3.bf16.msra.mxu0 %v6006_v48  ;;  %v2787_v48 = vrot.slane %v6817_v24, 5  ;;  %v6874_v24 = vld [vmem:[#allocation2 + $0x1c] sm:$0x1]  ;;  %v3445_v13 = vrot.slane %v6886_v25, 5  ;;  %v3782_v29 = vld [vmem:[#allocation2 + $0x18] sm:$0xf] }
 0x1c5   : > { %5653 = vmatprep.subr.bf16.mxu0 %v6008_v52  ;;  %v3433_v58 = vrot.slane %v6874_v24, 5  ;;  %v3127_v22 = vld [vmem:[#allocation2 + $0x30] sm:$0xf]  ;;  %v3121_v45 = vld [vmem:[#allocation2 + $0x18] sm:$0xf]  ;;  %v3797_v31 = vshrl.u32 %v3780_v30, 16 }
 0x1c6   : > { %v2788_v11 = vsel %vm6832_vm11, %v4948_v2, %v2787_v48  ;;  %v3800_v17 = vshll.u32 %v3780_v30, 16  ;;  %v6900_v54 = vld [vmem:[#allocation2 + $0x44] sm:$0x1]  ;;  %v3176_v53 = vshrl.u32 %v3123_v8, 16  ;;  %v3125_v12 = vld [vmem:[#allocation2 + $0x28] sm:$0xf] }
 0x1c7   : > { %5624 = vmatpush3.bf16.msra.mxu1 %v6007_v47  ;;  %v6021_v47 = vld [vmem:[#allocation3 + $0x158] sm:$0xff]   ;;  %v3811_v21 = vshrl.u32 %v3782_v29, 16  ;;  %v3204_v33 = vshrl.u32 %v3127_v22, 16  ;;  %v3162_v61 = vshrl.u32 %v3121_v45, 16  ;;  %v6906_v2 = vld [vmem:[#allocation2 + $0x38] sm:$0xe] }
 0x1c8   : > { %5625 = vmatprep.subr.bf16.mxu1 %v6009_v0  ;;  %5654 = vmatpush3.bf16.msra.mxu0 %v6008_v52  ;;  %v3143_v52 = vshll.u32 %v6848_v19, 16  ;;  %v3799_v48 = vrot.slane %v3797_v31, 4  ;;  %v6070_v10 = vld [vmem:[%s6301_s30 + $0x108] ss:$8 sps:$4 sm:$0xff]  }
 0x1c9   : > { %5687 = vmatprep.subr.bf16.mxu0 %v6011_v44 }
 0x1ca   : > { %v3145_v15 = vrot.slane %v3143_v52, 5  ;;  %v3190_v52 = vshrl.u32 %v3125_v12, 16 }
 0x1cb   : > { %5626 = vmatpush3.bf16.msra.mxu1 %v6009_v0  ;;  %5656 = vmatmul.mubr.bf16.vlgmr.msra.gmra.mxu0 %v6010_v55  ;;  %v3155_v0 = vrot.slane %v3154_v35, 4  ;;  %v6022_v55 = vld [vmem:[#allocation3 + $0x128] sm:$0xff]   ;;  %v3814_v35 = vshll.u32 %v3782_v29, 16 }
 0x1cc   : > { %5627 = vmatprep.subr.bf16.mxu1 %v6012_v46  ;;  %5659 = vmatprep.mubr.bf16.mxu0 %v6013_v43  ;;  %v6878_v43 = vld [vmem:[#allocation2 + $0x24] sm:$0x1]  ;;  %v3146_v34 = vsel %vm6369_vm2, %v3141_v57, %v3145_v15  ;;  %v3178_v57 = vrot.slane %v3176_v53, 4  ;;  %v3206_v15 = vrot.slane %v3204_v33, 4 }
 0x1cd   : > { %5688 = vmatpush3.bf16.msra.mxu0 %v6011_v44  ;;  %v4949_v44 = vrot.slane %v2741_v37, 9  ;;  %v3437_v16 = vrot.slane %v6878_v43, 5  ;;  %v3207_v37 = vshll.u32 %v3127_v22, 16 }
 0x1ce   : > { %5689 = vmatprep.subr.bf16.mxu0 %v6014_v4 }
 0x1cf   : > { %5628 = vmatpush3.bf16.msra.mxu1 %v6012_v46  ;;  %v2791_v46 = vrot.slane %v6810_v6, 5  ;;  %v3402_v6 = vld [vmem:[#allocation2 + $0x20] sm:$0xe] }
 0x1d0   : > { %5629 = vmatprep.subr.bf16.mxu1 %v6015_v7  ;;  %v4989_v5 = vrot.slane %v3402_v6, 9 }
 0x1d1   : > { %5690 = vmatpush3.bf16.msra.mxu0 %v6014_v4  ;;  %v3159_v4 = vrot.slane %v3157_v62, 5  ;;  %v2792_v42 = vsel %vm6832_vm11, %v4949_v44, %v2791_v46  ;;  %v3165_v62 = vshll.u32 %v3121_v45, 16  ;;  %v6908_v44 = vld [vmem:[#allocation2 + $0x3c] sm:$0x1]  ;;  %v3185_v45 = vshll.u32 %v6878_v43, 16 }
 0x1d2   : > { %5691 = vmatprep.subr.bf16.mxu0 %v6017_v63  ;;  %v4953_v60 = vcombine.low %v2788_v11, %v2792_v42  ;;  %v3813_v11 = vrot.slane %v3811_v21, 4  ;;  %v4992_v42 = vrot.slane %v6906_v2, 9  ;;  %v6033_v43 = vld [vmem:[#allocation3 + $0x1e8] sm:$0xff]  }
 0x1d3   : > { %5630 = vmatpush3.bf16.msra.mxu1 %v6015_v7  ;;  %5660 = vmatmul.mubr.bf16.gmra.mxu0 %v6016_v51  ;;  %v3160_v19 = vsel %vm6369_vm2, %v3155_v0, %v3159_v4  ;;  %v4988_v7 = vrot.slane %v3401_v14, 9  ;;  %v6898_v51 = vsel %vm6832_vm11, %v4989_v5, %v3437_v16  ;;  %v3193_v0 = vshll.u32 %v3125_v12, 16  ;;  %v3129_v5 = vld [vmem:[#allocation2 + $0x38] sm:$0xf] }
 0x1d4   : > { %5663 = vmatprep.subr.bf16.mxu1 %v6018_v18  ;;  %5703 = vmatprep.mubr.bf16.mxu0 %v4994_v28  ;;  %v4974_v59 = vcombine.low %v3146_v34, %v3160_v19  ;;  %v3179_v28 = vshll.u32 %v3123_v8, 16  ;;  %v3816_v14 = vrot.slane %v3814_v35, 5  ;;  %v3209_v19 = vrot.slane %v3207_v37, 5  ;;  %v6914_v34 = vld [vmem:[#allocation2 + $0x14] sm:$0x1]  ;;  %v6031_v8 = vld [vmem:[#allocation3 + $0x1f0] sm:$0xff]  }
 0x1d5   : > { %5692 = vmatpush3.bf16.msra.mxu0 %v6017_v63  ;;  %v4990_v63 = vrot.slane %v3403_v56, 9  ;;  %v6894_v27 = vsel %vm6832_vm11, %v4988_v7, %v3433_v58  ;;  %v3164_v56 = vrot.slane %v3162_v61, 4  ;;  %v3449_v7 = vrot.slane %v6908_v44, 5 }
 0x1d6   : > { %5632 = vmatmul.mubr.bf16.vlgmr.msra.gmra.mxu1 %v4951_v38  ;;  %5693 = vmatprep.subr.bf16.mxu0 %v6019_v23  ;;  %v6028_v38 = vld [vmem:[#allocation3 + $0x110] sm:$0xff]   ;;  %v3181_v4 = vrot.slane %v3179_v28, 5  ;;  %v4995_v6 = vcombine.low %v6894_v27, %v6898_v51  ;;  %v3195_v58 = vrot.slane %v3193_v0, 5  ;;  %v3817_v29 = vor.u32 %v3816_v14, %v3813_v11  ;;  %v6035_v14 = vld [vmem:[#allocation3 + $0x1e0] sm:$0xff]  }
 0x1d7   : > { %5635 = vmatprep.mubr.bf16.mxu1 %v4952_v40  ;;  %5664 = vmatpush3.bf16.msra.mxu1 %v6018_v18  ;;  %v6027_v18 = vld [vmem:[#allocation3 + $0x140] sm:$0xff]   ;;  %v3442_v39 = vsel %vm6832_vm11, %v4990_v63, %v3441_v32  ;;  %v6029_v40 = vld [vmem:[#allocation3 + $0x1f8] sm:$0xff]   ;;  %v3210_v22 = vor.u32 %v3209_v19, %v3206_v15  ;;  %v3221_v31 = vshll.u32 %v3129_v5, 16  ;;  %v3213_v28 = vshll.u32 %v6886_v25, 16 }
 0x1d8   : > { %5665 = vmatprep.subr.bf16.mxu1 %v6020_v50  ;;  %v3182_v30 = vor.u32 %v3181_v4, %v3178_v57  ;;  %v3171_v12 = vshll.u32 %v6874_v24, 16  ;;  %v3818_v37 = vrot.slane %v3817_v29, 4  ;;  %v3187_v61 = vrot.slane %v3185_v45, 5  ;;  %v6034_v25 = vld [vmem:[#allocation3 + $0x1b8] sm:$0xff]  }
 0x1d9   : > { %5694 = vmatpush3.bf16.msra.mxu0 %v6019_v23  ;;  %v3406_v23 = vld [vmem:[#allocation2 + $0x40] sm:$0xe]  ;;  %v3223_v2 = vrot.slane %v3221_v31, 5 }
 0x1da   : > { %5695 = vmatprep.subr.bf16.mxu0 %v6021_v47  ;;  %v4993_v46 = vrot.slane %v3406_v23, 9  ;;  %v3183_v23 = vrot.slane %v3182_v30, 4  ;;  %v3173_v0 = vrot.slane %v3171_v12, 5 }
 0x1db   : > { %5666 = vmatpush3.bf16.msra.mxu1 %v6020_v50  ;;  %v3446_v50 = vsel %vm6832_vm11, %v4991_v9, %v3445_v13  ;;  %v3806_v13 = vshll.u32 %v6914_v34, 16 }
 0x1dc   : > { %5667 = vmatprep.subr.bf16.mxu1 %v6022_v55  ;;  %v4996_v16 = vcombine.low %v3442_v39, %v3446_v50  ;;  %v3211_v39 = vrot.slane %v3210_v22, 4 }
 0x1dd   : > { %5696 = vmatpush3.bf16.msra.mxu0 %v6021_v47  ;;  %v3802_v47 = vrot.slane %v3800_v17, 5  ;;  %v6032_v17 = vld [vmem:[#allocation3 + $0x100] sm:$0xff]   ;;  %v3808_v33 = vrot.slane %v3806_v13, 5 }
 0x1de   : > { %5636 = vmatmul.mubr.bf16.gmra.mxu1 %v4953_v60  ;;  %5697 = vmatprep.subr.bf16.mxu0 %v6023_v20  ;;  %v3167_v60 = vrot.slane %v3165_v62, 5 }
 0x1df   : > { %5668 = vmatpush3.bf16.msra.mxu1 %v6022_v55  ;;  %5679 = vmatprep.mubr.bf16.mxu1 %v4974_v59  ;;  %v3453_v55 = vrot.slane %v6900_v54, 5  ;;  %v3803_v1 = vor.u32 %v3802_v47, %v3799_v48  ;;  %v3192_v59 = vrot.slane %v3190_v52, 4  ;;  %v3215_v47 = vrot.slane %v3213_v28, 5 }
 0x1e0   : > { %5669 = vmatprep.subr.bf16.mxu1 %v6024_v3  ;;  %v3450_v52 = vsel %vm6832_vm11, %v4992_v42, %v3449_v7 }
 0x1e1   : > { %5698 = vmatpush3.bf16.msra.mxu0 %v6023_v20  ;;  %v3131_v20 = vld [vmem:[#allocation2 + $0x40] sm:$0xf]  ;;  %v3454_v9 = vsel %vm6832_vm11, %v4993_v46, %v3453_v55  ;;  %v3804_v27 = vrot.slane %v3803_v1, 4  ;;  %v3196_v53 = vor.u32 %v3195_v58, %v3192_v59  ;;  %v3216_v11 = vsel %vm6369_vm2, %v3211_v39, %v3215_v47  ;;  %v3788_v58 = vld [vmem:[#allocation2 + $0x30] sm:$0xf] }
 0x1e2   : > { %5699 = vmatprep.subr.bf16.mxu0 %v6025_v26  ;;  %v3232_v63 = vshrl.u32 %v3131_v20, 16  ;;  %v3235_v32 = vshll.u32 %v3131_v20, 16  ;;  %v4997_v55 = vcombine.low %v3450_v52, %v3454_v9  ;;  %v3227_v1 = vshll.u32 %v6908_v44, 16  ;;  %v6038_v9 = vld [vmem:[#allocation3 + $0x1a8] sm:$0xff]   ;;  %v6043_v52 = vld [vmem:[#allocation3 + $0x198] sm:$0xff]  }
 0x1e3   : > { %5670 = vmatpush3.bf16.msra.mxu1 %v6024_v3  ;;  %v6030_v3 = vld [vmem:[#allocation3 + $0x108] sm:$0xff]   ;;  %v3809_v24 = vsel %vm6369_vm2, %v3804_v27, %v3808_v33  ;;  %v3197_v48 = vrot.slane %v3196_v53, 4  ;;  %v3853_v13 = vshrl.u32 %v3788_v58, 16  ;;  %v3856_v29 = vshll.u32 %v3788_v58, 16  ;;  %v3794_v27 = vld [vmem:[#allocation2 + $0x48] sm:$0xf] }
 0x1e4   : > { %5671 = vmatprep.subr.bf16.mxu1 %v6026_v36  ;;  %v3234_v21 = vrot.slane %v3232_v63, 4  ;;  %v3237_v35 = vrot.slane %v3235_v32, 5  ;;  %v3229_v22 = vrot.slane %v3227_v1, 5  ;;  %v6039_v33 = vld [vmem:[#allocation2 + $0x10] ss:$8 sps:$4 sm:$0xff]   ;;  %v3895_v39 = vshrl.u32 %v3794_v27, 16 }
 0x1e5   : > { %5700 = vmatpush3.bf16.msra.mxu0 %v6025_v26  ;;  %v6917_v26 = vld [vmem:[#allocation2 + $0x1c] sm:$0x1]  ;;  %v6959_v58 = vld [vmem:[#allocation2 + $0x4c] sm:$0x1] }
 0x1e6   : > { %5701 = vmatprep.subr.bf16.mxu0 %v6027_v18  ;;  %v3820_v51 = vshll.u32 %v6917_v26, 16  ;;  %v3238_v46 = vor.u32 %v3237_v35, %v3234_v21  ;;  %v3855_v21 = vrot.slane %v3853_v13, 4  ;;  %v3858_v35 = vrot.slane %v3856_v29, 5  ;;  %v6046_v29 = vld [vmem:[#allocation3 + $0x188] sm:$0xff]  }
 0x1e7   : > { %5672 = vmatpush3.bf16.msra.mxu1 %v6026_v36  ;;  %v3168_v36 = vor.u32 %v3167_v60, %v3164_v56  ;;  %v6036_v60 = vld [vmem:[#allocation3 + $0x1b0] sm:$0xff]   ;;  %v3904_v13 = vshll.u32 %v6959_v58, 16 }
 0x1e8   : > { %5673 = vmatprep.subr.bf16.mxu1 %v6028_v38  ;;  %v3239_v59 = vrot.slane %v3238_v46, 4 }
 0x1e9   : > { %5702 = vmatpush3.bf16.msra.mxu0 %v6027_v18  ;;  %v3218_v18 = vshrl.u32 %v3129_v5, 16  ;;  %v3169_v50 = vrot.slane %v3168_v36, 4  ;;  %v6037_v5 = vld [vmem:[#allocation3 + $0x1d8] sm:$0xff]  }
 0x1ea   : > { %5735 = vmatprep.subr.bf16.mxu0 %v6029_v40 }
 0x1eb   : > { %5674 = vmatpush3.bf16.msra.mxu1 %v6028_v38  ;;  %v3199_v38 = vshll.u32 %v6882_v49, 16  ;;  %v3220_v62 = vrot.slane %v3218_v18, 4  ;;  %v3188_v49 = vsel %vm6369_vm2, %v3183_v23, %v3187_v61  ;;  %v3174_v15 = vsel %vm6369_vm2, %v3169_v50, %v3173_v0  ;;  %v6040_v18 = vld [vmem:[#allocation3 + $0x1d0] sm:$0xff]   ;;  %v6041_v23 = vld [vmem:[#allocation3 + $0x1a0] sm:$0xff]   ;;  %v6042_v50 = vld [vmem:[#allocation3 + $0x1c8] sm:$0xff]  }
 0x1ec   : > { %5704 = vmatmul.mubr.bf16.vlgmr.msra.gmra.mxu0 %v4995_v6  ;;  %5675 = vmatprep.subr.bf16.mxu1 %v6030_v3  ;;  %v3241_v6 = vshll.u32 %v6900_v54, 16  ;;  %v4975_v42 = vcombine.low %v3174_v15, %v3188_v49  ;;  %v6947_v61 = vld [vmem:[#allocation2 + $0x2c] sm:$0x1]  ;;  %v6951_v0 = vld [vmem:[#allocation2 + $0x24] sm:$0x1]  ;;  %v3859_v49 = vor.u32 %v3858_v35, %v3855_v21  ;;  %v3897_v15 = vrot.slane %v3895_v39, 4 }
 0x1ed   : > { %5707 = vmatprep.mubr.bf16.mxu0 %v4996_v16  ;;  %5736 = vmatpush3.bf16.msra.mxu0 %v6029_v40  ;;  %v3822_v40 = vrot.slane %v3820_v51, 5  ;;  %v3201_v4 = vrot.slane %v3199_v38, 5  ;;  %v3224_v20 = vor.u32 %v3223_v2, %v3220_v62  ;;  %v3784_v16 = vld [vmem:[#allocation2 + $0x20] sm:$0xf]  ;;  %v6989_v21 = vld [vmem:[%s7225_s4 + $0x28] sm:$0xff]  }
 0x1ee   : > { %5737 = vmatprep.subr.bf16.mxu0 %v6031_v8  ;;  %v3243_v30 = vrot.slane %v3241_v6, 5  ;;  %v3825_v36 = vshrl.u32 %v3784_v16, 16  ;;  %v3828_v45 = vshll.u32 %v3784_v16, 16  ;;  %v7001_v39 = vld [vmem:[%s7225_s4 + $0x20] sm:$0xff]  }
 0x1ef   : > { %5676 = vmatpush3.bf16.msra.mxu1 %v6030_v3  ;;  %v3823_v57 = vsel %vm6369_vm2, %v3818_v37, %v3822_v40  ;;  %v3202_v56 = vsel %vm6369_vm2, %v3197_v48, %v3201_v4  ;;  %v3786_v3 = vld [vmem:[#allocation2 + $0x28] sm:$0xf]  ;;  %v3225_v54 = vrot.slane %v3224_v20, 4  ;;  %v6949_v40 = vld [vmem:[#allocation2 + $0x34] sm:$0x1]  ;;  %v3834_v20 = vshll.u32 %v6951_v0, 16 }
 0x1f0   : > { %5677 = vmatprep.subr.bf16.mxu1 %v6032_v17  ;;  %v5018_v19 = vcombine.low %v3809_v24, %v3823_v57  ;;  %v4976_v7 = vcombine.low %v3202_v56, %v3216_v11  ;;  %v3839_v63 = vshrl.u32 %v3786_v3, 16  ;;  %v3842_v32 = vshll.u32 %v3786_v3, 16  ;;  %v6954_v57 = vld [vmem:[#allocation2 + $0x3c] sm:$0x1]  ;;  %v6044_v4 = vld [vmem:[#allocation3 + $0x1c0] sm:$0xff]  }
 0x1f1   : > { %5738 = vmatpush3.bf16.msra.mxu0 %v6031_v8  ;;  %v3790_v8 = vld [vmem:[#allocation2 + $0x38] sm:$0xf]  ;;  %v3244_v44 = vsel %vm6369_vm2, %v3239_v59, %v3243_v30  ;;  %v3230_v51 = vsel %vm6369_vm2, %v3225_v54, %v3229_v22  ;;  %v3827_v37 = vrot.slane %v3825_v36, 4  ;;  %v3830_v38 = vrot.slane %v3828_v45, 5  ;;  %v6961_v54 = vld [vmem:[#allocation2 + $0x44] sm:$0x1] }
 0x1f2   : > { %5739 = vmatprep.subr.bf16.mxu0 %v6033_v43  ;;  %v3867_v31 = vshrl.u32 %v3790_v8, 16  ;;  %v3841_v53 = vrot.slane %v3839_v63, 4  ;;  %v3844_v28 = vrot.slane %v3842_v32, 5  ;;  %v4977_v12 = vcombine.low %v3230_v51, %v3244_v44  ;;  %v6966_v63 = vld [vmem:[%s7225_s4 + $0x38] sm:$0xff]  }
 0x1f3   : > { %5678 = vmatpush3.bf16.msra.mxu1 %v6032_v17  ;;  %v3870_v17 = vshll.u32 %v3790_v8, 16  ;;  %v3831_v46 = vor.u32 %v3830_v38, %v3827_v37  ;;  %v3862_v11 = vshll.u32 %v6949_v40, 16  ;;  %v3860_v3 = vrot.slane %v3859_v49, 4  ;;  %v6067_v37 = vld [vmem:[%s6301_s30 + $0xd8] ss:$8 sps:$4 sm:$0xff]  }
 0x1f4   : > { %5708 = vmatmul.mubr.bf16.gmra.mxu0 %v4997_v55  ;;  %5711 = vmatprep.subr.bf16.mxu1 %v6034_v25  ;;  %v3869_v62 = vrot.slane %v3867_v31, 4  ;;  %v3845_v24 = vor.u32 %v3844_v28, %v3841_v53  ;;  %v3848_v55 = vshll.u32 %v6947_v61, 16  ;;  %v3836_v32 = vrot.slane %v3834_v20, 5  ;;  %v7035_v20 = vld [vmem:[%s7225_s4] sm:$0xff]  }
 0x1f5   : > { %5740 = vmatpush3.bf16.msra.mxu0 %v6033_v43  ;;  %5751 = vmatprep.mubr.bf16.mxu0 %v5018_v19  ;;  %v3792_v43 = vld [vmem:[#allocation2 + $0x40] sm:$0xf]  ;;  %v3872_v2 = vrot.slane %v3870_v17, 5  ;;  %v3832_v1 = vrot.slane %v3831_v46, 4  ;;  %v3890_v45 = vshll.u32 %v6961_v54, 16  ;;  %v6982_v17 = vld [vmem:[%s7225_s4 + $0x30] sm:$0xff]  }
 0x1f6   : > { %5680 = vmatmul.mubr.bf16.vlgmr.msra.gmra.mxu1 %v4975_v42  ;;  %5741 = vmatprep.subr.bf16.mxu0 %v6035_v14  ;;  %v3881_v48 = vshrl.u32 %v3792_v43, 16  ;;  %v3884_v47 = vshll.u32 %v3792_v43, 16  ;;  %v3846_v6 = vrot.slane %v3845_v24, 4  ;;  %v3850_v59 = vrot.slane %v3848_v55, 5 }
 0x1f7   : > { %5683 = vmatprep.mubr.bf16.mxu1 %v4976_v7  ;;  %5712 = vmatpush3.bf16.msra.mxu1 %v6034_v25  ;;  %v3898_v25 = vshll.u32 %v3794_v27, 16  ;;  %v3876_v7 = vshll.u32 %v6954_v57, 16  ;;  %v3837_v36 = vsel %vm6369_vm2, %v3832_v1, %v3836_v32  ;;  %v3906_v28 = vrot.slane %v3904_v13, 5  ;;  %v4064_v1 = vld [vmem:[#allocation2 + $0x20] sm:$0xe] }
 0x1f8   : > { %5713 = vmatprep.subr.bf16.mxu1 %v6036_v60  ;;  %v3883_v42 = vrot.slane %v3881_v48, 4  ;;  %v3886_v56 = vrot.slane %v3884_v47, 5  ;;  %v3851_v8 = vsel %vm6369_vm2, %v3846_v6, %v3850_v59  ;;  %v4088_v48 = vrot.slane %v6914_v34, 5  ;;  %v7009_v47 = vld [vmem:[%s7225_s4 + $0x18] sm:$0xff]   ;;  %v7019_v34 = vld [vmem:[%s7225_s4 + $0x10] sm:$0xff]   ;;  %v6061_v6 = vld [vmem:[#allocation3 + $0x210] sm:$0xff]  }
 0x1f9   : > { %5742 = vmatpush3.bf16.msra.mxu0 %v6035_v14  ;;  %v3873_v14 = vor.u32 %v3872_v2, %v3869_v62  ;;  %v3900_v19 = vrot.slane %v3898_v25, 5  ;;  %v3878_v44 = vrot.slane %v3876_v7, 5  ;;  %v6048_v62 = vld [vmem:[#allocation2 + $0x20] ss:$8 sps:$4 sm:$0xff]   ;;  %v6050_v2 = vld [vmem:[#allocation2 + $0x30] ss:$8 sps:$4 sm:$0xff]  }
 0x1fa   : > { %5743 = vmatprep.subr.bf16.mxu0 %v6037_v5  ;;  %v4063_v25 = vld [vmem:[#allocation2 + $0x18] sm:$0xe]  ;;  %v4092_v46 = vrot.slane %v6917_v26, 5  ;;  %v6065_v7 = vld [vmem:[#allocation3 + $0x200] sm:$0xff]   ;;  %v4104_v32 = vrot.slane %v6949_v40, 5 }
 0x1fb   : > { %5714 = vmatpush3.bf16.msra.mxu1 %v6036_v60  ;;  %v6045_v60 = vld [vmem:[#allocation3 + $0x190] sm:$0xff]   ;;  %v3874_v16 = vrot.slane %v3873_v14, 4  ;;  %v3901_v30 = vor.u32 %v3900_v19, %v3897_v15  ;;  %v5031_v49 = vrot.slane %v4063_v25, 9  ;;  %v6057_v14 = vld [vmem:[#allocation3 + $0x220] sm:$0xff]   ;;  %v7028_v15 = vld [vmem:[%s7225_s4 + $0x8] sm:$0xff]  }
 0x1fc   : > { %5715 = vmatprep.subr.bf16.mxu1 %v6038_v9  ;;  %v6059_v19 = vld [vmem:[#allocation3 + $0x218] sm:$0xff]  }
 0x1fd   : > { %5744 = vmatpush3.bf16.msra.mxu0 %v6037_v5  ;;  %v3864_v5 = vrot.slane %v3862_v11, 5  ;;  %v3879_v31 = vsel %vm6369_vm2, %v3874_v16, %v3878_v44  ;;  %v3902_v53 = vrot.slane %v3901_v30, 4  ;;  %v4093_v11 = vsel %vm6832_vm11, %v5031_v49, %v4092_v46  ;;  %v4067_v16 = vld [vmem:[#allocation2 + $0x38] sm:$0xe]  ;;  %v4069_v44 = vld [vmem:[#allocation2 + $0x48] sm:$0xe] }
 0x1fe   : > { %5684 = vmatmul.mubr.bf16.gmra.mxu1 %v4977_v12  ;;  %5745 = vmatprep.subr.bf16.mxu0 %v6040_v18  ;;  %v6047_v12 = vld [vmem:[#allocation3 + $0x180] sm:$0xff]   ;;  %v5035_v13 = vrot.slane %v4067_v16, 9 }
 0x1ff   : > { %5716 = vmatpush3.bf16.msra.mxu1 %v6038_v9  ;;  %5727 = vmatprep.mubr.bf16.mxu1 %v6039_v33  ;;  %v3887_v9 = vor.u32 %v3886_v56, %v3883_v42  ;;  %v3865_v22 = vsel %vm6369_vm2, %v3860_v3, %v3864_v5  ;;  %v3907_v43 = vsel %vm6369_vm2, %v3902_v53, %v3906_v28  ;;  %v6049_v33 = vld [vmem:[#allocation3 + $0x238] sm:$0xff]   ;;  %v6063_v42 = vld [vmem:[#allocation3 + $0x208] sm:$0xff]   ;;  %v4066_v3 = vld [vmem:[#allocation2 + $0x30] sm:$0xe]  ;;  %v4100_v5 = vrot.slane %v6947_v61, 5 }
 0x200   : > { %5717 = vmatprep.subr.bf16.mxu1 %v6041_v23  ;;  %v5020_v27 = vcombine.low %v3865_v22, %v3879_v31  ;;  %v6068_v56 = vld [vmem:[%s6301_s30 + $0xe8] ss:$8 sps:$4 sm:$0xff]   ;;  %v5034_v30 = vrot.slane %v4066_v3, 9  ;;  %v4068_v61 = vld [vmem:[#allocation2 + $0x40] sm:$0xe] }
 0x201   : > { %5746 = vmatpush3.bf16.msra.mxu0 %v6040_v18  ;;  %v5019_v18 = vcombine.low %v3837_v36, %v3851_v8  ;;  %v3888_v51 = vrot.slane %v3887_v9, 4  ;;  %v5032_v8 = vrot.slane %v4064_v1, 9  ;;  %v4096_v9 = vrot.slane %v6951_v0, 5 }
 0x202   : > { %5747 = vmatprep.subr.bf16.mxu0 %v6042_v50  ;;  %v4105_v36 = vsel %vm6832_vm11, %v5034_v30, %v4104_v32  ;;  %v5036_v31 = vrot.slane %v4068_v61, 9 }
 0x203   : > { %5718 = vmatpush3.bf16.msra.mxu1 %v6041_v23  ;;  %v3892_v23 = vrot.slane %v3890_v45, 5  ;;  %v4097_v40 = vsel %vm6832_vm11, %v5032_v8, %v4096_v9 }
 0x204   : > { %5719 = vmatprep.subr.bf16.mxu1 %v6043_v52 }
 0x205   : > { %5748 = vmatpush3.bf16.msra.mxu0 %v6042_v50  ;;  %v3893_v35 = vsel %vm6369_vm2, %v3888_v51, %v3892_v23  ;;  %v4062_v50 = vld [vmem:[#allocation2 + $0x10] sm:$0xe]  ;;  %v4116_v51 = vrot.slane %v6959_v58, 5 }
 0x206   : > { %5749 = vmatprep.subr.bf16.mxu0 %v6044_v4  ;;  %v5021_v38 = vcombine.low %v3893_v35, %v3907_v43  ;;  %v5030_v24 = vrot.slane %v4062_v50, 9 }
 0x207   : > { %5720 = vmatpush3.bf16.msra.mxu1 %v6043_v52  ;;  %v6055_v52 = vld [vmem:[#allocation3 + $0x228] sm:$0xff]  }
 0x208   : > { %5721 = vmatprep.subr.bf16.mxu1 %v6045_v60  ;;  %v4089_v55 = vsel %vm6832_vm11, %v5030_v24, %v4088_v48 }
 0x209   : > { %5750 = vmatpush3.bf16.msra.mxu0 %v6044_v4  ;;  %v6054_v4 = vld [vmem:[#allocation2 + $0x40] ss:$8 sps:$4 sm:$0xff]   ;;  %v5038_v26 = vcombine.low %v4089_v55, %v4093_v11 }
 0x20a   : > { %5783 = vmatprep.subr.bf16.mxu0 %v6966_v63 }
 0x20b   : > { %5722 = vmatpush3.bf16.msra.mxu1 %v6045_v60  ;;  %v4065_v60 = vld [vmem:[#allocation2 + $0x28] sm:$0xe] }
 0x20c   : > { %5752 = vmatmul.mubr.bf16.vlgmr.msra.gmra.mxu0 %v5019_v18  ;;  %5723 = vmatprep.subr.bf16.mxu1 %v6046_v29  ;;  %v5033_v59 = vrot.slane %v4065_v60, 9 }
 0x20d   : > { %5755 = vmatprep.mubr.bf16.mxu0 %v5020_v27  ;;  %5784 = vmatpush3.bf16.msra.mxu0 %v6966_v63  ;;  %v4112_v27 = vrot.slane %v6961_v54, 5 }
 0x20e   : > { %5785 = vmatprep.subr.bf16.mxu0 %v6982_v17  ;;  %v4101_v22 = vsel %vm6832_vm11, %v5033_v59, %v4100_v5 }
 0x20f   : > { %5724 = vmatpush3.bf16.msra.mxu1 %v6046_v29  ;;  %v4108_v29 = vrot.slane %v6954_v57, 5  ;;  %v5039_v45 = vcombine.low %v4097_v40, %v4101_v22  ;;  %v5037_v57 = vrot.slane %v4069_v44, 9  ;;  %v4113_v53 = vsel %vm6832_vm11, %v5036_v31, %v4112_v27 }
 0x210   : > { %5725 = vmatprep.subr.bf16.mxu1 %v6047_v12 }
 0x211   : > { %5786 = vmatpush3.bf16.msra.mxu0 %v6982_v17  ;;  %v4109_v0 = vsel %vm6832_vm11, %v5035_v13, %v4108_v29  ;;  %v4117_v28 = vsel %vm6832_vm11, %v5037_v57, %v4116_v51 }
 0x212   : > { %5787 = vmatprep.subr.bf16.mxu0 %v6989_v21  ;;  %v5040_v18 = vcombine.low %v4105_v36, %v4109_v0  ;;  %v5041_v23 = vcombine.low %v4113_v53, %v4117_v28 }
 0x213   : > { %5726 = vmatpush3.bf16.msra.mxu1 %v6047_v12  ;;  %v6069_v12 = vld [vmem:[%s6301_s30 + $0xf8] ss:$8 sps:$4 sm:$0xff]   ;;  %s230_s30 = sand.u32 1, %s6153_s19  }
 0x214   : > { %5756 = vmatmul.mubr.bf16.gmra.mxu0 %v5021_v38  ;;  %5759 = vmatprep.subr.bf16.mxu1 %v6049_v33  ;;  %s4583_s13 = sshll.u32 %s230_s30, 5  ;;  %s7181_s26 = scalar_lea.sflag [#allocation5], %s230_s30 }
 0x215   : > { %5788 = vmatpush3.bf16.msra.mxu0 %v6989_v21  ;;  %5799 = vmatprep.mubr.bf16.mxu0 %v6067_v37  ;;  %s7138_s14 = scalar_lea.vmem [#allocation6], %s4583_s13 }
 0x216   : > { %5728 = vmatmul.mubr.bf16.vlgmr.msra.gmra.mxu1 %v6048_v62  ;;  %5789 = vmatprep.subr.bf16.mxu0 %v7001_v39  ;;  %s4503_s15 = sshll.u32 %s7138_s14, 4  ;;  %s7170_s15 = int_to_ptr.vmem [resolvable:$true] %s4503_s15 }
 0x217   : > { %5731 = vmatprep.mubr.bf16.mxu1 %v6050_v2  ;;  %5760 = vmatpush3.bf16.msra.mxu1 %v6049_v33  ;;  %s6097_s22 = scalar_lea.vmem %s7170_s15, 512  ;;  %p6104_p11 = scmp.lt.s32.totalorder %s7170_s15, %s6102_s7 }
 0x218   : > { %5761 = vmatprep.subr.bf16.mxu1 %v6052_v41  ;;  %p6098_p8 = scmp.ne.s32.totalorder %s7170_s15, %s6097_s22  ;;  %p6105_p12 = scmp.lt.s32.totalorder %s6103_s8, %s6097_s22 }
 0x219   : > { %5790 = vmatpush3.bf16.msra.mxu0 %v7001_v39 }
 0x21a   : > { %5791 = vmatprep.subr.bf16.mxu0 %v7009_v47  ;;  %p6099_p9 = pnand %p6098_p8, %p6238_p5  ;;  %p6106_p13 = por %p6105_p12, %p6104_p11 }
 0x21b   : > { %5762 = vmatpush3.bf16.msra.mxu1 %v6052_v41 }
 0x21c   : > { %5763 = vmatprep.subr.bf16.mxu1 %v6055_v52  ;;  %p6100_p10 = pneg %p6099_p9 }
 0x21d   : > { %5792 = vmatpush3.bf16.msra.mxu0 %v7009_v47 }
 0x21e   : > { %5732 = vmatmul.mubr.bf16.gmra.mxu1 %v6054_v4  ;;  %5793 = vmatprep.subr.bf16.mxu0 %v7019_v34  ;;  %p6107_p0 = pnand %p6106_p13, %p6100_p10 }
 0x21f   : > { %5764 = vmatpush3.bf16.msra.mxu1 %v6055_v52  ;;  %5775 = vmatprep.mubr.bf16.mxu1 %v5038_v26 }
 0x220   : > { %5765 = vmatprep.subr.bf16.mxu1 %v6057_v14 }
 0x221   : > { %5794 = vmatpush3.bf16.msra.mxu0 %v7019_v34 }
 0x222   : > { %5795 = vmatprep.subr.bf16.mxu0 %v7028_v15 }
 0x223   : > { %5766 = vmatpush3.bf16.msra.mxu1 %v6057_v14 }
 0x224   : > { %5767 = vmatprep.subr.bf16.mxu1 %v6059_v19 }
 0x225   : > { %5796 = vmatpush3.bf16.msra.mxu0 %v7028_v15 }
 0x226   : > { %5797 = vmatprep.subr.bf16.mxu0 %v7035_v20 }
 0x227   : > { %5768 = vmatpush3.bf16.msra.mxu1 %v6059_v19 }
 0x228   : > { %5769 = vmatprep.subr.bf16.mxu1 %v6061_v6 }
 0x229   : > { %5798 = vmatpush3.bf16.msra.mxu0 %v7035_v20 }
 0x22b   : > { %5770 = vmatpush3.bf16.msra.mxu1 %v6061_v6 }
 0x22c   : > { %5771 = vmatprep.subr.bf16.mxu1 %v6063_v42  ;;  %5800 = vmatmul.mubr.bf16.vlgmr.msra.gmra.mxu0 %v6068_v56 }
 0x22f   : > { %5772 = vmatpush3.bf16.msra.mxu1 %v6063_v42 }
 0x230   : > { %5773 = vmatprep.subr.bf16.mxu1 %v6065_v7 }
 0x233   : > { %5774 = vmatpush3.bf16.msra.mxu1 %v6065_v7 }
 0x234   : > { %5807 = vmatprep.subr.bf16.mxu1 %v6966_v63 }
 0x236   : > { %5776 = vmatmul.mubr.bf16.vlgmr.msra.gmra.mxu1 %v5039_v45 }
 0x237   : > { %5779 = vmatprep.mubr.bf16.mxu1 %v5040_v18  ;;  %5815 = vmatpush3.bf16.msra.mxu1 %v6966_v63 }
 0x238   : > { %5808 = vmatprep.subr.bf16.mxu1 %v6982_v17 }
 0x23b   : > { %5816 = vmatpush3.bf16.msra.mxu1 %v6982_v17 }
 0x23c   : > { %5809 = vmatprep.subr.bf16.mxu1 %v6989_v21 }
 0x23e   : > { %5780 = vmatmul.mubr.bf16.gmra.mxu1 %v5041_v23 }
 0x23f   : > { %5817 = vmatpush3.bf16.msra.mxu1 %v6989_v21  ;;  %5803 = vmatprep.mubr.bf16.mxu1 %v6069_v12 }
 0x240   : > { %5810 = vmatprep.subr.bf16.mxu1 %v7001_v39 }
 0x243   : > { %5818 = vmatpush3.bf16.msra.mxu1 %v7001_v39 }
 0x244   : > { %5811 = vmatprep.subr.bf16.mxu1 %v7009_v47 }
 0x247   : > { %5819 = vmatpush3.bf16.msra.mxu1 %v7009_v47 }
 0x248   : > { %5812 = vmatprep.subr.bf16.mxu1 %v7019_v34 }
 0x24b   : > { %5820 = vmatpush3.bf16.msra.mxu1 %v7019_v34 }
 0x24c   : > { %5813 = vmatprep.subr.bf16.mxu1 %v7028_v15 }
 0x24f   : > { %5821 = vmatpush3.bf16.msra.mxu1 %v7028_v15 }
 0x250   : > { %5814 = vmatprep.subr.bf16.mxu1 %v7035_v20 }
 0x253   : > { %5822 = vmatpush3.bf16.msra.mxu1 %v7035_v20 }
 0x256   : > { %5804 = vmatmul.mubr.bf16.vlgmr.msra.gmra.mxu1 %v6070_v10 }
 0x269   : > { %v5609_v58 = vpop.f32.mrf.mxu0 }
 0x26b   : > { %v2703_v54 = vpop.f32.mrf.mxu0 }
 0x26d   : > { %v7077_v63 = vpop.f32.mrf.mxu0 }
 0x26f   : > { %v7079_v17 = vpop.f32.mrf.mxu0 }
 0x275   : > { %v5585_v21 = vpop.f32.mrf.mxu1  ;;  %v5613_v43 = vpop.f32.mrf.mxu0 }
 0x276   : > { %v2712_v28 = vadd.f32 %v5609_v58, %v5585_v21 }
 0x277   : > { %v2566_v35 = vpop.f32.mrf.mxu1  ;;  %v2719_v38 = vpop.f32.mrf.mxu0 }
 0x278   : > { %v2704_v23 = vadd.f32 %v2703_v54, %v2566_v35 }
 0x279   : > { %v5586_v33 = vpop.f32.mrf.mxu1  ;;  %v5614_v62 = vpop.f32.mrf.mxu0 }
 0x27b   : > { %v2569_v37 = vpop.f32.mrf.mxu1  ;;  %v2722_v48 = vpop.f32.mrf.mxu0 }
 0x27e   : > { %v5589_v39 = vpop.f32.mrf.mxu1 }
 0x27f   : > { %v7081_v50 = vadd.f32 %v5613_v43, %v5589_v39 }
 0x280   : > { %v2582_v41 = vpop.f32.mrf.mxu1 }
 0x281   : > { %v7083_v2 = vadd.f32 %v2719_v38, %v2582_v41  ;;  %v2715_v38 = vadd.f32 %v7077_v63, %v5586_v33  ;;  %v2707_v41 = vadd.f32 %v7079_v17, %v2569_v37 }
 0x282   : > { %v5590_v25 = vpop.f32.mrf.mxu1 }
 0x283   : > { %v7085_v24 = vadd.f32 %v5614_v62, %v5590_v25 }
 0x284   : > { %v2585_v47 = vpop.f32.mrf.mxu1 }
 0x285   : > { %v7087_v52 = vadd.f32 %v2722_v48, %v2585_v47 }
 0x28b   : > { %v5657_v49 = vpop.f32.mrf.mxu0 }
 0x28d   : > { %v3078_v46 = vpop.f32.mrf.mxu0 }
 0x28f   : > { %v5658_v34 = vpop.f32.mrf.mxu0 }
 0x291   : > { %v3081_v11 = vpop.f32.mrf.mxu0 }
 0x293   : > { %v7089_v26 = vpop.f32.mrf.mxu0 }
 0x295   : > { %v7091_v19 = vpop.f32.mrf.mxu0 }
 0x296   : > { %v5633_v55 = vpop.f32.mrf.mxu1 }
 0x297   : > { %v7095_v6 = vpop.f32.mrf.mxu0  ;;  %v2941_v10 = vadd.f32 %v5633_v55, %v2712_v28 }
 0x298   : > { %v2908_v4 = vpop.f32.mrf.mxu1 }
 0x299   : > { %v7099_v56 = vpop.f32.mrf.mxu0  ;;  %v2939_v39 = vadd.f32 %v2908_v4, %v2704_v23  ;;  %v3111_v48 = vadd.f32 %v5657_v49, %v2941_v10 }
 0x29a   : > { %v5634_v14 = vpop.f32.mrf.mxu1 }
 0x29b   : > { %v2942_v25 = vadd.f32 %v5634_v14, %v2715_v38 }
 0x29c   : > { %v2911_v15 = vpop.f32.mrf.mxu1 }
 0x29d   : > { %v3112_v21 = vadd.f32 %v5658_v34, %v2942_v25 }
 0x29e   : > { %v7093_v20 = vpop.f32.mrf.mxu1 }
 0x2a0   : > { %v7097_v42 = vpop.f32.mrf.mxu1 }
 0x2a2   : > { %v7101_v60 = vpop.f32.mrf.mxu1 }
 0x2a4   : > { %v7103_v7 = vpop.f32.mrf.mxu1 }
 0x2ac   : > { %v5705_v3 = vpop.f32.mrf.mxu0 }
 0x2ae   : > { %v3570_v1 = vpop.f32.mrf.mxu0 }
 0x2b0   : > { %v5706_v5 = vpop.f32.mrf.mxu0 }
 0x2b2   : > { %v3573_v30 = vpop.f32.mrf.mxu0 }
 0x2b4   : > { %v7105_v8 = vpop.f32.mrf.mxu0 }
 0x2b6   : > { %v5681_v59 = vpop.f32.mrf.mxu1  ;;  %v7107_v13 = vpop.f32.mrf.mxu0 }
 0x2b8   : > { %v3360_v16 = vpop.f32.mrf.mxu1  ;;  %v7111_v22 = vpop.f32.mrf.mxu0 }
 0x2b9   : > { %7252 = vst [vmem:[#allocation12_spill] sm:$0xff] %v7111_v22  ;;  %v3393_v22 = vadd.f32 %v5681_v59, %v3111_v48 }
 0x2ba   : > { %v5682_v32 = vpop.f32.mrf.mxu1  ;;  %v7115_v36 = vpop.f32.mrf.mxu0 }
 0x2bb   : > { %7253 = vst [vmem:[#allocation13_spill] sm:$0xff] %v7115_v36  ;;  %v2940_v36 = vadd.f32 %v2911_v15, %v2707_v41  ;;  %v3394_v55 = vadd.f32 %v5682_v32, %v3112_v21  ;;  %v3603_v33 = vadd.f32 %v5705_v3, %v3393_v22  ;;  %v2943_v21 = vadd.f32 %v7097_v42, %v7083_v2 }
 0x2bc   : > { %v3363_v9 = vpop.f32.mrf.mxu1 }
 0x2bd   : > { %v3110_v63 = vadd.f32 %v3081_v11, %v2940_v36  ;;  %v3604_v14 = vadd.f32 %v5706_v5, %v3394_v55  ;;  %v2946_v55 = vadd.f32 %v7101_v60, %v7085_v24 }
 0x2be   : > { %v7109_v29 = vpop.f32.mrf.mxu1 }
 0x2bf   : > { %v3392_v23 = vadd.f32 %v3363_v9, %v3110_v63 }
 0x2c0   : > { %v7113_v44 = vpop.f32.mrf.mxu1 }
 0x2c1   : > { %v3602_v10 = vadd.f32 %v3573_v30, %v3392_v23 }
 0x2c2   : > { %v7117_v61 = vpop.f32.mrf.mxu1 }
 0x2c4   : > { %v7119_v45 = vpop.f32.mrf.mxu1 }
 0x2cc   : > { %v5753_v40 = vpop.f32.mrf.mxu0 }
 0x2ce   : > { %v4023_v0 = vpop.f32.mrf.mxu0 }
 0x2d0   : > { %v5754_v18 = vpop.f32.mrf.mxu0 }
 0x2d2   : > { %v4026_v27 = vpop.f32.mrf.mxu0 }
 0x2d4   : > { %v7121_v53 = vpop.f32.mrf.mxu0 }
 0x2d5   : > { %7254 = vst [vmem:[#allocation9_spill] sm:$0xff] %v7121_v53  ;;  %v3109_v53 = vadd.f32 %v3078_v46, %v2939_v39 }
 0x2d6   : > { %v5729_v57 = vpop.f32.mrf.mxu1  ;;  %v7123_v43 = vpop.f32.mrf.mxu0 }
 0x2d7   : > { %v3391_v54 = vadd.f32 %v3360_v16, %v3109_v53  ;;  %v3774_v17 = vadd.f32 %v5729_v57, %v3603_v33  ;;  %v2944_v33 = vadd.f32 %v7103_v7, %v7087_v52 }
 0x2d8   : > { %v3741_v31 = vpop.f32.mrf.mxu1  ;;  %v7129_v47 = vpop.f32.mrf.mxu0 }
 0x2d9   : > { %v3601_v37 = vadd.f32 %v3570_v1, %v3391_v54  ;;  %v4056_v38 = vadd.f32 %v5753_v40, %v3774_v17  ;;  %v3113_v17 = vadd.f32 %v7091_v19, %v2943_v21  ;;  %v3114_v42 = vadd.f32 %v7099_v56, %v2944_v33 }
 0x2da   : > { %v5730_v51 = vpop.f32.mrf.mxu1  ;;  %v7133_v35 = vpop.f32.mrf.mxu0 }
 0x2db   : > { %v3772_v49 = vadd.f32 %v3741_v31, %v3601_v37  ;;  %v3775_v46 = vadd.f32 %v5730_v51, %v3604_v14  ;;  %v3116_v37 = vadd.f32 %v7095_v6, %v2946_v55  ;;  %v3396_v24 = vadd.f32 %v7119_v45, %v3114_v42  ;;  %v7256_v14 = vld [vmem:[#allocation13_spill] sm:$0xff] }
 0x2dc   : > { %v3744_v12 = vpop.f32.mrf.mxu1 }
 0x2dd   : > { %v3773_v34 = vadd.f32 %v3744_v12, %v3602_v10  ;;  %v4054_v32 = vadd.f32 %v4023_v0, %v3772_v49  ;;  %v4057_v36 = vadd.f32 %v5754_v18, %v3775_v46  ;;  %v3398_v2 = vadd.f32 %v7117_v61, %v3116_v37  ;;  %v7257_v46 = vld [vmem:[#allocation9_spill] sm:$0xff] }
 0x2de   : > { %v7126_v62 = vpop.f32.mrf.mxu1 }
 0x2df   : > { %v4055_v31 = vadd.f32 %v4026_v27, %v3773_v34  ;;  %v2945_v27 = vadd.f32 %v7093_v20, %v7081_v50  ;;  %v3395_v20 = vadd.f32 %v7113_v44, %v3113_v17  ;;  %v3606_v44 = vadd.f32 %v7256_v14, %v3396_v24 }
 0x2e0   : > { %v7131_v58 = vpop.f32.mrf.mxu1 }
 0x2e1   : > { %v3605_v7 = vadd.f32 %v7107_v13, %v3395_v20 }
 0x2e2   : > { %v5734_v4 = vpop.f32.mrf.mxu1 }
 0x2e3   : > { %v3776_v6 = vadd.f32 %v7131_v58, %v3605_v7 }
 0x2e4   : > { %v3760_v15 = vpop.f32.mrf.mxu1 }
 0x2e5   : > { %v3777_v61 = vadd.f32 %v3760_v15, %v3606_v44 }
 0x2e7   : > { %v4059_v58 = vadd.f32 %v7133_v35, %v3777_v61 }
 0x2ec   : > { %v5801_v28 = vpop.f32.mrf.mxu0 }
 0x2ee   : > { %v4402_v59 = vpop.f32.mrf.mxu0 }
 0x2f0   : > { %v5802_v3 = vpop.f32.mrf.mxu0 }
 0x2f2   : > { %v4405_v39 = vpop.f32.mrf.mxu0 }
 0x2f6   : > { %v5777_v16 = vpop.f32.mrf.mxu1 }
 0x2f7   : > { %v4266_v53 = vadd.f32 %v5777_v16, %v4056_v38 }
 0x2f8   : > { %v4233_v11 = vpop.f32.mrf.mxu1 }
 0x2f9   : > { %v4264_v22 = vadd.f32 %v4233_v11, %v4054_v32  ;;  %v4435_v1 = vadd.f32 %v5801_v28, %v4266_v53  ;;  %v3115_v28 = vadd.f32 %v7089_v26, %v2945_v27 }
 0x2fa   : > { %v5778_v9 = vpop.f32.mrf.mxu1 }
 0x2fb   : > { %v4267_v57 = vadd.f32 %v5778_v9, %v4057_v36  ;;  %v4433_v41 = vadd.f32 %v4402_v59, %v4264_v22  ;;  %v4443_v40 = vmax.f32 %v4435_v1, 0.0  ;;  %v3397_v23 = vadd.f32 %v7109_v29, %v3115_v28  ;;  %v7255_v29 = vld [vmem:[#allocation12_spill] sm:$0xff] }
 0x2fc   : > { %v4236_v5 = vpop.f32.mrf.mxu1  ;;  %v3608_v19 = vadd.f32 %v7255_v29, %v3398_v2 }
 0x2fd   : > { %v4265_v51 = vadd.f32 %v4236_v5, %v4055_v31  ;;  %v4436_v30 = vadd.f32 %v5802_v3, %v4267_v57  ;;  %v4441_v0 = vmax.f32 %v4433_v41, 0.0  ;;  %v3607_v60 = vadd.f32 %v7105_v8, %v3397_v23 }
 0x2fe   : > { %v5781_v63 = vpop.f32.mrf.mxu1  ;;  %v3779_v49 = vadd.f32 %v5734_v4, %v3608_v19  ;;  %v4058_v8 = vadd.f32 %v7123_v43, %v3776_v6 }
 0x2ff   : > { %v4444_v12 = vmax.f32 %v4436_v30, 0.0  ;;  %v4434_v25 = vadd.f32 %v4405_v39, %v4265_v51  ;;  %v3778_v26 = vadd.f32 %v7126_v62, %v3607_v60 }
 0x300   : > { %v4249_v50 = vpop.f32.mrf.mxu1  ;;  %v4061_v62 = vadd.f32 %v7129_v47, %v3779_v49 }
 0x301   : > { %v5108_v48 = vpack.c.bf16 %v4444_v12, %v4443_v40  ;;  %v4442_v54 = vmax.f32 %v4434_v25, 0.0  ;;  %v4060_v56 = vadd.f32 %v7257_v46, %v3778_v26  ;;  %v4268_v38 = vadd.f32 %v4249_v50, %v4058_v8 }
 0x302   : > { %v5782_v52 = vpop.f32.mrf.mxu1 }
 0x303   : > { %5120 = vst [vmem:[%s7138_s14 + $0x8] sm:$0xff] %v5108_v48   ;;  %v5103_v18 = vpack.c.bf16 %v4442_v54, %v4441_v0  ;;  %v4270_v10 = vadd.f32 %v5781_v63, %v4060_v56  ;;  %v4271_v16 = vadd.f32 %v5782_v52, %v4061_v62 }
 0x304   : > { %v4252_v59 = vpop.f32.mrf.mxu1 }
 0x305   : > { %5104 = vst [vmem:[%s7138_s14] sm:$0xff] %v5103_v18   ;;  %v4269_v53 = vadd.f32 %v4252_v59, %v4059_v58 }
 0x316   : > { %v5805_v45 = vpop.f32.mrf.mxu1 }
 0x317   : > { %v4439_v4 = vadd.f32 %v5805_v45, %v4270_v10 }
 0x318   : > { %v4418_v13 = vpop.f32.mrf.mxu1 }
 0x319   : > { %v4437_v15 = vadd.f32 %v4418_v13, %v4268_v38  ;;  %v4447_v43 = vmax.f32 %v4439_v4, 0.0 }
 0x31a   : > { %v5806_v34 = vpop.f32.mrf.mxu1 }
 0x31b   : > { %v4440_v32 = vadd.f32 %v5806_v34, %v4271_v16  ;;  %v4445_v47 = vmax.f32 %v4437_v15, 0.0 }
 0x31c   : > { %v4421_v11 = vpop.f32.mrf.mxu1 }
 0x31d   : > { %v4448_v3 = vmax.f32 %v4440_v32, 0.0  ;;  %v4438_v22 = vadd.f32 %v4421_v11, %v4269_v53 }
 0x31f   : > { %v5118_v36 = vpack.c.bf16 %v4448_v3, %v4447_v43  ;;  %v4446_v9 = vmax.f32 %v4438_v22, 0.0 }
 0x321   : > { %5122 = vst [vmem:[%s7138_s14 + $0x18] sm:$0xff] %v5118_v36   ;;  %v5113_v35 = vpack.c.bf16 %v4446_v9, %v4445_v47 }
 0x323   : > { %5121 = vst [vmem:[%s7138_s14 + $0x10] sm:$0xff] %v5113_v35  }
 0x324   : > { %6110 = shalt.err (!%p6107_p0)
}
 0x325   : > { %s6111_s9 = scalar_lea.hbm %s7176_s25, 512  ;;  %s6115_s12 = scalar_lea.hbm %s7226_s5, 1024 }
 0x326   : > { %p6112_p1 = scmp.ne.s32.totalorder %s7176_s25, %s6111_s9  ;;  %p6116_p4 = scmp.lt.s32.totalorder %s7176_s25, %s7226_s5 }
 0x327   : > { %p6117_p7 = scmp.lt.s32.totalorder %s6115_s12, %s6111_s9 }
 0x328   : > { %p6113_p2 = pnand %p6112_p1, %p6238_p5 }
 0x329   : > { %p6118_p6 = por %p6117_p7, %p6116_p4 }
 0x32a   : > { %p6114_p3 = pneg %p6113_p2 }
 0x32c   : > { %p6119_p8 = pnand %p6118_p6, %p6114_p3 }
 0x32e   : > { %6122 = shalt.err (!%p6119_p8)
}
 0x32f   : > { %s6168_s14 = smov 64   ;;  %s6169_s16 = smov 4  }
 0x330   : > { %5828 = dma.vmem_to_hbm [thread:$0]  (%p6238_p5), %s7170_s15, 512, %s7176_s25, %s7181_s26, %s6168_s14, %s6168_s14, %s6169_s16  }
 0x331 PF: > { %p5840_p9 = scmp.ge.s32.totalorder %s6161_s21, 2  ;;  %s4518_s17 = sand.u32 1, %s6149_s18  }
 0x332   : > { %p7258_p10 = scmp.ne.s32.totalorder %s7232_s29, 0  ;;  %s4519_s23 = scalar_lea.sflag [#allocation5], %s4518_s17 }
 0x334   : > { %p5835_p11 = pnand %p5840_p9, %p7258_p10 }
 0x336   : > { %p5836_p12 = pneg %p5835_p11 }
 0x338   : > { %6144 = dma.done.wait (%p5836_p12), %s4519_s23, 512  }
 0x339   : > { %6146 = vsyncadd (%p5836_p12), %s4519_s23, 4294966784  ;;  %p16_p13 = scmp.ge.s32.totalorder %s6225_s24, 4   ;;  %s7259_s18 = smov %s6153_s19 }
 0x33a   : > { %s7260_s19 = smov %s6157_s20  ;;  %s7261_s20 = smov %s6236_s27 }
 0x33b   : > { %s7262_s21 = smov %s6225_s24  ;;  %18 = sbr.rel (!%p16_p13) target bundleno = 4 (0x4), region = 104 }
 0x340   :  { %4524 = vsyncpa [#allocation4], 1 }
 0x341   :  { %4526 = vsyncpa [#allocation4 + $0x1], 1 }
 0x342   :  { %4527 = vsyncpa [#allocation5], 1 }
 0x343   :  { %4529 = vsyncpa [#allocation5 + $0x1], 1 }

</bundles_post_ra>
